<compile_context>
chip_gen: v7x
topology: tpu7x:2x2x1
jax: 0.10.0
libtpu: 0.0.40
codegen_flags: <defaults>
</compile_context>

<pallas_src>
import functools
import math

import jax
import jax.numpy as jnp
from jax import lax
from jax.experimental import pallas as pl
from jax.experimental.pallas import tpu as pltpu


def _layernorm(x, gamma, beta, eps=1e-5):
    # PyTorch nn.LayerNorm: biased variance, eps inside sqrt. f32 math.
    mean = jnp.mean(x, axis=-1, keepdims=True)
    var = jnp.mean((x - mean) ** 2, axis=-1, keepdims=True)
    return (x - mean) * lax.rsqrt(var + eps) * gamma + beta


def _encoder_block_kernel(
    x_ref,
    wq_ref, bq_ref,            # (D, D) bf16, (1, D) f32   (softmax scale folded in)
    wkv_ref, bkv_ref,          # (D, 2D) bf16, (1, 2D) f32
    wo_ref, bo_ref,            # (D, D) bf16, (1, D) f32
    g1_ref, be1_ref,           # (1, D) f32
    w1_ref, b1_ref, w2_ref,    # (n_c, D, dc) bf16, (n_c, 1, dc) f32, (n_c, dc, D) bf16
    b2_ref,                    # (1, D) f32
    g2_ref, be2_ref,           # (1, D) f32
    o_ref,                     # (Bt, S, D)
    out1_s,                    # (Bt, S, D) f32 scratch: attention-sublayer output
    *, head_num, q_chunk, approx_softmax,
):
    Bt, S, D = x_ref.shape
    M = Bt * S
    H = head_num
    dh = D // H
    n_q = S // q_chunk

    # ---- K/V projection for the whole block: one (M,D)x(D,2D) MXU matmul.
    # bf16 in / f32 acc; bias add + bf16 cast fused per part so the f32 (M,2D)
    # result and a full bf16 copy are never live simultaneously.
    x_bf = x_ref[...].reshape(M, D).astype(jnp.bfloat16)
    kv = jnp.dot(x_bf, wkv_ref[...], preferred_element_type=jnp.float32)
    k_all = (kv[:, :D] + bkv_ref[:, :D]).astype(jnp.bfloat16)
    v_all = (kv[:, D:2 * D] + bkv_ref[:, D:2 * D]).astype(jnp.bfloat16)
    # Per-head views, hoisted out of the Q-chunk loop (one lane relayout per head).
    khs = [k_all[:, h * dh:(h + 1) * dh].reshape(Bt, S, dh) for h in range(H)]
    vhs = [v_all[:, h * dh:(h + 1) * dh].reshape(Bt, S, dh) for h in range(H)]

    # ---- Attention sublayer, tiled over Q rows so score/exp transients are
    # (Bt, q_chunk, S) rather than the full (Bt, S, S). residual1 + norm1 are
    # fused per chunk; results land in the out1 scratch (full-lane stores).
    @pl.loop(0, n_q)
    def _(c):
        r0 = pl.multiple_of(c * q_chunk, q_chunk)
        xc = x_ref[:, pl.ds(r0, q_chunk), :].astype(jnp.float32)      # (Bt, tq, D)
        xc_bf = xc.astype(jnp.bfloat16).reshape(Bt * q_chunk, D)

        # Q projection for this row chunk (1/sqrt(dh) already folded into wq/bq).
        qp = jnp.dot(xc_bf, wq_ref[...], preferred_element_type=jnp.float32)
        qp = (qp + bq_ref[...]).astype(jnp.bfloat16).reshape(Bt, q_chunk, D)

        ctx_heads = []
        for h in range(H):                                            # static, small H
            qh = qp[:, :, h * dh:(h + 1) * dh]                        # (Bt, tq, dh)
            s = jnp.einsum('bqd,bkd->bqk', qh, khs[h],
                           preferred_element_type=jnp.float32)        # (Bt, tq, S)
            m = jnp.max(s, axis=-1, keepdims=True)
            e = jnp.exp(s - m)
            denom = jnp.sum(e, axis=-1, keepdims=True)
            if approx_softmax:
                p = e * pl.reciprocal(denom, approx=True)             # EUP slot
            else:
                p = e / denom
            ctx_heads.append(
                jnp.einsum('bqk,bkd->bqd', p.astype(jnp.bfloat16), vhs[h],
                           preferred_element_type=jnp.float32).astype(jnp.bfloat16))

        # Assemble heads into their lane slots, then ONE K=D output projection
        # (replaces the previous per-head K=dh matmul + f32 accumulate).
        ctx = jnp.concatenate(ctx_heads, axis=-1).reshape(Bt * q_chunk, D)
        attn = jnp.dot(ctx, wo_ref[...], preferred_element_type=jnp.float32)
        attn = attn + bo_ref[...]

        # residual 1: inputs + dropout1(norm1(attention)); dropout = identity.
        out1c = xc + _layernorm(attn, g1_ref[...], be1_ref[...]).reshape(Bt, q_chunk, D)
        out1_s[:, pl.ds(r0, q_chunk), :] = out1c

    out1 = out1_s[...].reshape(M, D)
    out1_bf = out1.astype(jnp.bfloat16)

    # ---- FeedForward: Linear -> ReLU -> Linear, streamed over Dff chunks with a
    # rolled fori_loop (bounded live ranges). Weights are pre-chunked host-side so
    # only the leading axis is dynamically indexed (lane-aligned full-width tiles).
    n_c = w1_ref.shape[0]

    def ffn_body(ci, acc):
        hdn = jnp.dot(out1_bf, w1_ref[ci], preferred_element_type=jnp.float32)
        hdn = jnp.maximum(hdn + b1_ref[ci], 0.0).astype(jnp.bfloat16)
        return acc + jnp.dot(hdn, w2_ref[ci], preferred_element_type=jnp.float32)

    ff = lax.fori_loop(0, n_c, ffn_body, jnp.zeros((M, D), jnp.float32))
    ff = ff + b2_ref[...]

    # residual 2: out + dropout2(norm2(feedforward)); dropout = identity.
    out2 = out1 + _layernorm(ff, g2_ref[...], be2_ref[...])
    o_ref[...] = out2.reshape(Bt, S, D).astype(o_ref.dtype)


# --------------------------------------------------------------------------- #
# Host-side helpers
# --------------------------------------------------------------------------- #
def _default_vmem_limit_bytes():
    # Generation-aware VMEM budget: ~75% of physical VMEM (96 MiB on v5e/v6e's
    # 128 MiB, 48 MiB on v7x's 64 MiB per TensorCore), capped at 100 MiB.
    cap = 128 * 1024 * 1024
    try:
        cap = int(getattr(pltpu.get_tpu_info(), "vmem_capacity_bytes", cap))
    except Exception:
        pass
    return int(min(cap * 3 // 4, 100 * 1024 * 1024))


def _pick_block_b(B, S):
    # Largest divisor of B that keeps >= 2 grid steps (so the "parallel" axis can
    # shard across v7x's two TensorCores) while bounding per-block rows.
    best = 1
    for cand in range(1, B + 1):
        if B % cand:
            continue
        if cand * S > 2048:
            continue
        if B >= 2 and B // cand < 2:
            continue
        best = cand
    return best


def _pick_q_chunk(S):
    for cand in (256, 128, 64, 32, 16, 8):
        if S % cand == 0:
            return cand
    return S


def _pick_dff_chunk(Dff):
    for cand in (512, 256, 128):
        if Dff % cand == 0:
            return cand
    return Dff


def _prepare_weights(params, head_num, dff_chunk):
    """One-time host prep: scale folding, K/V fusion, bf16 casts, FFN chunking."""
    D = params["wq"].shape[0]
    Dff = params["w1"].shape[1]
    dh = D // head_num
    scale = 1.0 / math.sqrt(dh)
    n_c = Dff // dff_chunk
    f32, bf16 = jnp.float32, jnp.bfloat16
    return dict(
        wq=(params["wq"] * scale).astype(bf16),
        bq=(params["bq"] * scale).astype(f32),
        wkv=jnp.concatenate([params["wk"], params["wv"]], axis=1).astype(bf16),
        bkv=jnp.concatenate([params["bk"], params["bv"]], axis=1).astype(f32),
        wo=params["wo"].astype(bf16),
        bo=params["bo"].astype(f32),
        g1=params["g1"].astype(f32), be1=params["be1"].astype(f32),
        w1=params["w1"].astype(bf16).reshape(D, n_c, dff_chunk).transpose(1, 0, 2),
        b1=params["b1"].astype(f32).reshape(n_c, dff_chunk)[:, None, :],
        w2=params["w2"].astype(bf16).reshape(n_c, dff_chunk, D),
        b2=params["b2"].astype(f32),
        g2=params["g2"].astype(f32), be2=params["be2"].astype(f32),
    )


def _encoder_forward(x, prep, head_num, *, block_b, q_chunk, approx_softmax,
                     single_buffer_weights, vmem_limit_bytes):
    B, S, D = x.shape
    n_c, _, dc = prep["w1"].shape

    def w_spec(shape):
        n = len(shape)
        index_map = lambda b: (0,) * n
        if single_buffer_weights:
            # Grid-invariant weights: single-buffer to halve resident VMEM.
            return pl.BlockSpec(shape, index_map, pipeline_mode=pl.Buffered(1))
        return pl.BlockSpec(shape, index_map)

    kernel = functools.partial(_encoder_block_kernel, head_num=head_num,
                               q_chunk=q_chunk, approx_softmax=approx_softmax)

    in_specs = [
        pl.BlockSpec((block_b, S, D), lambda b: (b, 0, 0)),               # x
        w_spec((D, D)), w_spec((1, D)),                                    # wq, bq
        w_spec((D, 2 * D)), w_spec((1, 2 * D)),                            # wkv, bkv
        w_spec((D, D)), w_spec((1, D)),                                    # wo, bo
        w_spec((1, D)), w_spec((1, D)),                                    # g1, be1
        w_spec((n_c, D, dc)), w_spec((n_c, 1, dc)), w_spec((n_c, dc, D)),  # w1, b1, w2
        w_spec((1, D)),                                                    # b2
        w_spec((1, D)), w_spec((1, D)),                                    # g2, be2
    ]

    return pl.pallas_call(
        kernel,
        out_shape=jax.ShapeDtypeStruct((B, S, D), x.dtype),
        grid_spec=pltpu.PrefetchScalarGridSpec(
            num_scalar_prefetch=0,
            grid=(B // block_b,),
            in_specs=in_specs,
            out_specs=pl.BlockSpec((block_b, S, D), lambda b: (b, 0, 0)),
            scratch_shapes=[pltpu.VMEM((block_b, S, D), jnp.float32)],
        ),
        compiler_params=pltpu.CompilerParams(
            dimension_semantics=("parallel",),
            vmem_limit_bytes=vmem_limit_bytes,
        ),
    )(x, prep["wq"], prep["bq"], prep["wkv"], prep["bkv"], prep["wo"], prep["bo"],
      prep["g1"], prep["be1"], prep["w1"], prep["b1"], prep["w2"], prep["b2"],
      prep["g2"], prep["be2"])


def make_transformer_encoder_block(params, head_num, *, block_b=None, dff_chunk=None,
                                   q_chunk=None, approx_softmax=True,
                                   vmem_limit_bytes=None):
    """Returns a forward callable with the weight prep cached (done once)."""
    D = params["wq"].shape[0]
    Dff = params["w1"].shape[1]
    assert D % head_num == 0, "features_dim must be divisible by head_num"
    if dff_chunk is None:
        dff_chunk = _pick_dff_chunk(Dff)
    assert Dff % dff_chunk == 0, "dff_chunk must divide the FFN hidden size"
    if vmem_limit_bytes is None:
        vmem_limit_bytes = _default_vmem_limit_bytes()

    prep = _prepare_weights(params, head_num, dff_chunk)

    def fwd(x, encoder_mask=None):
        # TODO(synk): encoder_mask is not implemented (mask=None path only).
        assert encoder_mask is None
        B, S, D_ = x.shape
        assert D_ == D
        bb = block_b if block_b is not None else _pick_block_b(B, S)
        assert B % bb == 0
        qc = q_chunk if q_chunk is not None else _pick_q_chunk(S)
        assert S % qc == 0 and (qc % 8 == 0 or qc == S)
        kwargs = dict(block_b=bb, q_chunk=qc, approx_softmax=approx_softmax,
                      vmem_limit_bytes=vmem_limit_bytes)
        try:
            return _encoder_forward(x, prep, head_num,
                                    single_buffer_weights=True, **kwargs)
        except Exception:
            # Fallback if this Pallas version rejects single-buffered
            # (pl.Buffered(1)) grid-invariant weight specs.
            return _encoder_forward(x, prep, head_num,
                                    single_buffer_weights=False, **kwargs)

    return fwd


def transformer_encoder_block(x, params, head_num, **kwargs):
    return make_transformer_encoder_block(params, head_num, **kwargs)(x)


# --------------------------------------------------------------------------- #
# Pure-JAX reference (matches the PyTorch module semantics, eval mode)
# --------------------------------------------------------------------------- #
def _reference(x, p, head_num):
    B, S, D = x.shape
    dh = D // head_num

    def attn_one(xb):
        q = xb @ p["wq"] + p["bq"][0]
        k = xb @ p["wk"] + p["bk"][0]
        v = xb @ p["wv"] + p["bv"][0]
        outs = []
        for h in range(head_num):
            qh, kh, vh = (t[:, h * dh:(h + 1) * dh] for t in (q, k, v))
            s = qh @ kh.T / math.sqrt(dh)
            pr = jax.nn.softmax(s, axis=-1)
            outs.append(pr @ vh)
        return jnp.concatenate(outs, -1) @ p["wo"] + p["bo"][0]

    def ln(t, g, b):
        m = t.mean(-1, keepdims=True)
        v = ((t - m) ** 2).mean(-1, keepdims=True)
        return (t - m) / jnp.sqrt(v + 1e-5) * g[0] + b[0]

    def block_one(xb):
        a = attn_one(xb)
        o1 = xb + ln(a, p["g1"], p["be1"])
        ff = jnp.maximum(o1 @ p["w1"] + p["b1"][0], 0.0) @ p["w2"] + p["b2"][0]
        return o1 + ln(ff, p["g2"], p["be2"])

    return jax.vmap(block_one)(x)


if __name__ == "__main__":
    # Small but lane-dense shapes: D multiple of 128 => unmasked stores, aligned tiles.
    B, S, D, H = 4, 16, 128, 4
    Dff = 4 * D

    key = jax.random.PRNGKey(0)
    keys = jax.random.split(key, 16)
    scale = 0.05

    params = {
        "wq": jax.random.normal(keys[0], (D, D), jnp.float32) * scale,
        "bq": jax.random.normal(keys[1], (1, D), jnp.float32) * scale,
        "wk": jax.random.normal(keys[2], (D, D), jnp.float32) * scale,
        "bk": jax.random.normal(keys[3], (1, D), jnp.float32) * scale,
        "wv": jax.random.normal(keys[4], (D, D), jnp.float32) * scale,
        "bv": jax.random.normal(keys[5], (1, D), jnp.float32) * scale,
        "wo": jax.random.normal(keys[6], (D, D), jnp.float32) * scale,
        "bo": jax.random.normal(keys[7], (1, D), jnp.float32) * scale,
        "g1": jnp.ones((1, D), jnp.float32),
        "be1": jnp.zeros((1, D), jnp.float32),
        "w1": jax.random.normal(keys[8], (D, Dff), jnp.float32) * scale,
        "b1": jax.random.normal(keys[9], (1, Dff), jnp.float32) * scale,
        "w2": jax.random.normal(keys[10], (Dff, D), jnp.float32) * scale,
        "b2": jax.random.normal(keys[11], (1, D), jnp.float32) * scale,
        "g2": jnp.ones((1, D), jnp.float32),
        "be2": jnp.zeros((1, D), jnp.float32),
    }

    x = jax.random.normal(keys[12], (B, S, D), jnp.float32)

    # dff_chunk=256 (2 FFN chunks) and q_chunk=8 (2 Q-row chunks) so the chunked
    # loops are actually exercised at these small test shapes. block_b auto-picks 2
    # (grid of 2 parallel steps).
    fwd = make_transformer_encoder_block(params, H, dff_chunk=256, q_chunk=8)
    out = jax.block_until_ready(fwd(x))

    ref = _reference(x, params, H)
    assert out.shape == (B, S, D)
    # bf16 MXU inputs + approx reciprocal loosen the tolerance vs. the f32 reference.
    assert jnp.allclose(out, ref, atol=5e-2, rtol=5e-2), "mismatch vs JAX reference"

    print("KERNEL_OK")
</pallas_src>

<mosaic_0001>
module attributes {stable_mosaic.version = 11 : i64} {
  func.func @_encoder_block_kernel(%arg0: i32, %arg1: memref<2x16x128xf32, #tpu.memory_space<vmem>>, %arg2: memref<128x128xbf16, #tpu.memory_space<vmem>>, %arg3: memref<1x128xf32, #tpu.memory_space<vmem>>, %arg4: memref<128x256xbf16, #tpu.memory_space<vmem>>, %arg5: memref<1x256xf32, #tpu.memory_space<vmem>>, %arg6: memref<128x128xbf16, #tpu.memory_space<vmem>>, %arg7: memref<1x128xf32, #tpu.memory_space<vmem>>, %arg8: memref<1x128xf32, #tpu.memory_space<vmem>>, %arg9: memref<1x128xf32, #tpu.memory_space<vmem>>, %arg10: memref<2x128x256xbf16, #tpu.memory_space<vmem>>, %arg11: memref<2x1x256xf32, #tpu.memory_space<vmem>>, %arg12: memref<2x256x128xbf16, #tpu.memory_space<vmem>>, %arg13: memref<1x128xf32, #tpu.memory_space<vmem>>, %arg14: memref<1x128xf32, #tpu.memory_space<vmem>>, %arg15: memref<1x128xf32, #tpu.memory_space<vmem>>, %arg16: memref<2x16x128xf32, #tpu.memory_space<vmem>>, %arg17: memref<2x16x128xf32, #tpu.memory_space<vmem>>) attributes {dimension_semantics = [#tpu.dimension_semantics<parallel>], iteration_bounds = array<i64: 2>, scalar_prefetch = 0 : i64, scratch_operands = 1 : i64, tpu.core_type = #tpu.core_type<tc>, window_params = [{transform_indices = @transform_0, window_bounds = array<i64: 2, 16, 128>}, {pipeline_mode = #tpu.pipeline_mode<synchronous>, transform_indices = @transform_1, window_bounds = array<i64: 128, 128>}, {pipeline_mode = #tpu.pipeline_mode<synchronous>, transform_indices = @transform_2, window_bounds = array<i64: 1, 128>}, {pipeline_mode = #tpu.pipeline_mode<synchronous>, transform_indices = @transform_3, window_bounds = array<i64: 128, 256>}, {pipeline_mode = #tpu.pipeline_mode<synchronous>, transform_indices = @transform_4, window_bounds = array<i64: 1, 256>}, {pipeline_mode = #tpu.pipeline_mode<synchronous>, transform_indices = @transform_5, window_bounds = array<i64: 128, 128>}, {pipeline_mode = #tpu.pipeline_mode<synchronous>, transform_indices = @transform_6, window_bounds = array<i64: 1, 128>}, {pipeline_mode = #tpu.pipeline_mode<synchronous>, transform_indices = @transform_7, window_bounds = array<i64: 1, 128>}, {pipeline_mode = #tpu.pipeline_mode<synchronous>, transform_indices = @transform_8, window_bounds = array<i64: 1, 128>}, {pipeline_mode = #tpu.pipeline_mode<synchronous>, transform_indices = @transform_9, window_bounds = array<i64: 2, 128, 256>}, {pipeline_mode = #tpu.pipeline_mode<synchronous>, transform_indices = @transform_10, window_bounds = array<i64: 2, 1, 256>}, {pipeline_mode = #tpu.pipeline_mode<synchronous>, transform_indices = @transform_11, window_bounds = array<i64: 2, 256, 128>}, {pipeline_mode = #tpu.pipeline_mode<synchronous>, transform_indices = @transform_12, window_bounds = array<i64: 1, 128>}, {pipeline_mode = #tpu.pipeline_mode<synchronous>, transform_indices = @transform_13, window_bounds = array<i64: 1, 128>}, {pipeline_mode = #tpu.pipeline_mode<synchronous>, transform_indices = @transform_14, window_bounds = array<i64: 1, 128>}, {transform_indices = @transform_15, window_bounds = array<i64: 2, 16, 128>}]} {
    %c0 = arith.constant 0 : index
    %c0_0 = arith.constant 0 : index
    %c0_1 = arith.constant 0 : index
    %0 = vector.load %arg1[%c0, %c0_0, %c0_1] : memref<2x16x128xf32, #tpu.memory_space<vmem>>, vector<2x16x128xf32>
    %1 = vector.shape_cast %0 : vector<2x16x128xf32> to vector<32x128xf32>
    %2 = arith.truncf %1 : vector<32x128xf32> to vector<32x128xbf16>
    %c0_2 = arith.constant 0 : index
    %c0_3 = arith.constant 0 : index
    %3 = vector.load %arg4[%c0_2, %c0_3] : memref<128x256xbf16, #tpu.memory_space<vmem>>, vector<128x256xbf16>
    %cst = arith.constant dense<0.000000e+00> : vector<32x256xf32>
    %4 = tpu.matmul %2, %3, %cst {dimension_numbers = #tpu.dot_dimension_numbers<[1], [0], [0], [1], [0, 0, 1, 1], [], []>} : vector<32x128xbf16>, vector<128x256xbf16>, vector<32x256xf32> -> vector<32x256xf32>
    %5 = vector.extract_strided_slice %4 {offsets = [0, 0], sizes = [32, 128], strides = [1, 1]} : vector<32x256xf32> to vector<32x128xf32>
    %c0_4 = arith.constant 0 : index
    %c0_5 = arith.constant 0 : index
    %6 = vector.load %arg5[%c0_4, %c0_5] : memref<1x256xf32, #tpu.memory_space<vmem>>, vector<1x128xf32>
    %7 = vector.broadcast %6 : vector<1x128xf32> to vector<32x128xf32>
    %8 = arith.addf %5, %7 : vector<32x128xf32>
    %9 = arith.truncf %8 : vector<32x128xf32> to vector<32x128xbf16>
    %10 = vector.extract_strided_slice %4 {offsets = [0, 128], sizes = [32, 128], strides = [1, 1]} : vector<32x256xf32> to vector<32x128xf32>
    %c0_6 = arith.constant 0 : index
    %c128 = arith.constant 128 : index
    %11 = vector.load %arg5[%c0_6, %c128] : memref<1x256xf32, #tpu.memory_space<vmem>>, vector<1x128xf32>
    %12 = vector.broadcast %11 : vector<1x128xf32> to vector<32x128xf32>
    %13 = arith.addf %10, %12 : vector<32x128xf32>
    %14 = arith.truncf %13 : vector<32x128xf32> to vector<32x128xbf16>
    %15 = vector.extract_strided_slice %9 {offsets = [0, 0], sizes = [32, 32], strides = [1, 1]} : vector<32x128xbf16> to vector<32x32xbf16>
    %16 = vector.shape_cast %15 : vector<32x32xbf16> to vector<2x16x32xbf16>
    %17 = vector.extract_strided_slice %9 {offsets = [0, 32], sizes = [32, 32], strides = [1, 1]} : vector<32x128xbf16> to vector<32x32xbf16>
    %18 = vector.shape_cast %17 : vector<32x32xbf16> to vector<2x16x32xbf16>
    %19 = vector.extract_strided_slice %9 {offsets = [0, 64], sizes = [32, 32], strides = [1, 1]} : vector<32x128xbf16> to vector<32x32xbf16>
    %20 = vector.shape_cast %19 : vector<32x32xbf16> to vector<2x16x32xbf16>
    %21 = vector.extract_strided_slice %9 {offsets = [0, 96], sizes = [32, 32], strides = [1, 1]} : vector<32x128xbf16> to vector<32x32xbf16>
    %22 = vector.shape_cast %21 : vector<32x32xbf16> to vector<2x16x32xbf16>
    %23 = vector.extract_strided_slice %14 {offsets = [0, 0], sizes = [32, 32], strides = [1, 1]} : vector<32x128xbf16> to vector<32x32xbf16>
    %24 = vector.shape_cast %23 : vector<32x32xbf16> to vector<2x16x32xbf16>
    %25 = vector.extract_strided_slice %14 {offsets = [0, 32], sizes = [32, 32], strides = [1, 1]} : vector<32x128xbf16> to vector<32x32xbf16>
    %26 = vector.shape_cast %25 : vector<32x32xbf16> to vector<2x16x32xbf16>
    %27 = vector.extract_strided_slice %14 {offsets = [0, 64], sizes = [32, 32], strides = [1, 1]} : vector<32x128xbf16> to vector<32x32xbf16>
    %28 = vector.shape_cast %27 : vector<32x32xbf16> to vector<2x16x32xbf16>
    %29 = vector.extract_strided_slice %14 {offsets = [0, 96], sizes = [32, 32], strides = [1, 1]} : vector<32x128xbf16> to vector<32x32xbf16>
    %30 = vector.shape_cast %29 : vector<32x32xbf16> to vector<2x16x32xbf16>
    %c0_i32 = arith.constant 0 : i32
    %c2_i32 = arith.constant 2 : i32
    %31 = arith.addi %c0_i32, %c2_i32 : i32
    %c1_i32 = arith.constant 1 : i32
    scf.for %arg18 = %c0_i32 to %31 step %c1_i32  : i32 {
      %c1_i32_30 = arith.constant 1 : i32
      %68 = arith.muli %arg18, %c1_i32_30 : i32
      %c0_i32_31 = arith.constant 0 : i32
      %69 = arith.addi %c0_i32_31, %68 : i32
      %c8_i32 = arith.constant 8 : i32
      %70 = arith.muli %69, %c8_i32 : i32
      %71 = tpu.assume_multiple %70, 8 : i32
      %c0_32 = arith.constant 0 : index
      %72 = arith.index_cast %71 : i32 to index
      %c0_33 = arith.constant 0 : index
      %73 = vector.load %arg1[%c0_32, %72, %c0_33] : memref<2x16x128xf32, #tpu.memory_space<vmem>>, vector<2x8x128xf32>
      %74 = arith.truncf %73 : vector<2x8x128xf32> to vector<2x8x128xbf16>
      %75 = vector.shape_cast %74 : vector<2x8x128xbf16> to vector<16x128xbf16>
      %c0_34 = arith.constant 0 : index
      %c0_35 = arith.constant 0 : index
      %76 = vector.load %arg2[%c0_34, %c0_35] : memref<128x128xbf16, #tpu.memory_space<vmem>>, vector<128x128xbf16>
      %cst_36 = arith.constant dense<0.000000e+00> : vector<16x128xf32>
      %77 = tpu.matmul %75, %76, %cst_36 {dimension_numbers = #tpu.dot_dimension_numbers<[1], [0], [0], [1], [0, 0, 1, 1], [], []>} : vector<16x128xbf16>, vector<128x128xbf16>, vector<16x128xf32> -> vector<16x128xf32>
      %c0_37 = arith.constant 0 : index
      %c0_38 = arith.constant 0 : index
      %78 = vector.load %arg3[%c0_37, %c0_38] : memref<1x128xf32, #tpu.memory_space<vmem>>, vector<1x128xf32>
      %79 = vector.broadcast %78 : vector<1x128xf32> to vector<16x128xf32>
      %80 = arith.addf %77, %79 : vector<16x128xf32>
      %81 = arith.truncf %80 : vector<16x128xf32> to vector<16x128xbf16>
      %82 = vector.shape_cast %81 : vector<16x128xbf16> to vector<2x8x128xbf16>
      %83 = vector.extract_strided_slice %82 {offsets = [0, 0, 0], sizes = [2, 8, 32], strides = [1, 1, 1]} : vector<2x8x128xbf16> to vector<2x8x32xbf16>
      "tpu.trace_start"() <{level = 10 : i32, message = "bqd,bkd->bqk"}> : () -> ()
      %cst_39 = arith.constant dense<0.000000e+00> : vector<2x8x16xf32>
      %84 = tpu.matmul %83, %16, %cst_39 {dimension_numbers = #tpu.dot_dimension_numbers<[2], [2], [1], [1], [0, 0, 0, 1, 1, 1], [0], [0]>} : vector<2x8x32xbf16>, vector<2x16x32xbf16>, vector<2x8x16xf32> -> vector<2x8x16xf32>
      "tpu.trace_stop"() : () -> ()
      %cst_40 = arith.constant dense<0xFF800000> : vector<2x8xf32>
      %85 = vector.multi_reduction <maximumf>, %84, %cst_40 [2] : vector<2x8x16xf32> to vector<2x8xf32>
      %86 = vector.shape_cast %85 : vector<2x8xf32> to vector<2x8x1xf32>
      %87 = vector.broadcast %86 : vector<2x8x1xf32> to vector<2x8x16xf32>
      %88 = arith.subf %84, %87 : vector<2x8x16xf32>
      %89 = math.exp %88 : vector<2x8x16xf32>
      %cst_41 = arith.constant dense<0.000000e+00> : vector<2x8xf32>
      %90 = vector.multi_reduction <add>, %89, %cst_41 [2] : vector<2x8x16xf32> to vector<2x8xf32>
      %91 = vector.shape_cast %90 : vector<2x8xf32> to vector<2x8x1xf32>
      %92 = tpu.reciprocal %91 {approx = true} : vector<2x8x1xf32> -> vector<2x8x1xf32>
      %93 = vector.broadcast %92 : vector<2x8x1xf32> to vector<2x8x16xf32>
      %94 = arith.mulf %89, %93 : vector<2x8x16xf32>
      %95 = arith.truncf %94 : vector<2x8x16xf32> to vector<2x8x16xbf16>
      "tpu.trace_start"() <{level = 10 : i32, message = "bqk,bkd->bqd"}> : () -> ()
      %cst_42 = arith.constant dense<0.000000e+00> : vector<2x8x32xf32>
      %96 = tpu.matmul %95, %24, %cst_42 {dimension_numbers = #tpu.dot_dimension_numbers<[2], [1], [1], [2], [0, 0, 0, 1, 1, 2], [0], [0]>} : vector<2x8x16xbf16>, vector<2x16x32xbf16>, vector<2x8x32xf32> -> vector<2x8x32xf32>
      "tpu.trace_stop"() : () -> ()
      %97 = arith.truncf %96 : vector<2x8x32xf32> to vector<2x8x32xbf16>
      %98 = vector.extract_strided_slice %82 {offsets = [0, 0, 32], sizes = [2, 8, 32], strides = [1, 1, 1]} : vector<2x8x128xbf16> to vector<2x8x32xbf16>
      "tpu.trace_start"() <{level = 10 : i32, message = "bqd,bkd->bqk"}> : () -> ()
      %cst_43 = arith.constant dense<0.000000e+00> : vector<2x8x16xf32>
      %99 = tpu.matmul %98, %18, %cst_43 {dimension_numbers = #tpu.dot_dimension_numbers<[2], [2], [1], [1], [0, 0, 0, 1, 1, 1], [0], [0]>} : vector<2x8x32xbf16>, vector<2x16x32xbf16>, vector<2x8x16xf32> -> vector<2x8x16xf32>
      "tpu.trace_stop"() : () -> ()
      %cst_44 = arith.constant dense<0xFF800000> : vector<2x8xf32>
      %100 = vector.multi_reduction <maximumf>, %99, %cst_44 [2] : vector<2x8x16xf32> to vector<2x8xf32>
      %101 = vector.shape_cast %100 : vector<2x8xf32> to vector<2x8x1xf32>
      %102 = vector.broadcast %101 : vector<2x8x1xf32> to vector<2x8x16xf32>
      %103 = arith.subf %99, %102 : vector<2x8x16xf32>
      %104 = math.exp %103 : vector<2x8x16xf32>
      %cst_45 = arith.constant dense<0.000000e+00> : vector<2x8xf32>
      %105 = vector.multi_reduction <add>, %104, %cst_45 [2] : vector<2x8x16xf32> to vector<2x8xf32>
      %106 = vector.shape_cast %105 : vector<2x8xf32> to vector<2x8x1xf32>
      %107 = tpu.reciprocal %106 {approx = true} : vector<2x8x1xf32> -> vector<2x8x1xf32>
      %108 = vector.broadcast %107 : vector<2x8x1xf32> to vector<2x8x16xf32>
      %109 = arith.mulf %104, %108 : vector<2x8x16xf32>
      %110 = arith.truncf %109 : vector<2x8x16xf32> to vector<2x8x16xbf16>
      "tpu.trace_start"() <{level = 10 : i32, message = "bqk,bkd->bqd"}> : () -> ()
      %cst_46 = arith.constant dense<0.000000e+00> : vector<2x8x32xf32>
      %111 = tpu.matmul %110, %26, %cst_46 {dimension_numbers = #tpu.dot_dimension_numbers<[2], [1], [1], [2], [0, 0, 0, 1, 1, 2], [0], [0]>} : vector<2x8x16xbf16>, vector<2x16x32xbf16>, vector<2x8x32xf32> -> vector<2x8x32xf32>
      "tpu.trace_stop"() : () -> ()
      %112 = arith.truncf %111 : vector<2x8x32xf32> to vector<2x8x32xbf16>
      %113 = vector.extract_strided_slice %82 {offsets = [0, 0, 64], sizes = [2, 8, 32], strides = [1, 1, 1]} : vector<2x8x128xbf16> to vector<2x8x32xbf16>
      "tpu.trace_start"() <{level = 10 : i32, message = "bqd,bkd->bqk"}> : () -> ()
      %cst_47 = arith.constant dense<0.000000e+00> : vector<2x8x16xf32>
      %114 = tpu.matmul %113, %20, %cst_47 {dimension_numbers = #tpu.dot_dimension_numbers<[2], [2], [1], [1], [0, 0, 0, 1, 1, 1], [0], [0]>} : vector<2x8x32xbf16>, vector<2x16x32xbf16>, vector<2x8x16xf32> -> vector<2x8x16xf32>
      "tpu.trace_stop"() : () -> ()
      %cst_48 = arith.constant dense<0xFF800000> : vector<2x8xf32>
      %115 = vector.multi_reduction <maximumf>, %114, %cst_48 [2] : vector<2x8x16xf32> to vector<2x8xf32>
      %116 = vector.shape_cast %115 : vector<2x8xf32> to vector<2x8x1xf32>
      %117 = vector.broadcast %116 : vector<2x8x1xf32> to vector<2x8x16xf32>
      %118 = arith.subf %114, %117 : vector<2x8x16xf32>
      %119 = math.exp %118 : vector<2x8x16xf32>
      %cst_49 = arith.constant dense<0.000000e+00> : vector<2x8xf32>
      %120 = vector.multi_reduction <add>, %119, %cst_49 [2] : vector<2x8x16xf32> to vector<2x8xf32>
      %121 = vector.shape_cast %120 : vector<2x8xf32> to vector<2x8x1xf32>
      %122 = tpu.reciprocal %121 {approx = true} : vector<2x8x1xf32> -> vector<2x8x1xf32>
      %123 = vector.broadcast %122 : vector<2x8x1xf32> to vector<2x8x16xf32>
      %124 = arith.mulf %119, %123 : vector<2x8x16xf32>
      %125 = arith.truncf %124 : vector<2x8x16xf32> to vector<2x8x16xbf16>
      "tpu.trace_start"() <{level = 10 : i32, message = "bqk,bkd->bqd"}> : () -> ()
      %cst_50 = arith.constant dense<0.000000e+00> : vector<2x8x32xf32>
      %126 = tpu.matmul %125, %28, %cst_50 {dimension_numbers = #tpu.dot_dimension_numbers<[2], [1], [1], [2], [0, 0, 0, 1, 1, 2], [0], [0]>} : vector<2x8x16xbf16>, vector<2x16x32xbf16>, vector<2x8x32xf32> -> vector<2x8x32xf32>
      "tpu.trace_stop"() : () -> ()
      %127 = arith.truncf %126 : vector<2x8x32xf32> to vector<2x8x32xbf16>
      %128 = vector.extract_strided_slice %82 {offsets = [0, 0, 96], sizes = [2, 8, 32], strides = [1, 1, 1]} : vector<2x8x128xbf16> to vector<2x8x32xbf16>
      "tpu.trace_start"() <{level = 10 : i32, message = "bqd,bkd->bqk"}> : () -> ()
      %cst_51 = arith.constant dense<0.000000e+00> : vector<2x8x16xf32>
      %129 = tpu.matmul %128, %22, %cst_51 {dimension_numbers = #tpu.dot_dimension_numbers<[2], [2], [1], [1], [0, 0, 0, 1, 1, 1], [0], [0]>} : vector<2x8x32xbf16>, vector<2x16x32xbf16>, vector<2x8x16xf32> -> vector<2x8x16xf32>
      "tpu.trace_stop"() : () -> ()
      %cst_52 = arith.constant dense<0xFF800000> : vector<2x8xf32>
      %130 = vector.multi_reduction <maximumf>, %129, %cst_52 [2] : vector<2x8x16xf32> to vector<2x8xf32>
      %131 = vector.shape_cast %130 : vector<2x8xf32> to vector<2x8x1xf32>
      %132 = vector.broadcast %131 : vector<2x8x1xf32> to vector<2x8x16xf32>
      %133 = arith.subf %129, %132 : vector<2x8x16xf32>
      %134 = math.exp %133 : vector<2x8x16xf32>
      %cst_53 = arith.constant dense<0.000000e+00> : vector<2x8xf32>
      %135 = vector.multi_reduction <add>, %134, %cst_53 [2] : vector<2x8x16xf32> to vector<2x8xf32>
      %136 = vector.shape_cast %135 : vector<2x8xf32> to vector<2x8x1xf32>
      %137 = tpu.reciprocal %136 {approx = true} : vector<2x8x1xf32> -> vector<2x8x1xf32>
      %138 = vector.broadcast %137 : vector<2x8x1xf32> to vector<2x8x16xf32>
      %139 = arith.mulf %134, %138 : vector<2x8x16xf32>
      %140 = arith.truncf %139 : vector<2x8x16xf32> to vector<2x8x16xbf16>
      "tpu.trace_start"() <{level = 10 : i32, message = "bqk,bkd->bqd"}> : () -> ()
      %cst_54 = arith.constant dense<0.000000e+00> : vector<2x8x32xf32>
      %141 = tpu.matmul %140, %30, %cst_54 {dimension_numbers = #tpu.dot_dimension_numbers<[2], [1], [1], [2], [0, 0, 0, 1, 1, 2], [0], [0]>} : vector<2x8x16xbf16>, vector<2x16x32xbf16>, vector<2x8x32xf32> -> vector<2x8x32xf32>
      "tpu.trace_stop"() : () -> ()
      %142 = arith.truncf %141 : vector<2x8x32xf32> to vector<2x8x32xbf16>
      %143 = tpu.concatenate %97, %112, %127, %142 in 2 : vector<2x8x32xbf16>, vector<2x8x32xbf16>, vector<2x8x32xbf16>, vector<2x8x32xbf16> -> vector<2x8x128xbf16>
      %144 = vector.shape_cast %143 : vector<2x8x128xbf16> to vector<16x128xbf16>
      %c0_55 = arith.constant 0 : index
      %c0_56 = arith.constant 0 : index
      %145 = vector.load %arg6[%c0_55, %c0_56] : memref<128x128xbf16, #tpu.memory_space<vmem>>, vector<128x128xbf16>
      %cst_57 = arith.constant dense<0.000000e+00> : vector<16x128xf32>
      %146 = tpu.matmul %144, %145, %cst_57 {dimension_numbers = #tpu.dot_dimension_numbers<[1], [0], [0], [1], [0, 0, 1, 1], [], []>} : vector<16x128xbf16>, vector<128x128xbf16>, vector<16x128xf32> -> vector<16x128xf32>
      %c0_58 = arith.constant 0 : index
      %c0_59 = arith.constant 0 : index
      %147 = vector.load %arg7[%c0_58, %c0_59] : memref<1x128xf32, #tpu.memory_space<vmem>>, vector<1x128xf32>
      %148 = vector.broadcast %147 : vector<1x128xf32> to vector<16x128xf32>
      %149 = arith.addf %146, %148 : vector<16x128xf32>
      %c0_60 = arith.constant 0 : index
      %c0_61 = arith.constant 0 : index
      %150 = vector.load %arg8[%c0_60, %c0_61] : memref<1x128xf32, #tpu.memory_space<vmem>>, vector<1x128xf32>
      %c0_62 = arith.constant 0 : index
      %c0_63 = arith.constant 0 : index
      %151 = vector.load %arg9[%c0_62, %c0_63] : memref<1x128xf32, #tpu.memory_space<vmem>>, vector<1x128xf32>
      %cst_64 = arith.constant dense<0.000000e+00> : vector<16xf32>
      %152 = vector.multi_reduction <add>, %149, %cst_64 [1] : vector<16x128xf32> to vector<16xf32>
      %153 = vector.shape_cast %152 : vector<16xf32> to vector<16x1xf32>
      %cst_65 = arith.constant 1.280000e+02 : f32
      %154 = vector.broadcast %cst_65 : f32 to vector<16x1xf32>
      %155 = arith.divf %153, %154 : vector<16x1xf32>
      %156 = vector.broadcast %155 : vector<16x1xf32> to vector<16x128xf32>
      %157 = arith.subf %149, %156 : vector<16x128xf32>
      %158 = arith.mulf %157, %157 : vector<16x128xf32>
      %cst_66 = arith.constant dense<0.000000e+00> : vector<16xf32>
      %159 = vector.multi_reduction <add>, %158, %cst_66 [1] : vector<16x128xf32> to vector<16xf32>
      %160 = vector.shape_cast %159 : vector<16xf32> to vector<16x1xf32>
      %cst_67 = arith.constant 1.280000e+02 : f32
      %161 = vector.broadcast %cst_67 : f32 to vector<16x1xf32>
      %162 = arith.divf %160, %161 : vector<16x1xf32>
      %163 = vector.broadcast %155 : vector<16x1xf32> to vector<16x128xf32>
      %164 = arith.subf %149, %163 : vector<16x128xf32>
      %cst_68 = arith.constant 9.99999974E-6 : f32
      %165 = vector.broadcast %cst_68 : f32 to vector<16x1xf32>
      %166 = arith.addf %162, %165 : vector<16x1xf32>
      %167 = math.rsqrt %166 : vector<16x1xf32>
      %168 = vector.broadcast %167 : vector<16x1xf32> to vector<16x128xf32>
      %169 = arith.mulf %164, %168 : vector<16x128xf32>
      %170 = vector.broadcast %150 : vector<1x128xf32> to vector<16x128xf32>
      %171 = arith.mulf %169, %170 : vector<16x128xf32>
      %172 = vector.broadcast %151 : vector<1x128xf32> to vector<16x128xf32>
      %173 = arith.addf %171, %172 : vector<16x128xf32>
      %174 = vector.shape_cast %173 : vector<16x128xf32> to vector<2x8x128xf32>
      %175 = arith.addf %73, %174 : vector<2x8x128xf32>
      %c0_69 = arith.constant 0 : index
      %176 = arith.index_cast %71 : i32 to index
      %c0_70 = arith.constant 0 : index
      %177 = vector.load %arg17[%c0_69, %176, %c0_70] : memref<2x16x128xf32, #tpu.memory_space<vmem>>, vector<2x8x128xf32>
      tpu.vector_store %arg17[%c0_69, %176, %c0_70], %175 {strides = array<i32>} : memref<2x16x128xf32, #tpu.memory_space<vmem>>, vector<2x8x128xf32>,
    }
    %c2_i32_7 = arith.constant 2 : i32
    %c0_8 = arith.constant 0 : index
    %c0_9 = arith.constant 0 : index
    %c0_10 = arith.constant 0 : index
    %32 = vector.load %arg17[%c0_8, %c0_9, %c0_10] : memref<2x16x128xf32, #tpu.memory_space<vmem>>, vector<2x16x128xf32>
    %33 = vector.shape_cast %32 : vector<2x16x128xf32> to vector<32x128xf32>
    %34 = arith.truncf %33 : vector<32x128xf32> to vector<32x128xbf16>
    %cst_11 = arith.constant 0.000000e+00 : f32
    %35 = vector.broadcast %cst_11 : f32 to vector<32x128xf32>
    %c0_i32_12 = arith.constant 0 : i32
    %c2_i32_13 = arith.constant 2 : i32
    %36 = arith.addi %c0_i32_12, %c2_i32_13 : i32
    %c1_i32_14 = arith.constant 1 : i32
    %37 = scf.for %arg18 = %c0_i32_12 to %36 step %c1_i32_14 iter_args(%arg19 = %35) -> (vector<32x128xf32>)  : i32 {
      %68 = arith.index_cast %arg18 : i32 to index
      %c0_30 = arith.constant 0 : index
      %c0_31 = arith.constant 0 : index
      %69 = vector.load %arg10[%68, %c0_30, %c0_31] : memref<2x128x256xbf16, #tpu.memory_space<vmem>>, vector<1x128x256xbf16>
      %70 = vector.shape_cast %69 : vector<1x128x256xbf16> to vector<128x256xbf16>
      %cst_32 = arith.constant dense<0.000000e+00> : vector<32x256xf32>
      %71 = tpu.matmul %34, %70, %cst_32 {dimension_numbers = #tpu.dot_dimension_numbers<[1], [0], [0], [1], [0, 0, 1, 1], [], []>} : vector<32x128xbf16>, vector<128x256xbf16>, vector<32x256xf32> -> vector<32x256xf32>
      %72 = arith.index_cast %arg18 : i32 to index
      %c0_33 = arith.constant 0 : index
      %c0_34 = arith.constant 0 : index
      %73 = vector.load %arg11[%72, %c0_33, %c0_34] : memref<2x1x256xf32, #tpu.memory_space<vmem>>, vector<1x1x256xf32>
      %74 = vector.shape_cast %73 : vector<1x1x256xf32> to vector<1x256xf32>
      %75 = vector.broadcast %74 : vector<1x256xf32> to vector<32x256xf32>
      %76 = arith.addf %71, %75 : vector<32x256xf32>
      %cst_35 = arith.constant 0.000000e+00 : f32
      %77 = vector.broadcast %cst_35 : f32 to vector<32x256xf32>
      %78 = arith.maximumf %76, %77 : vector<32x256xf32>
      %79 = arith.truncf %78 : vector<32x256xf32> to vector<32x256xbf16>
      %80 = arith.index_cast %arg18 : i32 to index
      %c0_36 = arith.constant 0 : index
      %c0_37 = arith.constant 0 : index
      %81 = vector.load %arg12[%80, %c0_36, %c0_37] : memref<2x256x128xbf16, #tpu.memory_space<vmem>>, vector<1x256x128xbf16>
      %82 = vector.shape_cast %81 : vector<1x256x128xbf16> to vector<256x128xbf16>
      %cst_38 = arith.constant dense<0.000000e+00> : vector<32x128xf32>
      %83 = tpu.matmul %79, %82, %cst_38 {dimension_numbers = #tpu.dot_dimension_numbers<[1], [0], [0], [1], [0, 0, 1, 1], [], []>} : vector<32x256xbf16>, vector<256x128xbf16>, vector<32x128xf32> -> vector<32x128xf32>
      %84 = arith.addf %arg19, %83 : vector<32x128xf32>
      scf.yield %84 : vector<32x128xf32>
    }
    %c2_i32_15 = arith.constant 2 : i32
    %c0_16 = arith.constant 0 : index
    %c0_17 = arith.constant 0 : index
    %38 = vector.load %arg13[%c0_16, %c0_17] : memref<1x128xf32, #tpu.memory_space<vmem>>, vector<1x128xf32>
    %39 = vector.broadcast %38 : vector<1x128xf32> to vector<32x128xf32>
    %40 = arith.addf %37, %39 : vector<32x128xf32>
    %c0_18 = arith.constant 0 : index
    %c0_19 = arith.constant 0 : index
    %41 = vector.load %arg14[%c0_18, %c0_19] : memref<1x128xf32, #tpu.memory_space<vmem>>, vector<1x128xf32>
    %c0_20 = arith.constant 0 : index
    %c0_21 = arith.constant 0 : index
    %42 = vector.load %arg15[%c0_20, %c0_21] : memref<1x128xf32, #tpu.memory_space<vmem>>, vector<1x128xf32>
    %cst_22 = arith.constant dense<0.000000e+00> : vector<32xf32>
    %43 = vector.multi_reduction <add>, %40, %cst_22 [1] : vector<32x128xf32> to vector<32xf32>
    %44 = vector.shape_cast %43 : vector<32xf32> to vector<32x1xf32>
    %cst_23 = arith.constant 1.280000e+02 : f32
    %45 = vector.broadcast %cst_23 : f32 to vector<32x1xf32>
    %46 = arith.divf %44, %45 : vector<32x1xf32>
    %47 = vector.broadcast %46 : vector<32x1xf32> to vector<32x128xf32>
    %48 = arith.subf %40, %47 : vector<32x128xf32>
    %49 = arith.mulf %48, %48 : vector<32x128xf32>
    %cst_24 = arith.constant dense<0.000000e+00> : vector<32xf32>
    %50 = vector.multi_reduction <add>, %49, %cst_24 [1] : vector<32x128xf32> to vector<32xf32>
    %51 = vector.shape_cast %50 : vector<32xf32> to vector<32x1xf32>
    %cst_25 = arith.constant 1.280000e+02 : f32
    %52 = vector.broadcast %cst_25 : f32 to vector<32x1xf32>
    %53 = arith.divf %51, %52 : vector<32x1xf32>
    %54 = vector.broadcast %46 : vector<32x1xf32> to vector<32x128xf32>
    %55 = arith.subf %40, %54 : vector<32x128xf32>
    %cst_26 = arith.constant 9.99999974E-6 : f32
    %56 = vector.broadcast %cst_26 : f32 to vector<32x1xf32>
    %57 = arith.addf %53, %56 : vector<32x1xf32>
    %58 = math.rsqrt %57 : vector<32x1xf32>
    %59 = vector.broadcast %58 : vector<32x1xf32> to vector<32x128xf32>
    %60 = arith.mulf %55, %59 : vector<32x128xf32>
    %61 = vector.broadcast %41 : vector<1x128xf32> to vector<32x128xf32>
    %62 = arith.mulf %60, %61 : vector<32x128xf32>
    %63 = vector.broadcast %42 : vector<1x128xf32> to vector<32x128xf32>
    %64 = arith.addf %62, %63 : vector<32x128xf32>
    %65 = arith.addf %33, %64 : vector<32x128xf32>
    %66 = vector.shape_cast %65 : vector<32x128xf32> to vector<2x16x128xf32>
    %c0_27 = arith.constant 0 : index
    %c0_28 = arith.constant 0 : index
    %c0_29 = arith.constant 0 : index
    %67 = vector.load %arg16[%c0_27, %c0_28, %c0_29] : memref<2x16x128xf32, #tpu.memory_space<vmem>>, vector<2x16x128xf32>
    tpu.vector_store %arg16[%c0_27, %c0_28, %c0_29], %66 {strides = array<i32>} : memref<2x16x128xf32, #tpu.memory_space<vmem>>, vector<2x16x128xf32>,
    return
  }
  func.func @transform_0(%arg0: i32) -> (i32, i32, i32) {
    %c0_i32 = arith.constant 0 : i32
    %c0_i32_0 = arith.constant 0 : i32
    %c0_i32_1 = arith.constant 0 : i32
    return %arg0, %c0_i32, %c0_i32_0 : i32, i32, i32
  }
  func.func @transform_1(%arg0: i32) -> (i32, i32) {
    %c0_i32 = arith.constant 0 : i32
    %c0_i32_0 = arith.constant 0 : i32
    %c0_i32_1 = arith.constant 0 : i32
    return %c0_i32, %c0_i32_0 : i32, i32
  }
  func.func @transform_2(%arg0: i32) -> (i32, i32) {
    %c0_i32 = arith.constant 0 : i32
    %c0_i32_0 = arith.constant 0 : i32
    %c0_i32_1 = arith.constant 0 : i32
    return %c0_i32, %c0_i32_0 : i32, i32
  }
  func.func @transform_3(%arg0: i32) -> (i32, i32) {
    %c0_i32 = arith.constant 0 : i32
    %c0_i32_0 = arith.constant 0 : i32
    %c0_i32_1 = arith.constant 0 : i32
    return %c0_i32, %c0_i32_0 : i32, i32
  }
  func.func @transform_4(%arg0: i32) -> (i32, i32) {
    %c0_i32 = arith.constant 0 : i32
    %c0_i32_0 = arith.constant 0 : i32
    %c0_i32_1 = arith.constant 0 : i32
    return %c0_i32, %c0_i32_0 : i32, i32
  }
  func.func @transform_5(%arg0: i32) -> (i32, i32) {
    %c0_i32 = arith.constant 0 : i32
    %c0_i32_0 = arith.constant 0 : i32
    %c0_i32_1 = arith.constant 0 : i32
    return %c0_i32, %c0_i32_0 : i32, i32
  }
  func.func @transform_6(%arg0: i32) -> (i32, i32) {
    %c0_i32 = arith.constant 0 : i32
    %c0_i32_0 = arith.constant 0 : i32
    %c0_i32_1 = arith.constant 0 : i32
    return %c0_i32, %c0_i32_0 : i32, i32
  }
  func.func @transform_7(%arg0: i32) -> (i32, i32) {
    %c0_i32 = arith.constant 0 : i32
    %c0_i32_0 = arith.constant 0 : i32
    %c0_i32_1 = arith.constant 0 : i32
    return %c0_i32, %c0_i32_0 : i32, i32
  }
  func.func @transform_8(%arg0: i32) -> (i32, i32) {
    %c0_i32 = arith.constant 0 : i32
    %c0_i32_0 = arith.constant 0 : i32
    %c0_i32_1 = arith.constant 0 : i32
    return %c0_i32, %c0_i32_0 : i32, i32
  }
  func.func @transform_9(%arg0: i32) -> (i32, i32, i32) {
    %c0_i32 = arith.constant 0 : i32
    %c0_i32_0 = arith.constant 0 : i32
    %c0_i32_1 = arith.constant 0 : i32
    %c0_i32_2 = arith.constant 0 : i32
    return %c0_i32, %c0_i32_0, %c0_i32_1 : i32, i32, i32
  }
  func.func @transform_10(%arg0: i32) -> (i32, i32, i32) {
    %c0_i32 = arith.constant 0 : i32
    %c0_i32_0 = arith.constant 0 : i32
    %c0_i32_1 = arith.constant 0 : i32
    %c0_i32_2 = arith.constant 0 : i32
    return %c0_i32, %c0_i32_0, %c0_i32_1 : i32, i32, i32
  }
  func.func @transform_11(%arg0: i32) -> (i32, i32, i32) {
    %c0_i32 = arith.constant 0 : i32
    %c0_i32_0 = arith.constant 0 : i32
    %c0_i32_1 = arith.constant 0 : i32
    %c0_i32_2 = arith.constant 0 : i32
    return %c0_i32, %c0_i32_0, %c0_i32_1 : i32, i32, i32
  }
  func.func @transform_12(%arg0: i32) -> (i32, i32) {
    %c0_i32 = arith.constant 0 : i32
    %c0_i32_0 = arith.constant 0 : i32
    %c0_i32_1 = arith.constant 0 : i32
    return %c0_i32, %c0_i32_0 : i32, i32
  }
  func.func @transform_13(%arg0: i32) -> (i32, i32) {
    %c0_i32 = arith.constant 0 : i32
    %c0_i32_0 = arith.constant 0 : i32
    %c0_i32_1 = arith.constant 0 : i32
    return %c0_i32, %c0_i32_0 : i32, i32
  }
  func.func @transform_14(%arg0: i32) -> (i32, i32) {
    %c0_i32 = arith.constant 0 : i32
    %c0_i32_0 = arith.constant 0 : i32
    %c0_i32_1 = arith.constant 0 : i32
    return %c0_i32, %c0_i32_0 : i32, i32
  }
  func.func @transform_15(%arg0: i32) -> (i32, i32, i32) {
    %c0_i32 = arith.constant 0 : i32
    %c0_i32_0 = arith.constant 0 : i32
    %c0_i32_1 = arith.constant 0 : i32
    return %arg0, %c0_i32, %c0_i32_0 : i32, i32, i32
  }
}

module attributes {stable_mosaic.version = 11 : i64} {
  func.func @_encoder_block_kernel(%arg0: i32, %arg1: memref<2x16x128xf32, #tpu.memory_space<vmem>>, %arg2: memref<128x128xbf16, #tpu.memory_space<vmem>>, %arg3: memref<1x128xf32, #tpu.memory_space<vmem>>, %arg4: memref<128x256xbf16, #tpu.memory_space<vmem>>, %arg5: memref<1x256xf32, #tpu.memory_space<vmem>>, %arg6: memref<128x128xbf16, #tpu.memory_space<vmem>>, %arg7: memref<1x128xf32, #tpu.memory_space<vmem>>, %arg8: memref<1x128xf32, #tpu.memory_space<vmem>>, %arg9: memref<1x128xf32, #tpu.memory_space<vmem>>, %arg10: memref<2x128x256xbf16, #tpu.memory_space<vmem>>, %arg11: memref<2x1x256xf32, #tpu.memory_space<vmem>>, %arg12: memref<2x256x128xbf16, #tpu.memory_space<vmem>>, %arg13: memref<1x128xf32, #tpu.memory_space<vmem>>, %arg14: memref<1x128xf32, #tpu.memory_space<vmem>>, %arg15: memref<1x128xf32, #tpu.memory_space<vmem>>, %arg16: memref<2x16x128xf32, #tpu.memory_space<vmem>>, %arg17: memref<2x16x128xf32, #tpu.memory_space<vmem>>) attributes {dimension_semantics = [#tpu.dimension_semantics<parallel>], iteration_bounds = array<i64: 2>, scalar_prefetch = 0 : i64, scratch_operands = 1 : i64, tpu.core_type = #tpu.core_type<tc>, window_params = [{transform_indices = @transform_0, window_bounds = array<i64: 2, 16, 128>}, {pipeline_mode = #tpu.pipeline_mode<synchronous>, transform_indices = @transform_1, window_bounds = array<i64: 128, 128>}, {pipeline_mode = #tpu.pipeline_mode<synchronous>, transform_indices = @transform_2, window_bounds = array<i64: 1, 128>}, {pipeline_mode = #tpu.pipeline_mode<synchronous>, transform_indices = @transform_3, window_bounds = array<i64: 128, 256>}, {pipeline_mode = #tpu.pipeline_mode<synchronous>, transform_indices = @transform_4, window_bounds = array<i64: 1, 256>}, {pipeline_mode = #tpu.pipeline_mode<synchronous>, transform_indices = @transform_5, window_bounds = array<i64: 128, 128>}, {pipeline_mode = #tpu.pipeline_mode<synchronous>, transform_indices = @transform_6, window_bounds = array<i64: 1, 128>}, {pipeline_mode = #tpu.pipeline_mode<synchronous>, transform_indices = @transform_7, window_bounds = array<i64: 1, 128>}, {pipeline_mode = #tpu.pipeline_mode<synchronous>, transform_indices = @transform_8, window_bounds = array<i64: 1, 128>}, {pipeline_mode = #tpu.pipeline_mode<synchronous>, transform_indices = @transform_9, window_bounds = array<i64: 2, 128, 256>}, {pipeline_mode = #tpu.pipeline_mode<synchronous>, transform_indices = @transform_10, window_bounds = array<i64: 2, 1, 256>}, {pipeline_mode = #tpu.pipeline_mode<synchronous>, transform_indices = @transform_11, window_bounds = array<i64: 2, 256, 128>}, {pipeline_mode = #tpu.pipeline_mode<synchronous>, transform_indices = @transform_12, window_bounds = array<i64: 1, 128>}, {pipeline_mode = #tpu.pipeline_mode<synchronous>, transform_indices = @transform_13, window_bounds = array<i64: 1, 128>}, {pipeline_mode = #tpu.pipeline_mode<synchronous>, transform_indices = @transform_14, window_bounds = array<i64: 1, 128>}, {transform_indices = @transform_15, window_bounds = array<i64: 2, 16, 128>}]} {
    %c0 = arith.constant 0 : index
    %c0_0 = arith.constant 0 : index
    %c0_1 = arith.constant 0 : index
    %0 = vector.load %arg1[%c0, %c0_0, %c0_1] : memref<2x16x128xf32, #tpu.memory_space<vmem>>, vector<2x16x128xf32>
    %1 = vector.shape_cast %0 : vector<2x16x128xf32> to vector<32x128xf32>
    %2 = arith.truncf %1 : vector<32x128xf32> to vector<32x128xbf16>
    %c0_2 = arith.constant 0 : index
    %c0_3 = arith.constant 0 : index
    %3 = vector.load %arg4[%c0_2, %c0_3] : memref<128x256xbf16, #tpu.memory_space<vmem>>, vector<128x256xbf16>
    %cst = arith.constant dense<0.000000e+00> : vector<32x256xf32>
    %4 = tpu.matmul %2, %3, %cst {dimension_numbers = #tpu.dot_dimension_numbers<[1], [0], [0], [1], [0, 0, 1, 1], [], []>} : vector<32x128xbf16>, vector<128x256xbf16>, vector<32x256xf32> -> vector<32x256xf32>
    %5 = vector.extract_strided_slice %4 {offsets = [0, 0], sizes = [32, 128], strides = [1, 1]} : vector<32x256xf32> to vector<32x128xf32>
    %c0_4 = arith.constant 0 : index
    %c0_5 = arith.constant 0 : index
    %6 = vector.load %arg5[%c0_4, %c0_5] : memref<1x256xf32, #tpu.memory_space<vmem>>, vector<1x128xf32>
    %7 = vector.broadcast %6 : vector<1x128xf32> to vector<32x128xf32>
    %8 = arith.addf %5, %7 : vector<32x128xf32>
    %9 = arith.truncf %8 : vector<32x128xf32> to vector<32x128xbf16>
    %10 = vector.extract_strided_slice %4 {offsets = [0, 128], sizes = [32, 128], strides = [1, 1]} : vector<32x256xf32> to vector<32x128xf32>
    %c0_6 = arith.constant 0 : index
    %c128 = arith.constant 128 : index
    %11 = vector.load %arg5[%c0_6, %c128] : memref<1x256xf32, #tpu.memory_space<vmem>>, vector<1x128xf32>
    %12 = vector.broadcast %11 : vector<1x128xf32> to vector<32x128xf32>
    %13 = arith.addf %10, %12 : vector<32x128xf32>
    %14 = arith.truncf %13 : vector<32x128xf32> to vector<32x128xbf16>
    %15 = vector.extract_strided_slice %9 {offsets = [0, 0], sizes = [32, 32], strides = [1, 1]} : vector<32x128xbf16> to vector<32x32xbf16>
    %16 = vector.shape_cast %15 : vector<32x32xbf16> to vector<2x16x32xbf16>
    %17 = vector.extract_strided_slice %9 {offsets = [0, 32], sizes = [32, 32], strides = [1, 1]} : vector<32x128xbf16> to vector<32x32xbf16>
    %18 = vector.shape_cast %17 : vector<32x32xbf16> to vector<2x16x32xbf16>
    %19 = vector.extract_strided_slice %9 {offsets = [0, 64], sizes = [32, 32], strides = [1, 1]} : vector<32x128xbf16> to vector<32x32xbf16>
    %20 = vector.shape_cast %19 : vector<32x32xbf16> to vector<2x16x32xbf16>
    %21 = vector.extract_strided_slice %9 {offsets = [0, 96], sizes = [32, 32], strides = [1, 1]} : vector<32x128xbf16> to vector<32x32xbf16>
    %22 = vector.shape_cast %21 : vector<32x32xbf16> to vector<2x16x32xbf16>
    %23 = vector.extract_strided_slice %14 {offsets = [0, 0], sizes = [32, 32], strides = [1, 1]} : vector<32x128xbf16> to vector<32x32xbf16>
    %24 = vector.shape_cast %23 : vector<32x32xbf16> to vector<2x16x32xbf16>
    %25 = vector.extract_strided_slice %14 {offsets = [0, 32], sizes = [32, 32], strides = [1, 1]} : vector<32x128xbf16> to vector<32x32xbf16>
    %26 = vector.shape_cast %25 : vector<32x32xbf16> to vector<2x16x32xbf16>
    %27 = vector.extract_strided_slice %14 {offsets = [0, 64], sizes = [32, 32], strides = [1, 1]} : vector<32x128xbf16> to vector<32x32xbf16>
    %28 = vector.shape_cast %27 : vector<32x32xbf16> to vector<2x16x32xbf16>
    %29 = vector.extract_strided_slice %14 {offsets = [0, 96], sizes = [32, 32], strides = [1, 1]} : vector<32x128xbf16> to vector<32x32xbf16>
    %30 = vector.shape_cast %29 : vector<32x32xbf16> to vector<2x16x32xbf16>
    %c0_i32 = arith.constant 0 : i32
    %c2_i32 = arith.constant 2 : i32
    %31 = arith.addi %c0_i32, %c2_i32 : i32
    %c1_i32 = arith.constant 1 : i32
    scf.for %arg18 = %c0_i32 to %31 step %c1_i32  : i32 {
      %c1_i32_30 = arith.constant 1 : i32
      %68 = arith.muli %arg18, %c1_i32_30 : i32
      %c0_i32_31 = arith.constant 0 : i32
      %69 = arith.addi %c0_i32_31, %68 : i32
      %c8_i32 = arith.constant 8 : i32
      %70 = arith.muli %69, %c8_i32 : i32
      %71 = tpu.assume_multiple %70, 8 : i32
      %c0_32 = arith.constant 0 : index
      %72 = arith.index_cast %71 : i32 to index
      %c0_33 = arith.constant 0 : index
      %73 = vector.load %arg1[%c0_32, %72, %c0_33] : memref<2x16x128xf32, #tpu.memory_space<vmem>>, vector<2x8x128xf32>
      %74 = arith.truncf %73 : vector<2x8x128xf32> to vector<2x8x128xbf16>
      %75 = vector.shape_cast %74 : vector<2x8x128xbf16> to vector<16x128xbf16>
      %c0_34 = arith.constant 0 : index
      %c0_35 = arith.constant 0 : index
      %76 = vector.load %arg2[%c0_34, %c0_35] : memref<128x128xbf16, #tpu.memory_space<vmem>>, vector<128x128xbf16>
      %cst_36 = arith.constant dense<0.000000e+00> : vector<16x128xf32>
      %77 = tpu.matmul %75, %76, %cst_36 {dimension_numbers = #tpu.dot_dimension_numbers<[1], [0], [0], [1], [0, 0, 1, 1], [], []>} : vector<16x128xbf16>, vector<128x128xbf16>, vector<16x128xf32> -> vector<16x128xf32>
      %c0_37 = arith.constant 0 : index
      %c0_38 = arith.constant 0 : index
      %78 = vector.load %arg3[%c0_37, %c0_38] : memref<1x128xf32, #tpu.memory_space<vmem>>, vector<1x128xf32>
      %79 = vector.broadcast %78 : vector<1x128xf32> to vector<16x128xf32>
      %80 = arith.addf %77, %79 : vector<16x128xf32>
      %81 = arith.truncf %80 : vector<16x128xf32> to vector<16x128xbf16>
      %82 = vector.shape_cast %81 : vector<16x128xbf16> to vector<2x8x128xbf16>
      %83 = vector.extract_strided_slice %82 {offsets = [0, 0, 0], sizes = [2, 8, 32], strides = [1, 1, 1]} : vector<2x8x128xbf16> to vector<2x8x32xbf16>
      "tpu.trace_start"() <{level = 10 : i32, message = "bqd,bkd->bqk"}> : () -> ()
      %cst_39 = arith.constant dense<0.000000e+00> : vector<2x8x16xf32>
      %84 = tpu.matmul %83, %16, %cst_39 {dimension_numbers = #tpu.dot_dimension_numbers<[2], [2], [1], [1], [0, 0, 0, 1, 1, 1], [0], [0]>} : vector<2x8x32xbf16>, vector<2x16x32xbf16>, vector<2x8x16xf32> -> vector<2x8x16xf32>
      "tpu.trace_stop"() : () -> ()
      %cst_40 = arith.constant dense<0xFF800000> : vector<2x8xf32>
      %85 = vector.multi_reduction <maximumf>, %84, %cst_40 [2] : vector<2x8x16xf32> to vector<2x8xf32>
      %86 = vector.shape_cast %85 : vector<2x8xf32> to vector<2x8x1xf32>
      %87 = vector.broadcast %86 : vector<2x8x1xf32> to vector<2x8x16xf32>
      %88 = arith.subf %84, %87 : vector<2x8x16xf32>
      %89 = math.exp %88 : vector<2x8x16xf32>
      %cst_41 = arith.constant dense<0.000000e+00> : vector<2x8xf32>
      %90 = vector.multi_reduction <add>, %89, %cst_41 [2] : vector<2x8x16xf32> to vector<2x8xf32>
      %91 = vector.shape_cast %90 : vector<2x8xf32> to vector<2x8x1xf32>
      %92 = tpu.reciprocal %91 {approx = true} : vector<2x8x1xf32> -> vector<2x8x1xf32>
      %93 = vector.broadcast %92 : vector<2x8x1xf32> to vector<2x8x16xf32>
      %94 = arith.mulf %89, %93 : vector<2x8x16xf32>
      %95 = arith.truncf %94 : vector<2x8x16xf32> to vector<2x8x16xbf16>
      "tpu.trace_start"() <{level = 10 : i32, message = "bqk,bkd->bqd"}> : () -> ()
      %cst_42 = arith.constant dense<0.000000e+00> : vector<2x8x32xf32>
      %96 = tpu.matmul %95, %24, %cst_42 {dimension_numbers = #tpu.dot_dimension_numbers<[2], [1], [1], [2], [0, 0, 0, 1, 1, 2], [0], [0]>} : vector<2x8x16xbf16>, vector<2x16x32xbf16>, vector<2x8x32xf32> -> vector<2x8x32xf32>
      "tpu.trace_stop"() : () -> ()
      %97 = arith.truncf %96 : vector<2x8x32xf32> to vector<2x8x32xbf16>
      %98 = vector.extract_strided_slice %82 {offsets = [0, 0, 32], sizes = [2, 8, 32], strides = [1, 1, 1]} : vector<2x8x128xbf16> to vector<2x8x32xbf16>
      "tpu.trace_start"() <{level = 10 : i32, message = "bqd,bkd->bqk"}> : () -> ()
      %cst_43 = arith.constant dense<0.000000e+00> : vector<2x8x16xf32>
      %99 = tpu.matmul %98, %18, %cst_43 {dimension_numbers = #tpu.dot_dimension_numbers<[2], [2], [1], [1], [0, 0, 0, 1, 1, 1], [0], [0]>} : vector<2x8x32xbf16>, vector<2x16x32xbf16>, vector<2x8x16xf32> -> vector<2x8x16xf32>
      "tpu.trace_stop"() : () -> ()
      %cst_44 = arith.constant dense<0xFF800000> : vector<2x8xf32>
      %100 = vector.multi_reduction <maximumf>, %99, %cst_44 [2] : vector<2x8x16xf32> to vector<2x8xf32>
      %101 = vector.shape_cast %100 : vector<2x8xf32> to vector<2x8x1xf32>
      %102 = vector.broadcast %101 : vector<2x8x1xf32> to vector<2x8x16xf32>
      %103 = arith.subf %99, %102 : vector<2x8x16xf32>
      %104 = math.exp %103 : vector<2x8x16xf32>
      %cst_45 = arith.constant dense<0.000000e+00> : vector<2x8xf32>
      %105 = vector.multi_reduction <add>, %104, %cst_45 [2] : vector<2x8x16xf32> to vector<2x8xf32>
      %106 = vector.shape_cast %105 : vector<2x8xf32> to vector<2x8x1xf32>
      %107 = tpu.reciprocal %106 {approx = true} : vector<2x8x1xf32> -> vector<2x8x1xf32>
      %108 = vector.broadcast %107 : vector<2x8x1xf32> to vector<2x8x16xf32>
      %109 = arith.mulf %104, %108 : vector<2x8x16xf32>
      %110 = arith.truncf %109 : vector<2x8x16xf32> to vector<2x8x16xbf16>
      "tpu.trace_start"() <{level = 10 : i32, message = "bqk,bkd->bqd"}> : () -> ()
      %cst_46 = arith.constant dense<0.000000e+00> : vector<2x8x32xf32>
      %111 = tpu.matmul %110, %26, %cst_46 {dimension_numbers = #tpu.dot_dimension_numbers<[2], [1], [1], [2], [0, 0, 0, 1, 1, 2], [0], [0]>} : vector<2x8x16xbf16>, vector<2x16x32xbf16>, vector<2x8x32xf32> -> vector<2x8x32xf32>
      "tpu.trace_stop"() : () -> ()
      %112 = arith.truncf %111 : vector<2x8x32xf32> to vector<2x8x32xbf16>
      %113 = vector.extract_strided_slice %82 {offsets = [0, 0, 64], sizes = [2, 8, 32], strides = [1, 1, 1]} : vector<2x8x128xbf16> to vector<2x8x32xbf16>
      "tpu.trace_start"() <{level = 10 : i32, message = "bqd,bkd->bqk"}> : () -> ()
      %cst_47 = arith.constant dense<0.000000e+00> : vector<2x8x16xf32>
      %114 = tpu.matmul %113, %20, %cst_47 {dimension_numbers = #tpu.dot_dimension_numbers<[2], [2], [1], [1], [0, 0, 0, 1, 1, 1], [0], [0]>} : vector<2x8x32xbf16>, vector<2x16x32xbf16>, vector<2x8x16xf32> -> vector<2x8x16xf32>
      "tpu.trace_stop"() : () -> ()
      %cst_48 = arith.constant dense<0xFF800000> : vector<2x8xf32>
      %115 = vector.multi_reduction <maximumf>, %114, %cst_48 [2] : vector<2x8x16xf32> to vector<2x8xf32>
      %116 = vector.shape_cast %115 : vector<2x8xf32> to vector<2x8x1xf32>
      %117 = vector.broadcast %116 : vector<2x8x1xf32> to vector<2x8x16xf32>
      %118 = arith.subf %114, %117 : vector<2x8x16xf32>
      %119 = math.exp %118 : vector<2x8x16xf32>
      %cst_49 = arith.constant dense<0.000000e+00> : vector<2x8xf32>
      %120 = vector.multi_reduction <add>, %119, %cst_49 [2] : vector<2x8x16xf32> to vector<2x8xf32>
      %121 = vector.shape_cast %120 : vector<2x8xf32> to vector<2x8x1xf32>
      %122 = tpu.reciprocal %121 {approx = true} : vector<2x8x1xf32> -> vector<2x8x1xf32>
      %123 = vector.broadcast %122 : vector<2x8x1xf32> to vector<2x8x16xf32>
      %124 = arith.mulf %119, %123 : vector<2x8x16xf32>
      %125 = arith.truncf %124 : vector<2x8x16xf32> to vector<2x8x16xbf16>
      "tpu.trace_start"() <{level = 10 : i32, message = "bqk,bkd->bqd"}> : () -> ()
      %cst_50 = arith.constant dense<0.000000e+00> : vector<2x8x32xf32>
      %126 = tpu.matmul %125, %28, %cst_50 {dimension_numbers = #tpu.dot_dimension_numbers<[2], [1], [1], [2], [0, 0, 0, 1, 1, 2], [0], [0]>} : vector<2x8x16xbf16>, vector<2x16x32xbf16>, vector<2x8x32xf32> -> vector<2x8x32xf32>
      "tpu.trace_stop"() : () -> ()
      %127 = arith.truncf %126 : vector<2x8x32xf32> to vector<2x8x32xbf16>
      %128 = vector.extract_strided_slice %82 {offsets = [0, 0, 96], sizes = [2, 8, 32], strides = [1, 1, 1]} : vector<2x8x128xbf16> to vector<2x8x32xbf16>
      "tpu.trace_start"() <{level = 10 : i32, message = "bqd,bkd->bqk"}> : () -> ()
      %cst_51 = arith.constant dense<0.000000e+00> : vector<2x8x16xf32>
      %129 = tpu.matmul %128, %22, %cst_51 {dimension_numbers = #tpu.dot_dimension_numbers<[2], [2], [1], [1], [0, 0, 0, 1, 1, 1], [0], [0]>} : vector<2x8x32xbf16>, vector<2x16x32xbf16>, vector<2x8x16xf32> -> vector<2x8x16xf32>
      "tpu.trace_stop"() : () -> ()
      %cst_52 = arith.constant dense<0xFF800000> : vector<2x8xf32>
      %130 = vector.multi_reduction <maximumf>, %129, %cst_52 [2] : vector<2x8x16xf32> to vector<2x8xf32>
      %131 = vector.shape_cast %130 : vector<2x8xf32> to vector<2x8x1xf32>
      %132 = vector.broadcast %131 : vector<2x8x1xf32> to vector<2x8x16xf32>
      %133 = arith.subf %129, %132 : vector<2x8x16xf32>
      %134 = math.exp %133 : vector<2x8x16xf32>
      %cst_53 = arith.constant dense<0.000000e+00> : vector<2x8xf32>
      %135 = vector.multi_reduction <add>, %134, %cst_53 [2] : vector<2x8x16xf32> to vector<2x8xf32>
      %136 = vector.shape_cast %135 : vector<2x8xf32> to vector<2x8x1xf32>
      %137 = tpu.reciprocal %136 {approx = true} : vector<2x8x1xf32> -> vector<2x8x1xf32>
      %138 = vector.broadcast %137 : vector<2x8x1xf32> to vector<2x8x16xf32>
      %139 = arith.mulf %134, %138 : vector<2x8x16xf32>
      %140 = arith.truncf %139 : vector<2x8x16xf32> to vector<2x8x16xbf16>
      "tpu.trace_start"() <{level = 10 : i32, message = "bqk,bkd->bqd"}> : () -> ()
      %cst_54 = arith.constant dense<0.000000e+00> : vector<2x8x32xf32>
      %141 = tpu.matmul %140, %30, %cst_54 {dimension_numbers = #tpu.dot_dimension_numbers<[2], [1], [1], [2], [0, 0, 0, 1, 1, 2], [0], [0]>} : vector<2x8x16xbf16>, vector<2x16x32xbf16>, vector<2x8x32xf32> -> vector<2x8x32xf32>
      "tpu.trace_stop"() : () -> ()
      %142 = arith.truncf %141 : vector<2x8x32xf32> to vector<2x8x32xbf16>
      %143 = tpu.concatenate %97, %112, %127, %142 in 2 : vector<2x8x32xbf16>, vector<2x8x32xbf16>, vector<2x8x32xbf16>, vector<2x8x32xbf16> -> vector<2x8x128xbf16>
      %144 = vector.shape_cast %143 : vector<2x8x128xbf16> to vector<16x128xbf16>
      %c0_55 = arith.constant 0 : index
      %c0_56 = arith.constant 0 : index
      %145 = vector.load %arg6[%c0_55, %c0_56] : memref<128x128xbf16, #tpu.memory_space<vmem>>, vector<128x128xbf16>
      %cst_57 = arith.constant dense<0.000000e+00> : vector<16x128xf32>
      %146 = tpu.matmul %144, %145, %cst_57 {dimension_numbers = #tpu.dot_dimension_numbers<[1], [0], [0], [1], [0, 0, 1, 1], [], []>} : vector<16x128xbf16>, vector<128x128xbf16>, vector<16x128xf32> -> vector<16x128xf32>
      %c0_58 = arith.constant 0 : index
      %c0_59 = arith.constant 0 : index
      %147 = vector.load %arg7[%c0_58, %c0_59] : memref<1x128xf32, #tpu.memory_space<vmem>>, vector<1x128xf32>
      %148 = vector.broadcast %147 : vector<1x128xf32> to vector<16x128xf32>
      %149 = arith.addf %146, %148 : vector<16x128xf32>
      %c0_60 = arith.constant 0 : index
      %c0_61 = arith.constant 0 : index
      %150 = vector.load %arg8[%c0_60, %c0_61] : memref<1x128xf32, #tpu.memory_space<vmem>>, vector<1x128xf32>
      %c0_62 = arith.constant 0 : index
      %c0_63 = arith.constant 0 : index
      %151 = vector.load %arg9[%c0_62, %c0_63] : memref<1x128xf32, #tpu.memory_space<vmem>>, vector<1x128xf32>
      %cst_64 = arith.constant dense<0.000000e+00> : vector<16xf32>
      %152 = vector.multi_reduction <add>, %149, %cst_64 [1] : vector<16x128xf32> to vector<16xf32>
      %153 = vector.shape_cast %152 : vector<16xf32> to vector<16x1xf32>
      %cst_65 = arith.constant 1.280000e+02 : f32
      %154 = vector.broadcast %cst_65 : f32 to vector<16x1xf32>
      %155 = arith.divf %153, %154 : vector<16x1xf32>
      %156 = vector.broadcast %155 : vector<16x1xf32> to vector<16x128xf32>
      %157 = arith.subf %149, %156 : vector<16x128xf32>
      %158 = arith.mulf %157, %157 : vector<16x128xf32>
      %cst_66 = arith.constant dense<0.000000e+00> : vector<16xf32>
      %159 = vector.multi_reduction <add>, %158, %cst_66 [1] : vector<16x128xf32> to vector<16xf32>
      %160 = vector.shape_cast %159 : vector<16xf32> to vector<16x1xf32>
      %cst_67 = arith.constant 1.280000e+02 : f32
      %161 = vector.broadcast %cst_67 : f32 to vector<16x1xf32>
      %162 = arith.divf %160, %161 : vector<16x1xf32>
      %163 = vector.broadcast %155 : vector<16x1xf32> to vector<16x128xf32>
      %164 = arith.subf %149, %163 : vector<16x128xf32>
      %cst_68 = arith.constant 9.99999974E-6 : f32
      %165 = vector.broadcast %cst_68 : f32 to vector<16x1xf32>
      %166 = arith.addf %162, %165 : vector<16x1xf32>
      %167 = math.rsqrt %166 : vector<16x1xf32>
      %168 = vector.broadcast %167 : vector<16x1xf32> to vector<16x128xf32>
      %169 = arith.mulf %164, %168 : vector<16x128xf32>
      %170 = vector.broadcast %150 : vector<1x128xf32> to vector<16x128xf32>
      %171 = arith.mulf %169, %170 : vector<16x128xf32>
      %172 = vector.broadcast %151 : vector<1x128xf32> to vector<16x128xf32>
      %173 = arith.addf %171, %172 : vector<16x128xf32>
      %174 = vector.shape_cast %173 : vector<16x128xf32> to vector<2x8x128xf32>
      %175 = arith.addf %73, %174 : vector<2x8x128xf32>
      %c0_69 = arith.constant 0 : index
      %176 = arith.index_cast %71 : i32 to index
      %c0_70 = arith.constant 0 : index
      %177 = vector.load %arg17[%c0_69, %176, %c0_70] : memref<2x16x128xf32, #tpu.memory_space<vmem>>, vector<2x8x128xf32>
      tpu.vector_store %arg17[%c0_69, %176, %c0_70], %175 {strides = array<i32>} : memref<2x16x128xf32, #tpu.memory_space<vmem>>, vector<2x8x128xf32>,
    }
    %c2_i32_7 = arith.constant 2 : i32
    %c0_8 = arith.constant 0 : index
    %c0_9 = arith.constant 0 : index
    %c0_10 = arith.constant 0 : index
    %32 = vector.load %arg17[%c0_8, %c0_9, %c0_10] : memref<2x16x128xf32, #tpu.memory_space<vmem>>, vector<2x16x128xf32>
    %33 = vector.shape_cast %32 : vector<2x16x128xf32> to vector<32x128xf32>
    %34 = arith.truncf %33 : vector<32x128xf32> to vector<32x128xbf16>
    %cst_11 = arith.constant 0.000000e+00 : f32
    %35 = vector.broadcast %cst_11 : f32 to vector<32x128xf32>
    %c0_i32_12 = arith.constant 0 : i32
    %c2_i32_13 = arith.constant 2 : i32
    %36 = arith.addi %c0_i32_12, %c2_i32_13 : i32
    %c1_i32_14 = arith.constant 1 : i32
    %37 = scf.for %arg18 = %c0_i32_12 to %36 step %c1_i32_14 iter_args(%arg19 = %35) -> (vector<32x128xf32>)  : i32 {
      %68 = arith.index_cast %arg18 : i32 to index
      %c0_30 = arith.constant 0 : index
      %c0_31 = arith.constant 0 : index
      %69 = vector.load %arg10[%68, %c0_30, %c0_31] : memref<2x128x256xbf16, #tpu.memory_space<vmem>>, vector<1x128x256xbf16>
      %70 = vector.shape_cast %69 : vector<1x128x256xbf16> to vector<128x256xbf16>
      %cst_32 = arith.constant dense<0.000000e+00> : vector<32x256xf32>
      %71 = tpu.matmul %34, %70, %cst_32 {dimension_numbers = #tpu.dot_dimension_numbers<[1], [0], [0], [1], [0, 0, 1, 1], [], []>} : vector<32x128xbf16>, vector<128x256xbf16>, vector<32x256xf32> -> vector<32x256xf32>
      %72 = arith.index_cast %arg18 : i32 to index
      %c0_33 = arith.constant 0 : index
      %c0_34 = arith.constant 0 : index
      %73 = vector.load %arg11[%72, %c0_33, %c0_34] : memref<2x1x256xf32, #tpu.memory_space<vmem>>, vector<1x1x256xf32>
      %74 = vector.shape_cast %73 : vector<1x1x256xf32> to vector<1x256xf32>
      %75 = vector.broadcast %74 : vector<1x256xf32> to vector<32x256xf32>
      %76 = arith.addf %71, %75 : vector<32x256xf32>
      %cst_35 = arith.constant 0.000000e+00 : f32
      %77 = vector.broadcast %cst_35 : f32 to vector<32x256xf32>
      %78 = arith.maximumf %76, %77 : vector<32x256xf32>
      %79 = arith.truncf %78 : vector<32x256xf32> to vector<32x256xbf16>
      %80 = arith.index_cast %arg18 : i32 to index
      %c0_36 = arith.constant 0 : index
      %c0_37 = arith.constant 0 : index
      %81 = vector.load %arg12[%80, %c0_36, %c0_37] : memref<2x256x128xbf16, #tpu.memory_space<vmem>>, vector<1x256x128xbf16>
      %82 = vector.shape_cast %81 : vector<1x256x128xbf16> to vector<256x128xbf16>
      %cst_38 = arith.constant dense<0.000000e+00> : vector<32x128xf32>
      %83 = tpu.matmul %79, %82, %cst_38 {dimension_numbers = #tpu.dot_dimension_numbers<[1], [0], [0], [1], [0, 0, 1, 1], [], []>} : vector<32x256xbf16>, vector<256x128xbf16>, vector<32x128xf32> -> vector<32x128xf32>
      %84 = arith.addf %arg19, %83 : vector<32x128xf32>
      scf.yield %84 : vector<32x128xf32>
    }
    %c2_i32_15 = arith.constant 2 : i32
    %c0_16 = arith.constant 0 : index
    %c0_17 = arith.constant 0 : index
    %38 = vector.load %arg13[%c0_16, %c0_17] : memref<1x128xf32, #tpu.memory_space<vmem>>, vector<1x128xf32>
    %39 = vector.broadcast %38 : vector<1x128xf32> to vector<32x128xf32>
    %40 = arith.addf %37, %39 : vector<32x128xf32>
    %c0_18 = arith.constant 0 : index
    %c0_19 = arith.constant 0 : index
    %41 = vector.load %arg14[%c0_18, %c0_19] : memref<1x128xf32, #tpu.memory_space<vmem>>, vector<1x128xf32>
    %c0_20 = arith.constant 0 : index
    %c0_21 = arith.constant 0 : index
    %42 = vector.load %arg15[%c0_20, %c0_21] : memref<1x128xf32, #tpu.memory_space<vmem>>, vector<1x128xf32>
    %cst_22 = arith.constant dense<0.000000e+00> : vector<32xf32>
    %43 = vector.multi_reduction <add>, %40, %cst_22 [1] : vector<32x128xf32> to vector<32xf32>
    %44 = vector.shape_cast %43 : vector<32xf32> to vector<32x1xf32>
    %cst_23 = arith.constant 1.280000e+02 : f32
    %45 = vector.broadcast %cst_23 : f32 to vector<32x1xf32>
    %46 = arith.divf %44, %45 : vector<32x1xf32>
    %47 = vector.broadcast %46 : vector<32x1xf32> to vector<32x128xf32>
    %48 = arith.subf %40, %47 : vector<32x128xf32>
    %49 = arith.mulf %48, %48 : vector<32x128xf32>
    %cst_24 = arith.constant dense<0.000000e+00> : vector<32xf32>
    %50 = vector.multi_reduction <add>, %49, %cst_24 [1] : vector<32x128xf32> to vector<32xf32>
    %51 = vector.shape_cast %50 : vector<32xf32> to vector<32x1xf32>
    %cst_25 = arith.constant 1.280000e+02 : f32
    %52 = vector.broadcast %cst_25 : f32 to vector<32x1xf32>
    %53 = arith.divf %51, %52 : vector<32x1xf32>
    %54 = vector.broadcast %46 : vector<32x1xf32> to vector<32x128xf32>
    %55 = arith.subf %40, %54 : vector<32x128xf32>
    %cst_26 = arith.constant 9.99999974E-6 : f32
    %56 = vector.broadcast %cst_26 : f32 to vector<32x1xf32>
    %57 = arith.addf %53, %56 : vector<32x1xf32>
    %58 = math.rsqrt %57 : vector<32x1xf32>
    %59 = vector.broadcast %58 : vector<32x1xf32> to vector<32x128xf32>
    %60 = arith.mulf %55, %59 : vector<32x128xf32>
    %61 = vector.broadcast %41 : vector<1x128xf32> to vector<32x128xf32>
    %62 = arith.mulf %60, %61 : vector<32x128xf32>
    %63 = vector.broadcast %42 : vector<1x128xf32> to vector<32x128xf32>
    %64 = arith.addf %62, %63 : vector<32x128xf32>
    %65 = arith.addf %33, %64 : vector<32x128xf32>
    %66 = vector.shape_cast %65 : vector<32x128xf32> to vector<2x16x128xf32>
    %c0_27 = arith.constant 0 : index
    %c0_28 = arith.constant 0 : index
    %c0_29 = arith.constant 0 : index
    %67 = vector.load %arg16[%c0_27, %c0_28, %c0_29] : memref<2x16x128xf32, #tpu.memory_space<vmem>>, vector<2x16x128xf32>
    tpu.vector_store %arg16[%c0_27, %c0_28, %c0_29], %66 {strides = array<i32>} : memref<2x16x128xf32, #tpu.memory_space<vmem>>, vector<2x16x128xf32>,
    return
  }
  func.func @transform_0(%arg0: i32) -> (i32, i32, i32) {
    %c0_i32 = arith.constant 0 : i32
    %c0_i32_0 = arith.constant 0 : i32
    %c0_i32_1 = arith.constant 0 : i32
    return %arg0, %c0_i32, %c0_i32_0 : i32, i32, i32
  }
  func.func @transform_1(%arg0: i32) -> (i32, i32) {
    %c0_i32 = arith.constant 0 : i32
    %c0_i32_0 = arith.constant 0 : i32
    %c0_i32_1 = arith.constant 0 : i32
    return %c0_i32, %c0_i32_0 : i32, i32
  }
  func.func @transform_2(%arg0: i32) -> (i32, i32) {
    %c0_i32 = arith.constant 0 : i32
    %c0_i32_0 = arith.constant 0 : i32
    %c0_i32_1 = arith.constant 0 : i32
    return %c0_i32, %c0_i32_0 : i32, i32
  }
  func.func @transform_3(%arg0: i32) -> (i32, i32) {
    %c0_i32 = arith.constant 0 : i32
    %c0_i32_0 = arith.constant 0 : i32
    %c0_i32_1 = arith.constant 0 : i32
    return %c0_i32, %c0_i32_0 : i32, i32
  }
  func.func @transform_4(%arg0: i32) -> (i32, i32) {
    %c0_i32 = arith.constant 0 : i32
    %c0_i32_0 = arith.constant 0 : i32
    %c0_i32_1 = arith.constant 0 : i32
    return %c0_i32, %c0_i32_0 : i32, i32
  }
  func.func @transform_5(%arg0: i32) -> (i32, i32) {
    %c0_i32 = arith.constant 0 : i32
    %c0_i32_0 = arith.constant 0 : i32
    %c0_i32_1 = arith.constant 0 : i32
    return %c0_i32, %c0_i32_0 : i32, i32
  }
  func.func @transform_6(%arg0: i32) -> (i32, i32) {
    %c0_i32 = arith.constant 0 : i32
    %c0_i32_0 = arith.constant 0 : i32
    %c0_i32_1 = arith.constant 0 : i32
    return %c0_i32, %c0_i32_0 : i32, i32
  }
  func.func @transform_7(%arg0: i32) -> (i32, i32) {
    %c0_i32 = arith.constant 0 : i32
    %c0_i32_0 = arith.constant 0 : i32
    %c0_i32_1 = arith.constant 0 : i32
    return %c0_i32, %c0_i32_0 : i32, i32
  }
  func.func @transform_8(%arg0: i32) -> (i32, i32) {
    %c0_i32 = arith.constant 0 : i32
    %c0_i32_0 = arith.constant 0 : i32
    %c0_i32_1 = arith.constant 0 : i32
    return %c0_i32, %c0_i32_0 : i32, i32
  }
  func.func @transform_9(%arg0: i32) -> (i32, i32, i32) {
    %c0_i32 = arith.constant 0 : i32
    %c0_i32_0 = arith.constant 0 : i32
    %c0_i32_1 = arith.constant 0 : i32
    %c0_i32_2 = arith.constant 0 : i32
    return %c0_i32, %c0_i32_0, %c0_i32_1 : i32, i32, i32
  }
  func.func @transform_10(%arg0: i32) -> (i32, i32, i32) {
    %c0_i32 = arith.constant 0 : i32
    %c0_i32_0 = arith.constant 0 : i32
    %c0_i32_1 = arith.constant 0 : i32
    %c0_i32_2 = arith.constant 0 : i32
    return %c0_i32, %c0_i32_0, %c0_i32_1 : i32, i32, i32
  }
  func.func @transform_11(%arg0: i32) -> (i32, i32, i32) {
    %c0_i32 = arith.constant 0 : i32
    %c0_i32_0 = arith.constant 0 : i32
    %c0_i32_1 = arith.constant 0 : i32
    %c0_i32_2 = arith.constant 0 : i32
    return %c0_i32, %c0_i32_0, %c0_i32_1 : i32, i32, i32
  }
  func.func @transform_12(%arg0: i32) -> (i32, i32) {
    %c0_i32 = arith.constant 0 : i32
    %c0_i32_0 = arith.constant 0 : i32
    %c0_i32_1 = arith.constant 0 : i32
    return %c0_i32, %c0_i32_0 : i32, i32
  }
  func.func @transform_13(%arg0: i32) -> (i32, i32) {
    %c0_i32 = arith.constant 0 : i32
    %c0_i32_0 = arith.constant 0 : i32
    %c0_i32_1 = arith.constant 0 : i32
    return %c0_i32, %c0_i32_0 : i32, i32
  }
  func.func @transform_14(%arg0: i32) -> (i32, i32) {
    %c0_i32 = arith.constant 0 : i32
    %c0_i32_0 = arith.constant 0 : i32
    %c0_i32_1 = arith.constant 0 : i32
    return %c0_i32, %c0_i32_0 : i32, i32
  }
  func.func @transform_15(%arg0: i32) -> (i32, i32, i32) {
    %c0_i32 = arith.constant 0 : i32
    %c0_i32_0 = arith.constant 0 : i32
    %c0_i32_1 = arith.constant 0 : i32
    return %arg0, %c0_i32, %c0_i32_0 : i32, i32, i32
  }
}

</mosaic_0001>

<bundles_post_ra>
// kernel: tpu_custom_call.1
= control target key start
LH: loop header
LB: loop body
LE: loop exit
PB: predicated region body
PF: predicated region fallthrough
CT: control target
= control target key end

     0   :  { %s5063_s0 = inlined_call_operand.hbm [shape: f32[4,16,128], index: 0, kind: input, shape index: {}]   ;;  %s5064_s1 = inlined_call_operand.hbm [shape: bf16[128,128], index: 1, kind: input, shape index: {}]   ;;  %s5065_s2 = inlined_call_operand.hbm [shape: f32[1,128], index: 2, kind: input, shape index: {}]   ;;  %s5066_s3 = inlined_call_operand.hbm [shape: bf16[128,256], index: 3, kind: input, shape index: {}]   ;;  %s5067_s4 = inlined_call_operand.hbm [shape: f32[1,256], index: 4, kind: input, shape index: {}]   ;;  %s5068_s5 = inlined_call_operand.hbm [shape: bf16[128,128], index: 5, kind: input, shape index: {}]   ;;  %s5069_s6 = inlined_call_operand.hbm [shape: f32[1,128], index: 6, kind: input, shape index: {}]   ;;  %s5070_s7 = inlined_call_operand.hbm [shape: f32[1,128], index: 7, kind: input, shape index: {}]   ;;  %s5071_s8 = inlined_call_operand.hbm [shape: f32[1,128], index: 8, kind: input, shape index: {}]   ;;  %s5072_s9 = inlined_call_operand.hbm [shape: bf16[2,128,256], index: 9, kind: input, shape index: {}]   ;;  %s5073_s10 = inlined_call_operand.hbm [shape: f32[2,1,256], index: 10, kind: input, shape index: {}]   ;;  %s5074_s11 = inlined_call_operand.hbm [shape: bf16[2,256,128], index: 11, kind: input, shape index: {}]   ;;  %s5075_s12 = inlined_call_operand.hbm [shape: f32[1,128], index: 12, kind: input, shape index: {}]   ;;  %s5076_s13 = inlined_call_operand.hbm [shape: f32[1,128], index: 13, kind: input, shape index: {}]   ;;  %s5077_s14 = inlined_call_operand.hbm [shape: f32[1,128], index: 14, kind: input, shape index: {}]   ;;  %s5078_s15 = inlined_call_operand.hbm [shape: f32[4,16,128], index: 15, kind: output, shape index: {}]  }
   0x1   :  { %5097 = sst [smem:[#allocation42_spill]] %s5063_s0 }
   0x2   :  { %5098 = sst [smem:[#allocation43_spill]] %s5064_s1 }
   0x3   :  { %5099 = sst [smem:[#allocation44_spill]] %s5065_s2 }
   0x4   :  { %5100 = sst [smem:[#allocation45_spill]] %s5066_s3 }
   0x5   :  { %5101 = sst [smem:[#allocation46_spill]] %s5078_s15 }
   0x6   :  { %20 = vsyncpa [#allocation4], 0 }
   0x7   :  { %22 = vsyncpa [#allocation4 + $0x1], 0 }
   0x8   :  { %23 = vsyncpa [#allocation7], 0 }
   0x9   :  { %24 = vsyncpa [#allocation10], 0 }
   0xa   :  { %25 = vsyncpa [#allocation13], 0 }
   0xb   :  { %26 = vsyncpa [#allocation16], 0 }
   0xc   :  { %27 = vsyncpa [#allocation19], 0 }
   0xd   :  { %28 = vsyncpa [#allocation22], 0 }
   0xe   :  { %29 = vsyncpa [#allocation25], 0 }
   0xf   :  { %30 = vsyncpa [#allocation5], 0 }
  0x10   :  { %32 = vsyncpa [#allocation5 + $0x1], 0  ;;  %s4231_s18 = smov 0   ;;  %s4233_s19 = smov 0  }
  0x11   :  { %s4235_s20 = smov 0   ;;  %s4237_s21 = smov 0  }
  0x12 LB: > { %5102 = sst [smem:[#allocation37_spill]] %s4082_s18  ;;  %s4120_s22 = smov [#allocation6]   ;;  %s4094_s21 = sphi %s4237_s21, %s5159_s21   ;;  %s4090_s20 = sphi %s4235_s20, %s5158_s20   ;;  %s4086_s19 = sphi %s4233_s19, %s5157_s19   ;;  %s4082_s18 = sphi %s4231_s18, %s5156_s18  }
  0x13   : > { %5103 = sst [smem:[#allocation38_spill]] %s4086_s19  ;;  %s401_s23 = sshll.u32 %s4120_s22, 4  ;;  %s4257_s23 = int_to_ptr.vmem [resolvable:$true] %s401_s23 }
  0x14   : > { %5104 = sst [smem:[#allocation39_spill]] %s4090_s20  ;;  %s4252_s24 = sadd.s32 4294967295, %s4094_s21  }
  0x15   : > { %5105 = sst [smem:[#allocation40_spill]] %s4252_s24  ;;  %p2800_p0 = scmp.ge.s32.totalorder %s4094_s21, 1 }
  0x16   : > { %p5089_p1 = scmp.eq.s32.totalorder %s4252_s24, 0  ;;  %p389_p2 = scmp.lt.s32.totalorder %s4094_s21, 3 }
  0x17   : > { %s4121_s26 = smov [#allocation9]   ;;  %s4122_s29 = smov [#allocation12]  }
  0x18   : > { %p4259_p3 = pnand %p2800_p0, %p389_p2  ;;  %s425_s27 = sshll.u32 %s4121_s26, 4  ;;  %s4272_s27 = int_to_ptr.vmem [resolvable:$true] %s425_s27 }
  0x19   : > { %s4274_s30 = sshll.u32 %s4122_s29, 4  ;;  %s5109_s1 = sld [smem:[#allocation43_spill]]  ;;  %s450_s30 = int_to_ptr.vmem [resolvable:$true] %s4274_s30 }
  0x1a   : > { %s5106_s25 = scalar_select %p4259_p3, 1, 0 }
  0x1b   : > { %p3240_p5 = pneg %p4259_p3 }
  0x1c   : > { %5107 = sst [smem:[#allocation41_spill]] %s5106_s25 }
  0x1d   : > { %p4268_p6 = pnand %p3240_p5, %p5089_p1 }
  0x1f   : > { %s3554_s22 = scalar_lea.hbm %s5109_s1, 1024  ;;  %p4284_p8 = pneg %p4268_p6 }
  0x20   : > { %p3555_p7 = scmp.ne.s32.totalorder %s5109_s1, %s3554_s22  ;;  %p3561_p11 = scmp.lt.u32.totalorder %s3554_s22, %s5109_s1 }
  0x22   : > { %p3557_p9 = pnand %p4284_p8, %p3555_p7 }
  0x24   : > { %p3558_p10 = pneg %p3557_p9 }
  0x26   : > { %p3563_p12 = pnand %p3561_p11, %p3558_p10 }
  0x28   : > { %3566 = shalt.err (!%p3563_p12)
}
  0x29   : > { %s3567_s15 = scalar_lea.vmem %s4257_s23, 1024  ;;  %p3575_p5 = scmp.lt.s32.totalorder %s4257_s23, %s4257_s23 }
  0x2a   : > { %p3568_p13 = scmp.ne.s32.totalorder %s4257_s23, %s3567_s15  ;;  %p3576_p4 = scmp.lt.s32.totalorder %s3567_s15, %s3567_s15 }
  0x2c   : > { %p3570_p0 = pnand %p3568_p13, %p4284_p8  ;;  %p3577_p7 = por %p3576_p4, %p3575_p5 }
  0x2e   : > { %p3571_p2 = pneg %p3570_p0 }
  0x30   : > { %p3578_p9 = pnand %p3577_p7, %p3571_p2 }
  0x32   : > { %3581 = shalt.err (!%p3578_p9)
}
  0x33   : > { %s5087_s25 = smov 64   ;;  %s5095_s0 = smov 4  }
  0x34   : > { %3243 = dma.hbm_to_vmem [thread:$0]  (!%p4268_p6), %s5109_s1, 1024, %s4257_s23, [#allocation7], %s5087_s25, %s5087_s25, %s5095_s0  }
  0x35   : > { %s5111_s3 = sld [smem:[#allocation45_spill]] }
  0x3b   : > { %s3582_s15 = scalar_lea.hbm %s5111_s3, 2048 }
  0x3c   : > { %p3583_p4 = scmp.ne.s32.totalorder %s5111_s3, %s3582_s15  ;;  %p3589_p12 = scmp.lt.u32.totalorder %s3582_s15, %s5111_s3 }
  0x3e   : > { %p3585_p10 = pnand %p3583_p4, %p4284_p8 }
  0x40   : > { %p3586_p11 = pneg %p3585_p10 }
  0x42   : > { %p3591_p13 = pnand %p3589_p12, %p3586_p11 }
  0x44   : > { %3594 = shalt.err (!%p3591_p13)
}
  0x45   : > { %s3595_s23 = scalar_lea.vmem %s4272_s27, 2048  ;;  %p3603_p7 = scmp.lt.s32.totalorder %s4272_s27, %s4272_s27 }
  0x46   : > { %p3596_p0 = scmp.ne.s32.totalorder %s4272_s27, %s3595_s23  ;;  %p3604_p9 = scmp.lt.s32.totalorder %s3595_s23, %s3595_s23 }
  0x48   : > { %p3598_p2 = pnand %p3596_p0, %p4284_p8  ;;  %p3605_p4 = por %p3604_p9, %p3603_p7 }
  0x4a   : > { %p3599_p5 = pneg %p3598_p2 }
  0x4c   : > { %p3606_p10 = pnand %p3605_p4, %p3599_p5 }
  0x4e   : > { %3609 = shalt.err (!%p3606_p10)
}
  0x4f   : > { %s5091_s18 = smov 128   ;;  %s5093_s19 = smov 8  }
  0x50   : > { %3249 = dma.hbm_to_vmem [thread:$0]  (!%p4268_p6), %s5111_s3, 2048, %s4272_s27, [#allocation10], %s5091_s18, %s5091_s18, %s5093_s19  }
  0x51   : > { %s3610_s22 = scalar_lea.hbm %s5068_s5, 1024 }
  0x52   : > { %p3611_p11 = scmp.ne.s32.totalorder %s5068_s5, %s3610_s22  ;;  %p3617_p0 = scmp.lt.u32.totalorder %s3610_s22, %s5068_s5 }
  0x54   : > { %p3613_p12 = pnand %p3611_p11, %p4284_p8 }
  0x56   : > { %p3614_p13 = pneg %p3613_p12 }
  0x58   : > { %p3619_p2 = pnand %p3617_p0, %p3614_p13 }
  0x5a   : > { %3622 = shalt.err (!%p3619_p2)
}
  0x5b   : > { %s3623_s20 = scalar_lea.vmem %s450_s30, 1024  ;;  %p3631_p4 = scmp.lt.s32.totalorder %s450_s30, %s450_s30 }
  0x5c   : > { %p3624_p5 = scmp.ne.s32.totalorder %s450_s30, %s3623_s20  ;;  %p3632_p10 = scmp.lt.s32.totalorder %s3623_s20, %s3623_s20 }
  0x5e   : > { %p3626_p7 = pnand %p3624_p5, %p4284_p8  ;;  %p3633_p1 = por %p3632_p10, %p3631_p4 }
  0x60   : > { %p3627_p9 = pneg %p3626_p7 }
  0x62   : > { %p3634_p3 = pnand %p3633_p1, %p3627_p9 }
  0x64   : > { %3637 = shalt.err (!%p3634_p3)
}
  0x65   : > { %s5112_s27 = smov 64   ;;  %s4127_s16 = smov [#allocation15]  }
  0x66   : > { %3255 = dma.hbm_to_vmem [thread:$0]  (!%p4268_p6), %s5068_s5, 1024, %s450_s30, [#allocation13], %s5112_s27, %s5112_s27, %s5095_s0  }
  0x67   : > { %s474_s17 = sshll.u32 %s4127_s16, 4  ;;  %s4128_s22 = smov [#allocation18]   ;;  %s475_s17 = int_to_ptr.vmem [resolvable:$true] %s474_s17 }
  0x68   : > { %s495_s29 = sshll.u32 %s4128_s22, 4  ;;  %s3638_s20 = scalar_lea.hbm %s5070_s7, 16  ;;  %s496_s29 = int_to_ptr.vmem [resolvable:$true] %s495_s29 }
  0x69   : > { %p3639_p1 = scmp.ne.s32.totalorder %s5070_s7, %s3638_s20  ;;  %p3645_p12 = scmp.lt.u32.totalorder %s3638_s20, %s5070_s7 }
  0x6b   : > { %p3641_p3 = pnand %p3639_p1, %p4284_p8 }
  0x6d   : > { %p3642_p11 = pneg %p3641_p3 }
  0x6f   : > { %p3647_p13 = pnand %p3645_p12, %p3642_p11 }
  0x71   : > { %3650 = shalt.err (!%p3647_p13)
}
  0x72   : > { %s3651_s30 = scalar_lea.vmem %s475_s17, 16  ;;  %s3658_s24 = scalar_lea.vmem %s475_s17, 32 }
  0x73   : > { %p3652_p0 = scmp.ne.s32.totalorder %s475_s17, %s3651_s30  ;;  %p3659_p7 = scmp.lt.s32.totalorder %s475_s17, %s475_s17 }
  0x74   : > { %p3660_p9 = scmp.lt.s32.totalorder %s3658_s24, %s3651_s30 }
  0x75   : > { %p3654_p2 = pnand %p3652_p0, %p4284_p8 }
  0x76   : > { %p3661_p4 = por %p3660_p9, %p3659_p7 }
  0x77   : > { %p3655_p5 = pneg %p3654_p2 }
  0x79   : > { %p3662_p10 = pnand %p3661_p4, %p3655_p5 }
  0x7b   : > { %3665 = shalt.err (!%p3662_p10)
}
  0x7c   : > { %3261 = dma.hbm_to_vmem [thread:$0]  (!%p4268_p6), %s5070_s7, 16, %s475_s17, [#allocation16]  }
  0x7d   : > { %s3666_s22 = scalar_lea.hbm %s5072_s9, 4096 }
  0x7e   : > { %p3667_p1 = scmp.ne.s32.totalorder %s5072_s9, %s3666_s22  ;;  %p3673_p12 = scmp.lt.u32.totalorder %s3666_s22, %s5072_s9 }
  0x80   : > { %p3669_p3 = pnand %p3667_p1, %p4284_p8 }
  0x82   : > { %p3670_p11 = pneg %p3669_p3 }
  0x84   : > { %p3675_p13 = pnand %p3673_p12, %p3670_p11 }
  0x86   : > { %3678 = shalt.err (!%p3675_p13)
}
  0x87   : > { %s3679_s30 = scalar_lea.vmem %s496_s29, 4096  ;;  %p3687_p7 = scmp.lt.s32.totalorder %s496_s29, %s496_s29 }
  0x88   : > { %p3680_p0 = scmp.ne.s32.totalorder %s496_s29, %s3679_s30  ;;  %p3688_p9 = scmp.lt.s32.totalorder %s3679_s30, %s3679_s30 }
  0x8a   : > { %p3682_p2 = pnand %p3680_p0, %p4284_p8  ;;  %p3689_p4 = por %p3688_p9, %p3687_p7 }
  0x8c   : > { %p3683_p5 = pneg %p3682_p2 }
  0x8e   : > { %p3690_p10 = pnand %p3689_p4, %p3683_p5 }
  0x90   : > { %3693 = shalt.err (!%p3690_p10)
}
  0x91   : > { %s5113_s17 = smov 8   ;;  %s5114_s24 = smov 128  }
  0x92   : > { %3267 = dma.hbm_to_vmem [thread:$0]  (!%p4268_p6), %s5072_s9, 4096, %s496_s29, [#allocation19], %s5114_s24, %s5114_s24, %s5113_s17  }
  0x93   : > { %s4129_s1 = smov [#allocation21]   ;;  %s4130_s22 = smov [#allocation24]  }
  0x94   : > { %s521_s16 = sshll.u32 %s4129_s1, 4  ;;  %s546_s15 = sshll.u32 %s4130_s22, 4  ;;  %s522_s16 = int_to_ptr.vmem [resolvable:$true] %s521_s16  ;;  %s547_s15 = int_to_ptr.vmem [resolvable:$true] %s546_s15 }
  0x95   : > { %s3694_s25 = scalar_lea.hbm %s5074_s11, 4096 }
  0x96   : > { %p3695_p1 = scmp.ne.s32.totalorder %s5074_s11, %s3694_s25  ;;  %p3701_p12 = scmp.lt.u32.totalorder %s3694_s25, %s5074_s11 }
  0x98   : > { %p3697_p3 = pnand %p3695_p1, %p4284_p8 }
  0x9a   : > { %p3698_p11 = pneg %p3697_p3 }
  0x9c   : > { %p3703_p13 = pnand %p3701_p12, %p3698_p11 }
  0x9e   : > { %3706 = shalt.err (!%p3703_p13)
}
  0x9f   : > { %s3707_s29 = scalar_lea.vmem %s522_s16, 4096  ;;  %p3715_p7 = scmp.lt.s32.totalorder %s522_s16, %s522_s16 }
  0xa0   : > { %p3708_p0 = scmp.ne.s32.totalorder %s522_s16, %s3707_s29  ;;  %p3716_p9 = scmp.lt.s32.totalorder %s3707_s29, %s3707_s29 }
  0xa2   : > { %p3710_p2 = pnand %p3708_p0, %p4284_p8  ;;  %p3717_p4 = por %p3716_p9, %p3715_p7 }
  0xa4   : > { %p3711_p5 = pneg %p3710_p2 }
  0xa6   : > { %p3718_p10 = pnand %p3717_p4, %p3711_p5 }
  0xa8   : > { %3721 = shalt.err (!%p3718_p10)
}
  0xa9   : > { %s5115_s0 = smov 4   ;;  %s3722_s23 = scalar_lea.hbm %s5076_s13, 16 }
  0xaa   : > { %3273 = dma.hbm_to_vmem [thread:$0]  (!%p4268_p6), %s5074_s11, 4096, %s522_s16, [#allocation22], %s5112_s27, %s5112_s27, %s5115_s0  }
  0xab   : > { %p3723_p1 = scmp.ne.s32.totalorder %s5076_s13, %s3722_s23  ;;  %p3729_p12 = scmp.lt.u32.totalorder %s3722_s23, %s5076_s13 }
  0xad   : > { %p3725_p3 = pnand %p3723_p1, %p4284_p8 }
  0xaf   : > { %p3726_p11 = pneg %p3725_p3 }
  0xb1   : > { %p3731_p13 = pnand %p3729_p12, %p3726_p11 }
  0xb3   : > { %3734 = shalt.err (!%p3731_p13)
}
  0xb4   : > { %s3735_s29 = scalar_lea.vmem %s547_s15, 16  ;;  %s3742_s27 = scalar_lea.vmem %s547_s15, 32 }
  0xb5   : > { %p3736_p0 = scmp.ne.s32.totalorder %s547_s15, %s3735_s29  ;;  %p3743_p7 = scmp.lt.s32.totalorder %s547_s15, %s547_s15 }
  0xb6   : > { %p3744_p9 = scmp.lt.s32.totalorder %s3742_s27, %s3735_s29 }
  0xb7   : > { %p3738_p2 = pnand %p3736_p0, %p4284_p8 }
  0xb8   : > { %p3745_p4 = por %p3744_p9, %p3743_p7 }
  0xb9   : > { %p3739_p5 = pneg %p3738_p2 }
  0xbb   : > { %p3746_p10 = pnand %p3745_p4, %p3739_p5 }
  0xbd   : > { %3749 = shalt.err (!%p3746_p10)
}
  0xbe   : > { %3279 = dma.hbm_to_vmem [thread:$0]  (!%p4268_p6), %s5076_s13, 16, %s547_s15, [#allocation25]  }
  0xbf   : > { %s4131_s3 = smov [#allocation8]   ;;  %s4132_s1 = smov [#allocation11]  }
  0xc0   : > { %s415_s19 = sshll.u32 %s4131_s3, 4  ;;  %s439_s22 = sshll.u32 %s4132_s1, 4  ;;  %s416_s19 = int_to_ptr.vmem [resolvable:$true] %s415_s19  ;;  %s440_s22 = int_to_ptr.vmem [resolvable:$true] %s439_s22 }
  0xc1   : > { %s5116_s2 = sld [smem:[#allocation44_spill]] }
  0xc7   : > { %s3750_s25 = scalar_lea.hbm %s5116_s2, 16 }
  0xc8   : > { %p3751_p1 = scmp.ne.s32.totalorder %s5116_s2, %s3750_s25  ;;  %p3757_p12 = scmp.lt.u32.totalorder %s3750_s25, %s5116_s2 }
  0xca   : > { %p3753_p3 = pnand %p3751_p1, %p4284_p8 }
  0xcc   : > { %p3754_p11 = pneg %p3753_p3 }
  0xce   : > { %p3759_p13 = pnand %p3757_p12, %p3754_p11 }
  0xd0   : > { %3762 = shalt.err (!%p3759_p13)
}
  0xd1   : > { %s3763_s15 = scalar_lea.vmem %s416_s19, 16  ;;  %s3770_s16 = scalar_lea.vmem %s416_s19, 32 }
  0xd2   : > { %p3764_p0 = scmp.ne.s32.totalorder %s416_s19, %s3763_s15  ;;  %p3771_p7 = scmp.lt.s32.totalorder %s416_s19, %s416_s19 }
  0xd3   : > { %p3772_p9 = scmp.lt.s32.totalorder %s3770_s16, %s3763_s15 }
  0xd4   : > { %p3766_p2 = pnand %p3764_p0, %p4284_p8 }
  0xd5   : > { %p3773_p4 = por %p3772_p9, %p3771_p7 }
  0xd6   : > { %p3767_p5 = pneg %p3766_p2 }
  0xd8   : > { %p3774_p10 = pnand %p3773_p4, %p3767_p5 }
  0xda   : > { %3777 = shalt.err (!%p3774_p10)
}
  0xdb   : > { %3246 = dma.hbm_to_vmem [thread:$0]  (!%p4268_p6), %s5116_s2, 16, %s416_s19, [#allocation7]  }
  0xdc   : > { %s3778_s20 = scalar_lea.hbm %s5067_s4, 32 }
  0xdd   : > { %p3779_p1 = scmp.ne.s32.totalorder %s5067_s4, %s3778_s20  ;;  %p3785_p12 = scmp.lt.u32.totalorder %s3778_s20, %s5067_s4 }
  0xdf   : > { %p3781_p3 = pnand %p3779_p1, %p4284_p8 }
  0xe1   : > { %p3782_p11 = pneg %p3781_p3 }
  0xe3   : > { %p3787_p13 = pnand %p3785_p12, %p3782_p11 }
  0xe5   : > { %3790 = shalt.err (!%p3787_p13)
}
  0xe6   : > { %s3791_s27 = scalar_lea.vmem %s440_s22, 32  ;;  %p3799_p7 = scmp.lt.s32.totalorder %s440_s22, %s440_s22 }
  0xe7   : > { %p3792_p0 = scmp.ne.s32.totalorder %s440_s22, %s3791_s27  ;;  %p3800_p9 = scmp.lt.s32.totalorder %s3791_s27, %s3791_s27 }
  0xe9   : > { %p3794_p2 = pnand %p3792_p0, %p4284_p8  ;;  %p3801_p4 = por %p3800_p9, %p3799_p7 }
  0xeb   : > { %p3795_p5 = pneg %p3794_p2 }
  0xed   : > { %p3802_p10 = pnand %p3801_p4, %p3795_p5 }
  0xef   : > { %3805 = shalt.err (!%p3802_p10)
}
  0xf0   : > { %3252 = dma.hbm_to_vmem [thread:$0]  (!%p4268_p6), %s5067_s4, 32, %s440_s22, [#allocation10]  }
  0xf1   : > { %s4133_s16 = smov [#allocation14]   ;;  %s4134_s3 = smov [#allocation17]  }
  0xf2   : > { %s463_s0 = sshll.u32 %s4133_s16, 4  ;;  %s485_s1 = sshll.u32 %s4134_s3, 4  ;;  %s464_s0 = int_to_ptr.vmem [resolvable:$true] %s463_s0  ;;  %s486_s1 = int_to_ptr.vmem [resolvable:$true] %s485_s1 }
  0xf3   : > { %s3806_s25 = scalar_lea.hbm %s5069_s6, 16 }
  0xf4   : > { %p3807_p1 = scmp.ne.s32.totalorder %s5069_s6, %s3806_s25  ;;  %p3813_p12 = scmp.lt.u32.totalorder %s3806_s25, %s5069_s6 }
  0xf6   : > { %p3809_p3 = pnand %p3807_p1, %p4284_p8 }
  0xf8   : > { %p3810_p11 = pneg %p3809_p3 }
  0xfa   : > { %p3815_p13 = pnand %p3813_p12, %p3810_p11 }
  0xfc   : > { %3818 = shalt.err (!%p3815_p13)
}
  0xfd   : > { %s3819_s22 = scalar_lea.vmem %s464_s0, 16  ;;  %s3826_s19 = scalar_lea.vmem %s464_s0, 32 }
  0xfe   : > { %p3820_p0 = scmp.ne.s32.totalorder %s464_s0, %s3819_s22  ;;  %p3827_p7 = scmp.lt.s32.totalorder %s464_s0, %s464_s0 }
  0xff   : > { %p3828_p9 = scmp.lt.s32.totalorder %s3826_s19, %s3819_s22 }
 0x100   : > { %p3822_p2 = pnand %p3820_p0, %p4284_p8 }
 0x101   : > { %p3829_p4 = por %p3828_p9, %p3827_p7 }
 0x102   : > { %p3823_p5 = pneg %p3822_p2 }
 0x104   : > { %p3830_p10 = pnand %p3829_p4, %p3823_p5 }
 0x106   : > { %3833 = shalt.err (!%p3830_p10)
}
 0x107   : > { %3258 = dma.hbm_to_vmem [thread:$0]  (!%p4268_p6), %s5069_s6, 16, %s464_s0, [#allocation13]  }
 0x108   : > { %s3834_s20 = scalar_lea.hbm %s5071_s8, 16 }
 0x109   : > { %p3835_p1 = scmp.ne.s32.totalorder %s5071_s8, %s3834_s20  ;;  %p3841_p12 = scmp.lt.u32.totalorder %s3834_s20, %s5071_s8 }
 0x10b   : > { %p3837_p3 = pnand %p3835_p1, %p4284_p8 }
 0x10d   : > { %p3838_p11 = pneg %p3837_p3 }
 0x10f   : > { %p3843_p13 = pnand %p3841_p12, %p3838_p11 }
 0x111   : > { %3846 = shalt.err (!%p3843_p13)
}
 0x112   : > { %s3847_s27 = scalar_lea.vmem %s486_s1, 16  ;;  %s3854_s0 = scalar_lea.vmem %s486_s1, 32 }
 0x113   : > { %p3848_p0 = scmp.ne.s32.totalorder %s486_s1, %s3847_s27  ;;  %p3855_p7 = scmp.lt.s32.totalorder %s486_s1, %s486_s1 }
 0x114   : > { %p3856_p9 = scmp.lt.s32.totalorder %s3854_s0, %s3847_s27 }
 0x115   : > { %p3850_p2 = pnand %p3848_p0, %p4284_p8 }
 0x116   : > { %p3857_p4 = por %p3856_p9, %p3855_p7 }
 0x117   : > { %p3851_p5 = pneg %p3850_p2 }
 0x119   : > { %p3858_p10 = pnand %p3857_p4, %p3851_p5 }
 0x11b   : > { %3861 = shalt.err (!%p3858_p10)
}
 0x11c   : > { %3264 = dma.hbm_to_vmem [thread:$0]  (!%p4268_p6), %s5071_s8, 16, %s486_s1, [#allocation16]  }
 0x11d   : > { %s4135_s15 = smov [#allocation20]   ;;  %s3862_s20 = scalar_lea.hbm %s5073_s10, 64 }
 0x11e   : > { %s508_s16 = sshll.u32 %s4135_s15, 4  ;;  %p3863_p1 = scmp.ne.s32.totalorder %s5073_s10, %s3862_s20  ;;  %s509_s16 = int_to_ptr.vmem [resolvable:$true] %s508_s16 }
 0x11f   : > { %p3869_p12 = scmp.lt.u32.totalorder %s3862_s20, %s5073_s10 }
 0x120   : > { %p3865_p3 = pnand %p3863_p1, %p4284_p8 }
 0x122   : > { %p3866_p11 = pneg %p3865_p3 }
 0x124   : > { %p3871_p13 = pnand %p3869_p12, %p3866_p11 }
 0x126   : > { %3874 = shalt.err (!%p3871_p13)
}
 0x127   : > { %s3875_s1 = scalar_lea.vmem %s509_s16, 64  ;;  %p3883_p7 = scmp.lt.s32.totalorder %s509_s16, %s509_s16 }
 0x128   : > { %p3876_p0 = scmp.ne.s32.totalorder %s509_s16, %s3875_s1  ;;  %p3884_p9 = scmp.lt.s32.totalorder %s3875_s1, %s3875_s1 }
 0x12a   : > { %p3878_p2 = pnand %p3876_p0, %p4284_p8  ;;  %p3885_p4 = por %p3884_p9, %p3883_p7 }
 0x12c   : > { %p3879_p5 = pneg %p3878_p2 }
 0x12e   : > { %p3886_p10 = pnand %p3885_p4, %p3879_p5 }
 0x130   : > { %3889 = shalt.err (!%p3886_p10)
}
 0x131   : > { %s4136_s27 = smov 32   ;;  %s4137_s0 = smov 2  }
 0x132   : > { %3270 = dma.hbm_to_vmem [thread:$0]  (!%p4268_p6), %s5073_s10, 64, %s509_s16, [#allocation19], %s4136_s27, %s4136_s27, %s4137_s0  }
 0x133   : > { %s4138_s15 = smov [#allocation23]   ;;  %s4139_s23 = smov [#allocation26]  }
 0x134   : > { %s535_s3 = sshll.u32 %s4138_s15, 4  ;;  %s557_s20 = sshll.u32 %s4139_s23, 4  ;;  %s536_s3 = int_to_ptr.vmem [resolvable:$true] %s535_s3  ;;  %s4524_s20 = int_to_ptr.vmem [resolvable:$true] %s557_s20 }
 0x135   : > { %s3890_s18 = scalar_lea.hbm %s5075_s12, 16 }
 0x136   : > { %p3891_p1 = scmp.ne.s32.totalorder %s5075_s12, %s3890_s18  ;;  %p3897_p12 = scmp.lt.u32.totalorder %s3890_s18, %s5075_s12 }
 0x138   : > { %p3893_p3 = pnand %p3891_p1, %p4284_p8 }
 0x13a   : > { %p3894_p11 = pneg %p3893_p3 }
 0x13c   : > { %p3899_p13 = pnand %p3897_p12, %p3894_p11 }
 0x13e   : > { %3902 = shalt.err (!%p3899_p13)
}
 0x13f   : > { %s3903_s27 = scalar_lea.vmem %s536_s3, 16  ;;  %s3910_s0 = scalar_lea.vmem %s536_s3, 32 }
 0x140   : > { %p3904_p0 = scmp.ne.s32.totalorder %s536_s3, %s3903_s27  ;;  %p3911_p7 = scmp.lt.s32.totalorder %s536_s3, %s536_s3 }
 0x141   : > { %p3912_p9 = scmp.lt.s32.totalorder %s3910_s0, %s3903_s27 }
 0x142   : > { %p3906_p2 = pnand %p3904_p0, %p4284_p8 }
 0x143   : > { %p3913_p4 = por %p3912_p9, %p3911_p7 }
 0x144   : > { %p3907_p5 = pneg %p3906_p2 }
 0x146   : > { %p3914_p10 = pnand %p3913_p4, %p3907_p5 }
 0x148   : > { %3917 = shalt.err (!%p3914_p10)
}
 0x149   : > { %3276 = dma.hbm_to_vmem [thread:$0]  (!%p4268_p6), %s5075_s12, 16, %s536_s3, [#allocation22]  }
 0x14a   : > { %s3918_s30 = scalar_lea.hbm %s5077_s14, 16 }
 0x14b   : > { %p3919_p1 = scmp.ne.s32.totalorder %s5077_s14, %s3918_s30  ;;  %p3925_p12 = scmp.lt.u32.totalorder %s3918_s30, %s5077_s14 }
 0x14d   : > { %p3921_p3 = pnand %p3919_p1, %p4284_p8 }
 0x14f   : > { %p3922_p11 = pneg %p3921_p3 }
 0x151   : > { %p3927_p13 = pnand %p3925_p12, %p3922_p11 }
 0x153   : > { %3930 = shalt.err (!%p3927_p13)
}
 0x154   : > { %s3931_s3 = scalar_lea.vmem %s4524_s20, 16  ;;  %s3938_s16 = scalar_lea.vmem %s4524_s20, 32 }
 0x155   : > { %p3932_p0 = scmp.ne.s32.totalorder %s4524_s20, %s3931_s3  ;;  %p3939_p7 = scmp.lt.s32.totalorder %s4524_s20, %s4524_s20 }
 0x156   : > { %p3940_p9 = scmp.lt.s32.totalorder %s3938_s16, %s3931_s3 }
 0x157   : > { %p3934_p2 = pnand %p3932_p0, %p4284_p8 }
 0x158   : > { %p3941_p4 = por %p3940_p9, %p3939_p7 }
 0x159   : > { %p3935_p5 = pneg %p3934_p2 }
 0x15b   : > { %p3942_p10 = pnand %p3941_p4, %p3935_p5 }
 0x15d   : > { %3945 = shalt.err (!%p3942_p10)
}
 0x15e   : > { %s5117_s19 = sld [smem:[#allocation39_spill]]  ;;  %s5118_s26 = sld [smem:[#allocation38_spill]] }
 0x15f   : > { %s5119_s15 = sld [smem:[#allocation37_spill]]  ;;  %s5120_s23 = sld [smem:[#allocation40_spill]] }
 0x160   : > { %3282 = dma.hbm_to_vmem [thread:$0]  (!%p4268_p6), %s5077_s14, 16, %s4524_s20, [#allocation25]  }
 0x161   : > { %s2799_s28 = sadd.s32 4294967294, %s4094_s21   ;;  %s4570_s25 = sadd.s32 1, %s4094_s21  }
 0x162   : > { %s42_s30 = ssub.s32 %s4094_s21, %s4570_s25  ;;  %p53_p3 = scmp.eq.s32.totalorder %s4094_s21, 0 }
 0x163   : > { %p43_p8 = scmp.eq.s32.totalorder %s42_s30, 0  ;;  %p382_p2 = scmp.eq.s32.totalorder %s2799_s28, 1 }
 0x164   : > { %s45_s18 = sadd.s32 1, %s5117_s19  ;;  %p52_p1 = scmp.ne.s32.totalorder %s5117_s19, %s5118_s26 }
 0x165   : > { %p58_p11 = scmp.ne.s32.totalorder %s5118_s26, %s5119_s15  ;;  %p5122_p13 = scmp.eq.s32.totalorder %s5120_s23, 0 }
 0x166   : > { %s4581_s29 = scalar_select %p43_p8, %s5117_s19, %s45_s18  }
 0x167   : > { %p4583_p12 = por %p53_p3, %p52_p1  ;;  %p4589_p6 = por %p5122_p13, %p58_p11 }
 0x168   : > { %p376_p0 = scmp.eq.s32.totalorder %s5120_s23, 1  ;;  %p3305_p5 = scmp.lt.s32.totalorder %s4094_s21, 2 }
 0x169   : > { %s568_s22 = sand.u32 1, %s5117_s19   ;;  %p4600_p9 = por %p382_p2, %p58_p11 }
 0x16a   : > { %p4596_p7 = por %p376_p0, %p52_p1  ;;  %s2816_s27 = sshll.u32 %s568_s22, 5 }
 0x16b   : > { %s5125_s16 = scalar_select %p4600_p9, 1, 0 }
 0x16c   : > { %s5124_s3 = scalar_select %p4596_p7, 1, 0 }
 0x16d   : > { %s2942_s0 = sshll.u32 %s4094_s21, 9  ;;  %s5126_s30 = sld [smem:[#allocation42_spill]] }
 0x16e   : > { %s572_s19 = scalar_lea.vmem [#allocation3], %s2816_s27  ;;  %p4614_p4 = pnand %p3305_p5, %p4583_p12 }
 0x16f   : > { %s580_s23 = sshll.u32 %s572_s19, 4  ;;  %s4618_s2 = scalar_lea.sflag [#allocation4], %s568_s22  ;;  %s4610_s23 = int_to_ptr.vmem [resolvable:$true] %s580_s23 }
 0x170   : > { %p3948_p8 = pneg %p4614_p4 }
 0x173   : > { %s4608_s18 = scalar_lea.hbm %s5126_s30, %s2942_s0  ;;  %s3951_s1 = scalar_lea.hbm %s5126_s30, 1024 }
 0x174   : > { %s3946_s26 = scalar_lea.hbm %s4608_s18, 512  ;;  %p3952_p11 = scmp.lt.u32.totalorder %s4608_s18, %s5126_s30 }
 0x175   : > { %p3947_p10 = scmp.ne.s32.totalorder %s4608_s18, %s3946_s26  ;;  %p3953_p12 = scmp.lt.u32.totalorder %s3951_s1, %s3946_s26 }
 0x176   : > { %p3955_p0 = scmp.lt.u32.totalorder %s3946_s26, %s4608_s18 }
 0x177   : > { %p3949_p1 = pnand %p3948_p8, %p3947_p10  ;;  %p3954_p13 = por %p3953_p12, %p3952_p11 }
 0x179   : > { %p3950_p3 = pneg %p3949_p1  ;;  %p3956_p2 = por %p3955_p0, %p3954_p13 }
 0x17b   : > { %p3957_p5 = pnand %p3956_p2, %p3950_p3 }
 0x17d   : > { %3960 = shalt.err (!%p3957_p5)
}
 0x17e   : > { %s3961_s22 = scalar_lea.vmem %s4610_s23, 512  ;;  %s4140_s27 = smov [#allocation3]  }
 0x17f   : > { %p3962_p10 = scmp.ne.s32.totalorder %s4610_s23, %s3961_s22  ;;  %s3966_s0 = sshll.u32 %s4140_s27, 4  ;;  %s3967_s0 = int_to_ptr.vmem [resolvable:$false] %s3966_s0 }
 0x180   : > { %s3968_s15 = scalar_lea.vmem %s3967_s0, 1024  ;;  %p3969_p7 = scmp.lt.s32.totalorder %s4610_s23, %s3967_s0 }
 0x181   : > { %p3964_p1 = pnand %p3962_p10, %p3948_p8  ;;  %p3970_p11 = scmp.lt.s32.totalorder %s3968_s15, %s3961_s22 }
 0x183   : > { %p3965_p9 = pneg %p3964_p1  ;;  %p3971_p12 = por %p3970_p11, %p3969_p7 }
 0x185   : > { %p3972_p13 = pnand %p3971_p12, %p3965_p9 }
 0x187   : > { %3975 = shalt.err (!%p3972_p13)
}
 0x188   : > { %3286 = dma.hbm_to_vmem [thread:$0]  (!%p4614_p4), %s4608_s18, 512, %s4610_s23, %s4618_s2, %s5114_s24, %s5114_s24, %s5113_s17  }
 0x189   : > { %s5128_s26 = sld [smem:[#allocation41_spill]] }
 0x18f   : > { %p5129_p8 = scmp.ne.s32.totalorder %s5128_s26, 0 }
 0x190   : > { %s5130_s1 = sld [smem:[#allocation38_spill]] (!%p5129_p8) }
 0x191   : > { %592 = sbr.rel (%p5129_p8) target bundleno = 4783 (0x12af), region = 80 }
 0x196   : > { %s4652_s19 = sand.u32 (!%p5129_p8), 1, %s5130_s1  }
 0x197   : > { %s2821_s22 = sshll.u32 (!%p5129_p8), %s4652_s19, 5  ;;  %s595_s27 = scalar_lea.sflag (!%p5129_p8), [#allocation4], %s4652_s19 }
 0x198   : > { %s4658_s28 = scalar_lea.vmem [#allocation3], %s2821_s22 }
 0x199   : > { %4045 = dma.done.wait (%p4589_p6), %s595_s27, 512  }
 0x19a   : > { %4047 = vsyncadd (%p4589_p6), %s595_s27, 4294966784  ;;  %s5131_s2 = sld [smem:[#allocation40_spill]] }
 0x1a0   : > { %p5132_p7 = scmp.eq.s32.totalorder %s5131_s2, 0 }
 0x1a2   : > { %4049 = dma.done.wait (%p5132_p7), [#allocation7], 1040   ;;  %p5133_p9 = pmov %p5132_p7 }
 0x1a3   : > { %p5134_p4 = pmov %p5132_p7 }
 0x1a4   : > { %4051 = vsyncadd (%p5133_p9), [#allocation7], 4294966256 }
 0x1a5   : > { %4053 = dma.done.wait (%p5134_p4), [#allocation10], 2080   ;;  %p5135_p3 = pmov %p5134_p4 }
 0x1a7   : > { %4055 = vsyncadd (%p5135_p3), [#allocation10], 4294965216  ;;  %p5136_p0 = pmov %p5135_p3 }
 0x1a9   : > { %4057 = dma.done.wait (%p5136_p0), [#allocation13], 1040   ;;  %p5137_p2 = pmov %p5136_p0 }
 0x1aa   : > { %p5138_p6 = pmov %p5136_p0 }
 0x1ab   : > { %4059 = vsyncadd (%p5137_p2), [#allocation13], 4294966256 }
 0x1ac   : > { %4061 = dma.done.wait (%p5138_p6), [#allocation16], 32   ;;  %p5139_p5 = pmov %p5136_p0 }
 0x1ad   : > { %p5140_p10 = pmov %p5136_p0 }
 0x1ae   : > { %4063 = vsyncadd (%p5139_p5), [#allocation16], 4294967264 }
 0x1af   : > { %4065 = dma.done.wait (%p5140_p10), [#allocation19], 4160   ;;  %p5141_p1 = pmov %p5136_p0 }
 0x1b0   : > { %p5142_p11 = pmov %p5136_p0 }
 0x1b1   : > { %4067 = vsyncadd (%p5141_p1), [#allocation19], 4294963136 }
 0x1b2   : > { %4069 = dma.done.wait (%p5142_p11), [#allocation22], 4112   ;;  %p5143_p12 = pmov %p5136_p0 }
 0x1b3   : > { %p5144_p13 = pmov %p5136_p0 }
 0x1b4   : > { %4071 = vsyncadd (%p5143_p12), [#allocation22], 4294963184 }
 0x1b5   : > { %4073 = dma.done.wait (%p5144_p13), [#allocation25], 32   ;;  %p5145_p8 = pmov %p5136_p0 }
 0x1b6   : > { %v4141_v0 = vmov 0   ;;  %v3430_v1 = vld [vmem:[#allocation9 + $0x4] ss:$8 sps:$4 sm:$0xff]   ;;  %v3432_v2 = vld [vmem:[#allocation9] ss:$8 sps:$4 sm:$0xff]   ;;  %v707_v20 = vld [vmem:[%s4658_s28 + $0x18] sm:$0xff] }
 0x1b7   : > { %4075 = vsyncadd (%p5145_p8), [#allocation25], 4294967264  ;;  %838 = vmatprep.mubr.bf16.mxu0 %v4141_v0  ;;  %848 = vmatprep.mubr.bf16.mxu1 %v4141_v0  ;;  %v3433_v3 = vld [vmem:[#allocation9 + $0x14] ss:$8 sps:$4 sm:$0xff]   ;;  %v3435_v4 = vld [vmem:[#allocation9 + $0x10] ss:$8 sps:$4 sm:$0xff]  }
 0x1b8   : > { %806 = vmatprep.subr.bf16.mxu0 %v3430_v1  ;;  %3164 = vmatprep.subr.bf16.mxu1 %v3430_v1  ;;  %v3436_v5 = vld [vmem:[#allocation9 + $0x24] ss:$8 sps:$4 sm:$0xff]   ;;  %v3438_v6 = vld [vmem:[#allocation9 + $0x20] ss:$8 sps:$4 sm:$0xff]   ;;  %v3439_v7 = vld [vmem:[#allocation9 + $0x34] ss:$8 sps:$4 sm:$0xff]  }
 0x1b9   : > { %807 = vmatpush1.bf16.msra.mxu0 %v3432_v2  ;;  %3172 = vmatpush1.bf16.msra.mxu1 %v3432_v2  ;;  %v3441_v8 = vld [vmem:[#allocation9 + $0x30] ss:$8 sps:$4 sm:$0xff]   ;;  %v3442_v9 = vld [vmem:[#allocation9 + $0x44] ss:$8 sps:$4 sm:$0xff]   ;;  %v3444_v10 = vld [vmem:[#allocation9 + $0x40] ss:$8 sps:$4 sm:$0xff]  }
 0x1ba   : > { %808 = vmatprep.subr.bf16.mxu0 %v3433_v3  ;;  %3165 = vmatprep.subr.bf16.mxu1 %v3433_v3  ;;  %v3445_v11 = vld [vmem:[#allocation9 + $0x54] ss:$8 sps:$4 sm:$0xff]   ;;  %v3447_v12 = vld [vmem:[#allocation9 + $0x50] ss:$8 sps:$4 sm:$0xff]   ;;  %v3448_v13 = vld [vmem:[#allocation9 + $0x64] ss:$8 sps:$4 sm:$0xff]  }
 0x1bb   : > { %v3450_v14 = vld [vmem:[#allocation9 + $0x60] ss:$8 sps:$4 sm:$0xff]   ;;  %v3451_v15 = vld [vmem:[#allocation9 + $0x74] ss:$8 sps:$4 sm:$0xff]   ;;  %v3453_v16 = vld [vmem:[#allocation9 + $0x70] ss:$8 sps:$4 sm:$0xff]  }
 0x1bc   : > { %v704_v17 = vld [vmem:[%s4658_s28] sm:$0xff]  ;;  %v705_v18 = vld [vmem:[%s4658_s28 + $0x8] sm:$0xff]  ;;  %v706_v19 = vld [vmem:[%s4658_s28 + $0x10] sm:$0xff]  ;;  %s4706_s17 = scalar_lea.vmem [#allocation27], %s2821_s22  ;;  %s4708_s24 = smov 0  }
 0x1bd   : > { %809 = vmatpush1.bf16.msra.mxu0 %v3435_v4  ;;  %3173 = vmatpush1.bf16.msra.mxu1 %v3435_v4  ;;  %v708_v21 = vpack.c.bf16 %v705_v18, %v704_v17  ;;  %v709_v22 = vpack.c.bf16 %v707_v20, %v706_v19  ;;  %v2853_v24 = vld [vmem:[#allocation11] ss:$0 sm:$0xff]  ;;  %v2854_v27 = vld [vmem:[#allocation11 + $0x1] ss:$0 sm:$0xff] }
 0x1be   : > { %810 = vmatprep.subr.bf16.mxu0 %v3436_v5  ;;  %3166 = vmatprep.subr.bf16.mxu1 %v3436_v5 }
 0x1c1   : > { %811 = vmatpush1.bf16.msra.mxu0 %v3438_v6  ;;  %3174 = vmatpush1.bf16.msra.mxu1 %v3438_v6 }
 0x1c2   : > { %812 = vmatprep.subr.bf16.mxu0 %v3439_v7  ;;  %3167 = vmatprep.subr.bf16.mxu1 %v3439_v7 }
 0x1c5   : > { %813 = vmatpush1.bf16.msra.mxu0 %v3441_v8  ;;  %3175 = vmatpush1.bf16.msra.mxu1 %v3441_v8 }
 0x1c6   : > { %814 = vmatprep.subr.bf16.mxu0 %v3442_v9  ;;  %3168 = vmatprep.subr.bf16.mxu1 %v3442_v9 }
 0x1c9   : > { %815 = vmatpush1.bf16.msra.mxu0 %v3444_v10  ;;  %3176 = vmatpush1.bf16.msra.mxu1 %v3444_v10 }
 0x1ca   : > { %816 = vmatprep.subr.bf16.mxu0 %v3445_v11  ;;  %3169 = vmatprep.subr.bf16.mxu1 %v3445_v11 }
 0x1cd   : > { %817 = vmatpush1.bf16.msra.mxu0 %v3447_v12  ;;  %3177 = vmatpush1.bf16.msra.mxu1 %v3447_v12 }
 0x1ce   : > { %818 = vmatprep.subr.bf16.mxu0 %v3448_v13  ;;  %3170 = vmatprep.subr.bf16.mxu1 %v3448_v13 }
 0x1d1   : > { %819 = vmatpush1.bf16.msra.mxu0 %v3450_v14  ;;  %3178 = vmatpush1.bf16.msra.mxu1 %v3450_v14 }
 0x1d2   : > { %820 = vmatprep.subr.bf16.mxu0 %v3451_v15  ;;  %3171 = vmatprep.subr.bf16.mxu1 %v3451_v15 }
 0x1d5   : > { %821 = vmatpush1.bf16.msra.mxu0 %v3453_v16  ;;  %3179 = vmatpush1.bf16.msra.mxu1 %v3453_v16 }
 0x1d8   : > { %839 = vmatmul.mubr.bf16.vlgmr.msra.gmra.mrb[0].mxu0 %v708_v21  ;;  %849 = vmatmul.mubr.bf16.vlgmr.msra.gmra.mrb[0].mxu1 %v709_v22 }
 0x2ab   : > { %v840_v23 = vpop.f32.mrb[0].mxu0  ;;  %v850_v25 = vpop.f32.mrb[0].mxu1 }
 0x2ac   : > { %v842_v26 = vpop.f32.mrb[1].mxu0  ;;  %v852_v28 = vpop.f32.mrb[1].mxu1  ;;  %v866_v31 = vadd.f32 %v2853_v24, %v840_v23  ;;  %v868_v32 = vadd.f32 %v2853_v24, %v850_v25 }
 0x2ad   : > { %v844_v29 = vpop.f32.mrb[2].mxu0  ;;  %v854_v30 = vpop.f32.mrb[2].mxu1  ;;  %v879_v37 = vadd.f32 %v2854_v27, %v842_v26  ;;  %v881_v38 = vadd.f32 %v2854_v27, %v852_v28 }
 0x2ae   : > { %v867_v33 = vadd.f32 %v2853_v24, %v844_v29  ;;  %v869_v34 = vadd.f32 %v2853_v24, %v854_v30  ;;  %v846_v35 = vpop.f32.mrb[3].mxu0  ;;  %v856_v36 = vpop.f32.mrb[3].mxu1 }
 0x2af   : > { %v880_v39 = vadd.f32 %v2854_v27, %v846_v35  ;;  %v882_v40 = vadd.f32 %v2854_v27, %v856_v36 }
 0x2b0   : > { %v4696_v41 = vpack.c.bf16 %v867_v33, %v866_v31  ;;  %v4698_v42 = vpack.c.bf16 %v869_v34, %v868_v32 }
 0x2b1   : > { %v4700_v43 = vpack.c.bf16 %v880_v39, %v879_v37  ;;  %v4702_v44 = vpack.c.bf16 %v882_v40, %v881_v38 }
 0x2b2 LB: >> { %v3454_v45 = vld [vmem:[#allocation6] sm:$0xff]   ;;  %v4142_v46 = vmov 0.0   ;;  %v3455_v47 = vld [vmem:[#allocation6 + $0x8] sm:$0xff]   ;;  %vm4143_vm0 = vmmov 0   ;;  %vm1021_vm1 = vcmask 261120   ;;  %v3456_v49 = vld [vmem:[#allocation6 + $0x10] sm:$0xff]   ;;  %s4098_s24 = sphi %s4708_s24, %s890_s24  }
 0x2b3   : >> { %3028 = vmatprep.subr.bf16.mxu0 %v4142_v46  ;;  %3048 = vmatprep.subr.bf16.mxu1 %v4142_v46  ;;  %v1026_v48 = vsel %vm1021_vm1, %v4696_v41, 0  ;;  %v3457_v50 = vld [vmem:[#allocation6 + $0x18] sm:$0xff]   ;;  %v3458_v51 = vld [vmem:[#allocation6 + $0x20] sm:$0xff]   ;;  %v3459_v52 = vld [vmem:[#allocation6 + $0x28] sm:$0xff]   ;;  %s2855_s20 = sshll.u32 %s4098_s24, 3  ;;  %v1072_v1 = vsel %vm1021_vm1, %v4698_v42, 0 }
 0x2b4   : >> { %3029 = vmatpush3.bf16.msra.mxu0 %v3454_v45  ;;  %3044 = vmatprep.mubr.msk.bf16.mxu0 %vm4143_vm0, %v4142_v46  ;;  %v3460_v53 = vld [vmem:[#allocation6 + $0x30] sm:$0xff]   ;;  %s892_s18 = scalar_lea.vmem %s4658_s28, %s2855_s20 [#allocation3]  ;;  %v3461_v54 = vld [vmem:[#allocation6 + $0x38] sm:$0xff]   ;;  %v2856_v58 = vld [vmem:[#allocation8] ss:$0 sm:$0xff]  ;;  %vm1114_vm2 = vcmask 130048   ;;  %s4144_s23 = smov 96  }
 0x2b5   : >> { %3030 = vmatprep.subr.bf16.mxu0 %v4142_v46  ;;  %3050 = vmatprep.mubr.msk.bf16.mxu1 %vm4143_vm0, %v4142_v46  ;;  %v4732_v55 = vld [vmem:[%s892_s18] sm:$0xff]  ;;  %v4734_v56 = vld [vmem:[%s892_s18 + $0x10] sm:$0xff]  ;;  %s4145_s0 = smov 64   ;;  %s4146_s15 = smov 32   ;;  %vm1909_vm3 = vcmask 523264   ;;  %vm1914_vm4 = vcmask 785408  }
 0x2b6   : >> { %3049 = vmatpush3.bf16.xpose.msra.mxu1 %v1026_v48  ;;  %v2943_v57 = vpack.c.bf16 %v4734_v56, %v4732_v55  ;;  %s2080_s26 = scalar_lea.vmem [#allocation2], %s2855_s20  ;;  %s890_s24 = sadd.s32 1, %s4098_s24  }
 0x2b7   : >> { %3054 = vmatprep.subr.bf16.mxu1 %v4142_v46  ;;  %p887_p7 = scmp.ge.s32.totalorder %s890_s24, 2  }
 0x2b8   : >> { %3031 = vmatpush3.bf16.msra.mxu0 %v3455_v47  ;;  %s4928_s1 = smov (%p887_p7), 0  }
 0x2b9   : >> { %3032 = vmatprep.subr.bf16.mxu0 %v4142_v46 }
 0x2bc   : >> { %3033 = vmatpush3.bf16.msra.mxu0 %v3456_v49 }
 0x2bd   : >> { %3034 = vmatprep.subr.bf16.mxu0 %v4142_v46 }
 0x2c0   : >> { %3035 = vmatpush3.bf16.msra.mxu0 %v3457_v50 }
 0x2c1   : >> { %3036 = vmatprep.subr.bf16.mxu0 %v4142_v46 }
 0x2c4   : >> { %3037 = vmatpush3.bf16.msra.mxu0 %v3458_v51 }
 0x2c5   : >> { %3038 = vmatprep.subr.bf16.mxu0 %v4142_v46 }
 0x2c8   : >> { %3039 = vmatpush3.bf16.msra.mxu0 %v3459_v52 }
 0x2c9   : >> { %3040 = vmatprep.subr.bf16.mxu0 %v4142_v46 }
 0x2cc   : >> { %3041 = vmatpush3.bf16.msra.mxu0 %v3460_v53 }
 0x2cd   : >> { %3042 = vmatprep.subr.bf16.mxu0 %v4142_v46 }
 0x2d0   : >> { %3043 = vmatpush3.bf16.msra.mxu0 %v3461_v54 }
 0x2d1   : >> { %3096 = vmatprep.subr.bf16.mxu0 %v4142_v46 }
 0x2d3   : >> { %3045 = vmatmul.mubr.bf16.vlgmr.msra.gmra.mrb[0].mxu0 %v2943_v57 }
 0x2d4   : >> { %3098 = vmatprep.mubr.msk.bf16.mxu0 %vm4143_vm0, %v4142_v46 }
 0x3a6   : >> { %v1008_v59 = vpop.f32.mrb[0].mxu0 }
 0x3a7   : >> { %v1009_v60 = vadd.f32 %v2856_v58, %v1008_v59  ;;  %v3046_v61 = vpop.f32.mrb[1].mxu0 }
 0x3a8   : >> { %v1011_v62 = vpop.f32.mrb[2].mxu0 }
 0x3a9   : >> { %v4742_v63 = vpack.c.bf16 %v1009_v60, %v1009_v60  ;;  %v3047_v0 = vpop.f32.mrb[3].mxu0  ;;  %v1012_v2 = vadd.f32 %v2856_v58, %v1011_v62 }
 0x3ab   : >> { %3051 = vmatmul.mubr.msk.bf16.vlgmr.msra.gmra.mrb[0].mxu1 %vm1021_vm1, %v4742_v63  ;;  %v4751_v3 = vpack.c.bf16 %v1012_v2, %v1012_v2 }
 0x3ac   : >> { %3055 = vmatpush3.bf16.xpose.msra.mxu1 %v1072_v1  ;;  %3056 = vmatprep.mubr.msk.bf16.mxu1 %vm4143_vm0, %v4142_v46 }
 0x3ad   : >> { %3060 = vmatprep.subr.bf16.mxu1 %v4142_v46 }
 0x3b3   : >> { %3057 = vmatmul.mubr.msk.bf16.vlgmr.msra.gmra.mrb[4].mxu1 %vm1021_vm1, %v4751_v3 }
 0x3b4   : >> { %3061 = vmatpush3.bf16.msra.mxu1 %v4700_v43  ;;  %3062 = vmatprep.mubr.msk.bf16.mxu1 %vm4143_vm0, %v4142_v46 }
 0x3b5   : >> { %3066 = vmatprep.subr.bf16.mxu1 %v4142_v46 }
 0x47e   : >> { %v1062_v4 = vpop.f32.mrb[0].mxu1 }
 0x47f   : >> { %v3052_v5 = vpop.f32.mrb[1].mxu1  ;;  %v1115_v6 = vsel %vm1114_vm2, %v1062_v4, -inf }
 0x480   : >> { %1116 = vmax.xlane.f32.xlu0 %v1115_v6  ;;  %v1065_v7 = vpop.f32.mrb[2].mxu1 }
 0x481   : >> { %v3053_v8 = vpop.f32.mrb[3].mxu1 }
 0x486   : >> { %v1108_v9 = vpop.f32.mrb[4].mxu1 }
 0x487   : >> { %v3058_v10 = vpop.f32.mrb[5].mxu1  ;;  %v1118_v11 = vsel %vm1114_vm2, %v1108_v9, -inf }
 0x488   : >> { %1119 = vmax.xlane.f32.xlu0 %v1118_v11  ;;  %v1111_v12 = vpop.f32.mrb[6].mxu1 }
 0x489   : >> { %v3059_v13 = vpop.f32.mrb[7].mxu1 }
 0x49e   : >> { %1230 = vrot.lane.b32.xlu0 %v4696_v41, %s4144_s23 }
 0x50d   : >> { %v1117_v14 = vpop.xlane.xlu0 %1116 }
 0x50e   : >> { %v1121_v15 = vsub.f32 %v1062_v4, %v1117_v14 }
 0x510   : >> { %v1123_v16 = vmul.f32 1.442695, %v1121_v15 }
 0x512   : >> { %3470 = vpow2.f32 %v1123_v16 }
 0x515   : >> { %v1120_v17 = vpop.xlane.xlu0 %1119 }
 0x516   : >> { %v1122_v18 = vsub.f32 %v1108_v9, %v1120_v17 }
 0x518   : >> { %v1125_v19 = vmul.f32 1.442695, %v1122_v18 }
 0x519   : >> { %v1231_v31 = vpop.permute.xlu0 %1230 }
 0x51a   : >> { %3472 = vpow2.f32 %v1125_v19  ;;  %v1236_v33 = vsel %vm1021_vm1, %v1231_v31, 0 }
 0x51c   : >> { %v3471_v20 = vpop.eup %3470 }
 0x51d   : >> { %v1127_v21 = vsel %vm1114_vm2, %v3471_v20, 0.0 }
 0x51e   : >> { %1128 = vadd.xlane.f32.xlu1 %v1127_v21 }
 0x524   : >> { %v3473_v22 = vpop.eup %3472 }
 0x525   : >> { %v1130_v23 = vsel %vm1114_vm2, %v3473_v22, 0.0 }
 0x526   : >> { %1131 = vadd.xlane.f32.xlu1 %v1130_v23 }
 0x537   : >> { %1227 = vrot.lane.b32.xlu1 %v4742_v63, %s4144_s23 }
 0x53b   : >> { %1281 = vrot.lane.b32.xlu1 %v4698_v42, %s4144_s23 }
 0x53f   : >> { %1278 = vrot.lane.b32.xlu1 %v4751_v3, %s4144_s23 }
 0x5ab   : >> { %v1129_v24 = vpop.xlane.xlu1 %1128 }
 0x5ac   : >> { %3474 = vrcp.f32 %v1129_v24 }
 0x5b3   : >> { %v1132_v25 = vpop.xlane.xlu1 %1131 }
 0x5b4   : >> { %3476 = vrcp.f32 %v1132_v25 }
 0x5b6   : >> { %v3475_v26 = vpop.eup %3474 }
 0x5b7   : >> { %v1135_v27 = vmul.f32 %v3475_v26, %v3471_v20  ;;  %v1228_v34 = vpop.permute.xlu1 %1227 }
 0x5b9   : >> { %v1137_v28 = vpack.c.bf16 %v1135_v27, %v1135_v27 }
 0x5bb   : >> { %3063 = vmatmul.mubr.msk.bf16.vlgmr.msra.gmra.mrb[8].mxu1 %vm1114_vm2, %v1137_v28  ;;  %v1282_v35 = vpop.permute.xlu1 %1281 }
 0x5bc   : >> { %3067 = vmatpush3.bf16.msra.mxu1 %v4702_v44  ;;  %3068 = vmatprep.mubr.msk.bf16.mxu1 %vm4143_vm0, %v4142_v46  ;;  %v1287_v36 = vsel %vm1021_vm1, %v1282_v35, 0 }
 0x5bd   : >> { %3072 = vmatprep.subr.bf16.mxu1 %v4142_v46 }
 0x5be   : >> { %v3477_v29 = vpop.eup %3476 }
 0x5bf   : >> { %v1136_v30 = vmul.f32 %v3477_v29, %v3473_v22  ;;  %v1279_v37 = vpop.permute.xlu1 %1278 }
 0x5c1   : >> { %v1138_v32 = vpack.c.bf16 %v1136_v30, %v1136_v30 }
 0x5c3   : >> { %3069 = vmatmul.mubr.msk.bf16.vlgmr.msra.gmra.mrb[12].mxu1 %vm1114_vm2, %v1138_v32 }
 0x5c4   : >> { %3074 = vmatprep.mubr.msk.bf16.mxu1 %vm4143_vm0, %v4142_v46 }
 0x5c5   : >> { %3073 = vmatpush3.bf16.xpose.msra.mxu1 %v1236_v33 }
 0x5c6   : >> { %3078 = vmatprep.subr.bf16.mxu1 %v4142_v46 }
 0x5cc   : >> { %3075 = vmatmul.mubr.msk.bf16.vlgmr.msra.gmra.mrb[16].mxu1 %vm1021_vm1, %v1228_v34 }
 0x5cd   : >> { %3079 = vmatpush3.bf16.xpose.msra.mxu1 %v1287_v36  ;;  %3080 = vmatprep.mubr.msk.bf16.mxu1 %vm4143_vm0, %v4142_v46 }
 0x5ce   : >> { %3084 = vmatprep.subr.bf16.mxu1 %v4142_v46 }
 0x5d4   : >> { %3081 = vmatmul.mubr.msk.bf16.vlgmr.msra.gmra.mrb[20].mxu1 %vm1021_vm1, %v1279_v37 }
 0x5d5   : >> { %3086 = vmatprep.mubr.msk.bf16.mxu1 %vm4143_vm0, %v4142_v46 }
 0x68e   : >> { %v4789_v38 = vpop.f32.mrb[8].mxu1 }
 0x68f   : >> { %v3064_v39 = vpop.f32.mrb[9].mxu1 }
 0x690   : >> { %v1179_v40 = vpop.f32.mrb[10].mxu1 }
 0x691   : >> { %v3065_v45 = vpop.f32.mrb[11].mxu1 }
 0x696   : >> { %v4791_v47 = vpop.f32.mrb[12].mxu1 }
 0x697   : >> { %v3070_v48 = vpop.f32.mrb[13].mxu1 }
 0x698   : >> { %v1222_v49 = vpop.f32.mrb[14].mxu1 }
 0x699   : >> { %v3071_v50 = vpop.f32.mrb[15].mxu1 }
 0x69f   : >> { %v1272_v51 = vpop.f32.mrb[16].mxu1 }
 0x6a0   : >> { %v3076_v52 = vpop.f32.mrb[17].mxu1  ;;  %v1329_v53 = vsel %vm1114_vm2, %v1272_v51, -inf }
 0x6a1   : >> { %1330 = vmax.xlane.f32.xlu0 %v1329_v53  ;;  %v1275_v54 = vpop.f32.mrb[18].mxu1 }
 0x6a2   : >> { %v3077_v57 = vpop.f32.mrb[19].mxu1 }
 0x6a7   : >> { %v1323_v58 = vpop.f32.mrb[20].mxu1 }
 0x6a8   : >> { %v3082_v59 = vpop.f32.mrb[21].mxu1  ;;  %v1332_v60 = vsel %vm1114_vm2, %v1323_v58, -inf }
 0x6a9   : >> { %1333 = vmax.xlane.f32.xlu1 %v1332_v60  ;;  %v1326_v61 = vpop.f32.mrb[22].mxu1 }
 0x6aa   : >> { %v3083_v62 = vpop.f32.mrb[23].mxu1 }
 0x6ba   : >> { %1401 = vrot.lane.b32.xlu1 %v4702_v44, %s4144_s23 }
 0x6be   : >> { %1451 = vrot.lane.b32.xlu1 %v4696_v41, %s4145_s0 }
 0x6c2   : >> { %1501 = vrot.lane.b32.xlu1 %v4698_v42, %s4145_s0 }
 0x6c6   : >> { %1499 = vrot.lane.b32.xlu1 %v4751_v3, %s4145_s0 }
 0x72e   : >> { %v1331_v0 = vpop.xlane.xlu0 %1330 }
 0x72f   : >> { %v1335_v1 = vsub.f32 %v1272_v51, %v1331_v0 }
 0x731   : >> { %v1337_v2 = vmul.f32 1.442695, %v1335_v1 }
 0x733   : >> { %3478 = vpow2.f32 %v1337_v2 }
 0x736   : >> { %v1334_v4 = vpop.xlane.xlu1 %1333 }
 0x737   : >> { %v1336_v5 = vsub.f32 %v1323_v58, %v1334_v4 }
 0x739   : >> { %v1339_v6 = vmul.f32 1.442695, %v1336_v5 }
 0x73a   : >> { %v1402_v7 = vpop.permute.xlu1 %1401 }
 0x73b   : >> { %3480 = vpow2.f32 %v1339_v6 }
 0x73d   : >> { %v3479_v8 = vpop.eup %3478 }
 0x73e   : >> { %v1452_v9 = vpop.permute.xlu1 %1451  ;;  %v1341_v10 = vsel %vm1114_vm2, %v3479_v8, 0.0 }
 0x73f   : >> { %v1457_v11 = vsel %vm1021_vm1, %v1452_v9, 0  ;;  %1342 = vadd.xlane.f32.xlu0 %v1341_v10 }
 0x740   : >> { %3097 = vmatpush3.bf16.xpose.msra.mxu0 %v1457_v11 }
 0x741   : >> { %3108 = vmatprep.subr.bf16.mxu0 %v4142_v46 }
 0x742   : >> { %v1502_v23 = vpop.permute.xlu1 %1501 }
 0x743   : >> { %v1507_v25 = vsel %vm1021_vm1, %v1502_v23, 0 }
 0x745   : >> { %v3481_v12 = vpop.eup %3480 }
 0x746   : >> { %v1344_v13 = vsel %vm1114_vm2, %v3481_v12, 0.0  ;;  %v1500_v26 = vpop.permute.xlu1 %1499 }
 0x747   : >> { %1345 = vadd.xlane.f32.xlu0 %v1344_v13 }
 0x75d   : >> { %1354 = vrot.lane.b32.xlu0 %v4700_v43, %s4144_s23 }
 0x761   : >> { %1449 = vrot.lane.b32.xlu0 %v4742_v63, %s4145_s0 }
 0x7cc   : >> { %v1343_v14 = vpop.xlane.xlu0 %1342 }
 0x7cd   : >> { %3482 = vrcp.f32 %v1343_v14 }
 0x7d4   : >> { %v1346_v15 = vpop.xlane.xlu0 %1345 }
 0x7d5   : >> { %3484 = vrcp.f32 %v1346_v15 }
 0x7d7   : >> { %v3483_v16 = vpop.eup %3482 }
 0x7d8   : >> { %v1349_v17 = vmul.f32 %v3483_v16, %v3479_v8  ;;  %v1355_v18 = vpop.permute.xlu0 %1354 }
 0x7d9   : >> { %3085 = vmatpush3.bf16.msra.mxu1 %v1355_v18 }
 0x7da   : >> { %v1351_v19 = vpack.c.bf16 %v1349_v17, %v1349_v17  ;;  %3090 = vmatprep.subr.bf16.mxu1 %v4142_v46 }
 0x7dc   : >> { %3087 = vmatmul.mubr.msk.bf16.vlgmr.msra.gmra.mrb[24].mxu1 %vm1114_vm2, %v1351_v19  ;;  %v1450_v20 = vpop.permute.xlu0 %1449 }
 0x7dd   : >> { %3091 = vmatpush3.bf16.msra.mxu1 %v1402_v7  ;;  %3099 = vmatmul.mubr.msk.bf16.vlgmr.msra.gmra.mrb[4].mxu0 %vm1021_vm1, %v1450_v20 }
 0x7de   : >> { %3092 = vmatprep.mubr.msk.bf16.mxu1 %vm4143_vm0, %v4142_v46  ;;  %3102 = vmatprep.subr.bf16.mxu1 %v4142_v46 }
 0x7df   : >> { %v3485_v21 = vpop.eup %3484  ;;  %3110 = vmatprep.mubr.msk.bf16.mxu0 %vm4143_vm0, %v4142_v46 }
 0x7e0   : >> { %v1350_v22 = vmul.f32 %v3485_v21, %v3481_v12 }
 0x7e2   : >> { %v1352_v24 = vpack.c.bf16 %v1350_v22, %v1350_v22 }
 0x7e4   : >> { %3093 = vmatmul.mubr.msk.bf16.vlgmr.msra.gmra.mrb[28].mxu1 %vm1114_vm2, %v1352_v24 }
 0x7e5   : >> { %3104 = vmatprep.mubr.msk.bf16.mxu1 %vm4143_vm0, %v4142_v46 }
 0x7e6   : >> { %3103 = vmatpush3.bf16.xpose.msra.mxu1 %v1507_v25 }
 0x7e7   : >> { %3114 = vmatprep.subr.bf16.mxu1 %v4142_v46 }
 0x7ed   : >> { %3105 = vmatmul.mubr.msk.bf16.vlgmr.msra.gmra.mrb[32].mxu1 %vm1021_vm1, %v1500_v26 }
 0x7ee   : >> { %3116 = vmatprep.mubr.msk.bf16.mxu1 %vm4143_vm0, %v4142_v46 }
 0x8af   : >> { %v4827_v27 = vpop.f32.mrb[24].mxu1 }
 0x8b0   : >> { %v3088_v28 = vpop.f32.mrb[25].mxu1  ;;  %v1493_v29 = vpop.f32.mrb[4].mxu0 }
 0x8b1   : >> { %v1397_v30 = vpop.f32.mrb[26].mxu1  ;;  %v3100_v31 = vpop.f32.mrb[5].mxu0  ;;  %v1549_v32 = vsel %vm1114_vm2, %v1493_v29, -inf }
 0x8b2   : >> { %v3089_v33 = vpop.f32.mrb[27].mxu1  ;;  %1550 = vmax.xlane.f32.xlu0 %v1549_v32  ;;  %v1496_v34 = vpop.f32.mrb[6].mxu0 }
 0x8b3   : >> { %v3101_v35 = vpop.f32.mrb[7].mxu0 }
 0x8b4   : >> { %v1447_v35 = vpack.c.bf16 %v4827_v27, %v4827_v27 }
 0x8b7   : >> { %v4830_v36 = vpop.f32.mrb[28].mxu1 }
 0x8b8   : >> { %v3094_v37 = vpop.f32.mrb[29].mxu1 }
 0x8b9   : >> { %v1444_v39 = vpop.f32.mrb[30].mxu1  ;;  %v1448_v37 = vpack.c.bf16 %v4830_v36, %v4830_v36 }
 0x8ba   : >> { %v3095_v40 = vpop.f32.mrb[31].mxu1 }
 0x8c0   : >> { %v1543_v45 = vpop.f32.mrb[32].mxu1 }
 0x8c1   : >> { %v3106_v48 = vpop.f32.mrb[33].mxu1  ;;  %v1552_v49 = vsel %vm1114_vm2, %v1543_v45, -inf }
 0x8c2   : >> { %1553 = vmax.xlane.f32.xlu1 %v1552_v49  ;;  %v1546_v50 = vpop.f32.mrb[34].mxu1 }
 0x8c3   : >> { %v3107_v51 = vpop.f32.mrb[35].mxu1 }
 0x8d3   : >> { %1619 = vrot.lane.b32.xlu1 %v4702_v44, %s4145_s0 }
 0x8d7   : >> { %1669 = vrot.lane.b32.xlu1 %v4696_v41, %s4146_s15  ;;  %v4926_v41 = vmov (%p887_p7), 0.0  }
 0x8db   : >> { %1719 = vrot.lane.b32.xlu1 %v4698_v42, %s4146_s15 }
 0x8df   : >> { %1717 = vrot.lane.b32.xlu1 %v4751_v3, %s4146_s15 }
 0x93f   : >> { %v1551_v52 = vpop.xlane.xlu0 %1550 }
 0x940   : >> { %v1555_v53 = vsub.f32 %v1493_v29, %v1551_v52 }
 0x942   : >> { %v1557_v54 = vmul.f32 1.442695, %v1555_v53 }
 0x944   : >> { %3486 = vpow2.f32 %v1557_v54 }
 0x94e   : >> { %v3487_v57 = vpop.eup %3486 }
 0x94f   : >> { %v1554_v58 = vpop.xlane.xlu1 %1553  ;;  %v1561_v59 = vsel %vm1114_vm2, %v3487_v57, 0.0 }
 0x950   : >> { %v1556_v60 = vsub.f32 %v1543_v45, %v1554_v58  ;;  %1562 = vadd.xlane.f32.xlu0 %v1561_v59 }
 0x952   : >> { %v1559_v61 = vmul.f32 1.442695, %v1556_v60 }
 0x953   : >> { %v1620_v62 = vpop.permute.xlu1 %1619 }
 0x954   : >> { %3488 = vpow2.f32 %v1559_v61  ;;  %3115 = vmatpush3.bf16.msra.mxu1 %v1620_v62 }
 0x955   : >> { %3126 = vmatprep.subr.bf16.mxu1 %v4142_v46 }
 0x957   : >> { %v1670_v8 = vpop.permute.xlu1 %1669 }
 0x95b   : >> { %v1720_v11 = vpop.permute.xlu1 %1719 }
 0x95c   : >> { %v1725_v12 = vsel %vm1021_vm1, %v1720_v11, 0 }
 0x95e   : >> { %v3489_v0 = vpop.eup %3488 }
 0x95f   : >> { %v1564_v1 = vsel %vm1114_vm2, %v3489_v0, 0.0  ;;  %v1718_v15 = vpop.permute.xlu1 %1717 }
 0x960   : >> { %1565 = vadd.xlane.f32.xlu0 %v1564_v1 }
 0x976   : >> { %1573 = vrot.lane.b32.xlu0 %v4700_v43, %s4145_s0 }
 0x97a   : >> { %1667 = vrot.lane.b32.xlu0 %v4742_v63, %s4146_s15  ;;  %v1675_v63 = vsel %vm1021_vm1, %v1670_v8, 0  ;;  %v3466_v8 = vld [vmem:[#allocation12 + $0x20] sm:$0xff]  }
 0x9dd   : >> { %v1563_v3 = vpop.xlane.xlu0 %1562 }
 0x9de   : >> { %3490 = vrcp.f32 %v1563_v3 }
 0x9e8   : >> { %v3491_v2 = vpop.eup %3490 }
 0x9e9   : >> { %v1569_v5 = vmul.f32 %v3491_v2, %v3487_v57 }
 0x9eb   : >> { %v1571_v7 = vpack.c.bf16 %v1569_v5, %v1569_v5  ;;  %v3463_v5 = vld [vmem:[#allocation12 + $0x8] sm:$0xff]  }
 0x9ed   : >> { %v1566_v4 = vpop.xlane.xlu0 %1565 }
 0x9ee   : >> { %3492 = vrcp.f32 %v1566_v4  ;;  %v3462_v4 = vld [vmem:[#allocation12] sm:$0xff]  }
 0x9f1   : >> { %v1574_v6 = vpop.permute.xlu0 %1573 }
 0x9f2   : >> { %3109 = vmatpush3.bf16.msra.mxu0 %v1574_v6  ;;  %v3464_v6 = vld [vmem:[#allocation12 + $0x10] sm:$0xff]  }
 0x9f3   : >> { %3120 = vmatprep.subr.bf16.mxu0 %v4142_v46 }
 0x9f5   : >> { %3111 = vmatmul.mubr.msk.bf16.vlgmr.msra.gmra.mrb[8].mxu0 %vm1114_vm2, %v1571_v7  ;;  %v1668_v14 = vpop.permute.xlu0 %1667  ;;  %v3465_v7 = vld [vmem:[#allocation12 + $0x18] sm:$0xff]  }
 0x9f6   : >> { %3122 = vmatprep.mubr.msk.bf16.mxu0 %vm4143_vm0, %v4142_v46 }
 0x9f8   : >> { %v3493_v9 = vpop.eup %3492 }
 0x9f9   : >> { %v1570_v10 = vmul.f32 %v3493_v9, %v3489_v0  ;;  %v3467_v9 = vld [vmem:[#allocation12 + $0x28] sm:$0xff]  }
 0x9fb   : >> { %3121 = vmatpush3.bf16.xpose.msra.mxu0 %v1675_v63  ;;  %v1572_v13 = vpack.c.bf16 %v1570_v10, %v1570_v10  ;;  %v3468_v63 = vld [vmem:[#allocation12 + $0x30] sm:$0xff]   ;;  %v3469_v10 = vld [vmem:[#allocation12 + $0x38] sm:$0xff]  }
 0x9fc   : >> { %3132 = vmatprep.subr.bf16.mxu0 %v4142_v46 }
 0x9fd   : >> { %3117 = vmatmul.mubr.msk.bf16.vlgmr.msra.gmra.mrb[36].mxu1 %vm1114_vm2, %v1572_v13 }
 0x9fe   : >> { %3127 = vmatpush3.bf16.xpose.msra.mxu1 %v1725_v12  ;;  %3128 = vmatprep.mubr.msk.bf16.mxu1 %vm4143_vm0, %v4142_v46 }
 0x9ff   : >> { %3138 = vmatprep.subr.bf16.mxu1 %v4142_v46 }
 0xa02   : >> { %3123 = vmatmul.mubr.msk.bf16.vlgmr.msra.gmra.mrb[12].mxu0 %vm1021_vm1, %v1668_v14 }
 0xa03   : >> { %3134 = vmatprep.mubr.msk.bf16.mxu0 %vm4143_vm0, %v4142_v46 }
 0xa05   : >> { %3129 = vmatmul.mubr.msk.bf16.vlgmr.msra.gmra.mrb[40].mxu1 %vm1021_vm1, %v1718_v15 }
 0xa06   : >> { %3140 = vmatprep.mubr.msk.bf16.mxu1 %vm4143_vm0, %v4142_v46 }
 0xac8   : >> { %v1613_v16 = vpop.f32.mrb[8].mxu0 }
 0xac9   : >> { %v3112_v17 = vpop.f32.mrb[9].mxu0  ;;  %v1665_v57 = vpack.c.bf16 %v1613_v16, %v1613_v16 }
 0xaca   : >> { %v1616_v18 = vpop.f32.mrb[10].mxu0 }
 0xacb   : >> { %v3113_v19 = vpop.f32.mrb[11].mxu0 }
 0xad0   : >> { %v1659_v20 = vpop.f32.mrb[36].mxu1 }
 0xad1   : >> { %v3118_v21 = vpop.f32.mrb[37].mxu1  ;;  %v1666_v39 = vpack.c.bf16 %v1659_v20, %v1659_v20 }
 0xad2   : >> { %v1662_v22 = vpop.f32.mrb[38].mxu1 }
 0xad3   : >> { %v3119_v23 = vpop.f32.mrb[39].mxu1 }
 0xad5   : >> { %v1711_v24 = vpop.f32.mrb[12].mxu0 }
 0xad6   : >> { %v3124_v25 = vpop.f32.mrb[13].mxu0  ;;  %v1767_v26 = vsel %vm1114_vm2, %v1711_v24, -inf }
 0xad7   : >> { %1768 = vmax.xlane.f32.xlu0 %v1767_v26  ;;  %v1714_v28 = vpop.f32.mrb[14].mxu0  ;;  %v1226_v25 = vpack.c.bf16 %v4791_v47, %v4791_v47 }
 0xad8   : >> { %v3125_v29 = vpop.f32.mrb[15].mxu0  ;;  %v1761_v30 = vpop.f32.mrb[40].mxu1 }
 0xad9   : >> { %v3130_v31 = vpop.f32.mrb[41].mxu1  ;;  %v1770_v32 = vsel %vm1114_vm2, %v1761_v30, -inf }
 0xada   : >> { %1771 = vmax.xlane.f32.xlu1 %v1770_v32  ;;  %v1764_v33 = vpop.f32.mrb[42].mxu1 }
 0xadb   : >> { %v3131_v34 = vpop.f32.mrb[43].mxu1 }
 0xaeb   : >> { %1837 = vrot.lane.b32.xlu1 %v4702_v44, %s4146_s15 }
 0xaef   : >> { %1887 = vrot.lane.b32.xlu1 %v1447_v35, %s4146_s15 }
 0xaf3   : >> { %1889 = vrot.lane.b32.xlu1 %v1448_v37, %s4146_s15  ;;  %v2884_v37 = vld [vmem:[#allocation14] ss:$0 sm:$0xff] }
 0xaf7   : >> { %1895 = vrot.lane.b32.xlu1 %v1666_v39, %s4145_s0 }
 0xb64   : >> { %v1769_v40 = vpop.xlane.xlu0 %1768 }
 0xb65   : >> { %v1773_v45 = vsub.f32 %v1711_v24, %v1769_v40  ;;  %v1225_v24 = vpack.c.bf16 %v4789_v38, %v4789_v38 }
 0xb67   : >> { %v1775_v48 = vmul.f32 1.442695, %v1773_v45  ;;  %v1772_v49 = vpop.xlane.xlu1 %1771 }
 0xb68   : >> { %v1774_v50 = vsub.f32 %v1761_v30, %v1772_v49 }
 0xb69   : >> { %3494 = vpow2.f32 %v1775_v48 }
 0xb6a   : >> { %v1777_v51 = vmul.f32 1.442695, %v1774_v50 }
 0xb6b   : >> { %v1838_v52 = vpop.permute.xlu1 %1837 }
 0xb6c   : >> { %3496 = vpow2.f32 %v1777_v51  ;;  %3139 = vmatpush3.bf16.msra.mxu1 %v1838_v52 }
 0xb6f   : >> { %v1888_v21 = vpop.permute.xlu1 %1887 }
 0xb70   : >> { %v1905_v28 = vsel %vm1021_vm1, %v1225_v24, %v1888_v21 }
 0xb73   : >> { %v3495_v27 = vpop.eup %3494  ;;  %v1890_v22 = vpop.permute.xlu1 %1889 }
 0xb74   : >> { %v1779_v53 = vsel %vm1114_vm2, %v3495_v27, 0.0  ;;  %v1908_v29 = vsel %vm1021_vm1, %v1226_v25, %v1890_v22 }
 0xb75   : >> { %1780 = vadd.xlane.f32.xlu0 %v1779_v53 }
 0xb76   : >> { %v3497_v36 = vpop.eup %3496 }
 0xb77   : >> { %v1782_v54 = vsel %vm1114_vm2, %v3497_v36, 0.0 }
 0xb79   : >> { %1783 = vadd.xlane.f32.xlu0 %v1782_v54 }
 0xb8f   : >> { %1791 = vrot.lane.b32.xlu0 %v4700_v43, %s4146_s15 }
 0xb93   : >> { %1893 = vrot.lane.b32.xlu0 %v1665_v57, %s4145_s0 }
 0xc02   : >> { %v1781_v58 = vpop.xlane.xlu0 %1780 }
 0xc03   : >> { %3498 = vrcp.f32 %v1781_v58 }
 0xc06   : >> { %v1784_v59 = vpop.xlane.xlu0 %1783 }
 0xc07   : >> { %3500 = vrcp.f32 %v1784_v59 }
 0xc0a   : >> { %v1792_v60 = vpop.permute.xlu0 %1791 }
 0xc0b   : >> { %3133 = vmatpush3.bf16.msra.mxu0 %v1792_v60 }
 0xc0c   : >> { %3144 = vmatprep.subr.bf16.mxu0 %v4142_v46 }
 0xc0d   : >> { %v3499_v61 = vpop.eup %3498 }
 0xc0e   : >> { %v1787_v62 = vmul.f32 %v3499_v61, %v3495_v27  ;;  %v1894_v23 = vpop.permute.xlu0 %1893 }
 0xc0f   : >> { %v1911_v31 = vsel %vm1909_vm3, %v1905_v28, %v1894_v23 }
 0xc10   : >> { %v1789_v0 = vpack.c.bf16 %v1787_v62, %v1787_v62 }
 0xc11   : >> { %v3501_v1 = vpop.eup %3500 }
 0xc12   : >> { %v1788_v3 = vmul.f32 %v3501_v1, %v3497_v36  ;;  %3135 = vmatmul.mubr.msk.bf16.vlgmr.msra.gmra.mrb[16].mxu0 %vm1114_vm2, %v1789_v0  ;;  %v2894_v1 = vld [vmem:[#allocation15] ss:$0 sm:$0xff] }
 0xc13   : >> { %3160 = vmatprep.mubr.msk.bf16.mxu0 %vm4143_vm0, %v4142_v46  ;;  %3145 = vmatpush3.bf16.msra.mxu0 %v3462_v4 }
 0xc14   : >> { %v1790_v2 = vpack.c.bf16 %v1788_v3, %v1788_v3  ;;  %3146 = vmatprep.subr.bf16.mxu0 %v4142_v46 }
 0xc16   : >> { %3141 = vmatmul.mubr.msk.bf16.vlgmr.msra.gmra.mrb[44].mxu1 %vm1114_vm2, %v1790_v2  ;;  %v2895_v2 = vld [vmem:[#allocation17] ss:$0 sm:$0xff] }
 0xc17   : >> { %3147 = vmatpush3.bf16.msra.mxu0 %v3463_v5 }
 0xc18   : >> { %3148 = vmatprep.subr.bf16.mxu0 %v4142_v46 }
 0xc1b   : >> { %3149 = vmatpush3.bf16.msra.mxu0 %v3464_v6 }
 0xc1c   : >> { %3150 = vmatprep.subr.bf16.mxu0 %v4142_v46 }
 0xc1f   : >> { %3151 = vmatpush3.bf16.msra.mxu0 %v3465_v7 }
 0xc20   : >> { %3152 = vmatprep.subr.bf16.mxu0 %v4142_v46 }
 0xc23   : >> { %3153 = vmatpush3.bf16.msra.mxu0 %v3466_v8 }
 0xc24   : >> { %3154 = vmatprep.subr.bf16.mxu0 %v4142_v46 }
 0xc27   : >> { %3155 = vmatpush3.bf16.msra.mxu0 %v3467_v9 }
 0xc28   : >> { %3156 = vmatprep.subr.bf16.mxu0 %v4142_v46 }
 0xc2b   : >> { %3157 = vmatpush3.bf16.msra.mxu0 %v3468_v63 }
 0xc2c   : >> { %3158 = vmatprep.subr.bf16.mxu0 %v4142_v46  ;;  %v1896_v46 = vpop.permute.xlu1 %1895 }
 0xc2d   : >> { %v1913_v30 = vsel %vm1909_vm3, %v1908_v29, %v1896_v46 }
 0xc2f   : >> { %3159 = vmatpush3.bf16.msra.mxu0 %v3469_v10 }
 0xce5   : >> { %v1831_v11 = vpop.f32.mrb[16].mxu0 }
 0xce6   : >> { %v1883_v12 = vpack.c.bf16 %v1831_v11, %v1831_v11  ;;  %v3136_v13 = vpop.f32.mrb[17].mxu0 }
 0xce7   : >> { %v1834_v14 = vpop.f32.mrb[18].mxu0 }
 0xce8   : >> { %1899 = vrot.lane.b32.xlu0 %v1883_v12, %s4144_s23  ;;  %v3137_v15 = vpop.f32.mrb[19].mxu0 }
 0xce9   : >> { %v1877_v16 = vpop.f32.mrb[44].mxu1  ;;  %v4920_v15 = vmov (%p887_p7), 0.0  }
 0xcea   : >> { %v1884_v17 = vpack.c.bf16 %v1877_v16, %v1877_v16  ;;  %v3142_v18 = vpop.f32.mrb[45].mxu1  ;;  %v4922_v16 = vmov (%p887_p7), 0.0  }
 0xceb   : >> { %v1880_v19 = vpop.f32.mrb[46].mxu1 }
 0xcec   : >> { %1901 = vrot.lane.b32.xlu1 %v1884_v17, %s4144_s23  ;;  %v3143_v20 = vpop.f32.mrb[47].mxu1  ;;  %v4924_v17 = vmov (%p887_p7), 0.0  }
 0xd5a   : >> { %v1900_v26 = vpop.permute.xlu0 %1899 }
 0xd5b   : >> { %v1916_v33 = vsel %vm1914_vm4, %v1911_v31, %v1900_v26 }
 0xd5e   : >> { %v1902_v32 = vpop.permute.xlu1 %1901 }
 0xd5f   : >> { %v1918_v34 = vsel %vm1914_vm4, %v1913_v30, %v1902_v32 }
 0xd60   : >> { %v2885_v35 = vcombine.low %v1916_v33, %v1918_v34 }
 0xd62   : >> { %3161 = vmatmul.mubr.bf16.vlgmr.msra.gmra.mrb[20].mxu0 %v2885_v35 }
 0xe35   : >> { %v2030_v39 = vpop.f32.mrb[20].mxu0 }
 0xe36   : >> { %v2031_v38 = vadd.f32 %v2884_v37, %v2030_v39  ;;  %v3162_v40 = vpop.f32.mrb[21].mxu0 }
 0xe37   : >> { %v2033_v45 = vpop.f32.mrb[22].mxu0 }
 0xe38   : >> { %v2034_v47 = vadd.f32 %v2884_v37, %v2033_v45  ;;  %2039 = vadd.xlane.f32.xlu0 %v2031_v38  ;;  %v3163_v48 = vpop.f32.mrb[23].mxu0 }
 0xe3a   : >> { %2041 = vadd.xlane.f32.xlu1 %v2034_v47 }
 0xec5   : >> { %v2040_v49 = vpop.xlane.xlu0 %2039 }
 0xec6   : >> { %v2044_v50 = vmul.f32 0.0078125, %v2040_v49 }
 0xec7   : >> { %v2042_v51 = vpop.xlane.xlu1 %2041 }
 0xec8   : >> { %v2046_v52 = vsub.f32 %v2031_v38, %v2044_v50  ;;  %v2045_v27 = vmul.f32 0.0078125, %v2042_v51 }
 0xeca   : >> { %v2047_v53 = vsub.f32 %v2034_v47, %v2045_v27  ;;  %v2048_v36 = vmul.f32 %v2046_v52, %v2046_v52 }
 0xecc   : >> { %2050 = vadd.xlane.f32.xlu0 %v2048_v36  ;;  %v2049_v54 = vmul.f32 %v2047_v53, %v2047_v53 }
 0xed0   : >> { %2052 = vadd.xlane.f32.xlu0 %v2049_v54 }
 0xf59   : >> { %v2051_v57 = vpop.xlane.xlu0 %2050 }
 0xf5a   : >> { %v2054_v58 = vmul.f32 0.0078125, %v2051_v57 }
 0xf5c   : >> { %v2056_v59 = vadd.f32 1e-05, %v2054_v58 }
 0xf5d   : >> { %v2053_v60 = vpop.xlane.xlu0 %2052 }
 0xf5e   : >> { %3502 = vrsqrt.f32 %v2056_v59  ;;  %v2055_v61 = vmul.f32 0.0078125, %v2053_v60 }
 0xf60   : >> { %v2057_v62 = vadd.f32 1e-05, %v2055_v61 }
 0xf62   : >> { %3504 = vrsqrt.f32 %v2057_v62 }
 0xf68   : >> { %v3503_v0 = vpop.eup %3502 }
 0xf69   : >> { %v2060_v3 = vmul.f32 %v3503_v0, %v2046_v52 }
 0xf6b   : >> { %v2068_v4 = vmul.f32 %v2894_v1, %v2060_v3 }
 0xf6c   : >> { %v3505_v5 = vpop.eup %3504 }
 0xf6d   : >> { %v2076_v6 = vadd.f32 %v2895_v2, %v2068_v4  ;;  %v2061_v7 = vmul.f32 %v3505_v5, %v2047_v53 }
 0xf6f   : >> { %v2078_v8 = vadd.f32 %v2076_v6, %v4732_v55  ;;  %v2069_v9 = vmul.f32 %v2894_v1, %v2061_v7  ;;  %889 = sbr.rel (!%p887_p7) target bundleno = 690 (0x2b2), region = 200 }
 0xf71   : >> { %2081 = vst [vmem:[%s2080_s26] sm:$0xff] %v2078_v8  ;;  %v2077_v63 = vadd.f32 %v2895_v2, %v2069_v9 }
 0xf73   : >> { %v2079_v10 = vadd.f32 %v2077_v63, %v4734_v56 }
 0xf75   : >> { %2082 = vst [vmem:[%s2080_s26 + $0x10] sm:$0xff] %v2079_v10 }
 0xf7c   : > { %v4908_v11 = vld [vmem:[#allocation2] sm:$0xff]  ;;  %v4910_v12 = vld [vmem:[#allocation2 + $0x8] sm:$0xff]  ;;  %v4912_v13 = vld [vmem:[#allocation2 + $0x10] sm:$0xff] }
 0xf7d   : > { %v4914_v55 = vld [vmem:[#allocation2 + $0x18] sm:$0xff]  ;;  %v2087_v14 = vpack.c.bf16 %v4910_v12, %v4908_v11 }
 0xf7e   : > { %v2088_v56 = vpack.c.bf16 %v4914_v55, %v4912_v13 }
 0xf7f LB: >> { %v4147_v42 = vmov 0   ;;  %s2946_s22 = sshll.u32 %s4118_s1, 7  ;;  %v2122_v53 = vlaneseq  ;;  %s2898_s2 = sshll.u32 %s4118_s1, 1  ;;  %s4118_s1 = sphi %s4928_s1, %s2094_s1   ;;  %v4114_v41 = vphi %v4926_v41, %v5149_v41   ;;  %v4110_v17 = vphi %v4924_v17, %v5148_v17   ;;  %v4106_v16 = vphi %v4922_v16, %v5147_v16   ;;  %v4102_v15 = vphi %v4920_v15, %v5146_v15  }
 0xf80   : >> { %2244 = vmatprep.mubr.bf16.mxu0 %v4147_v42  ;;  %s4946_s27 = scalar_lea.vmem [#allocation18], %s2946_s22  ;;  %s4957_s28 = scalar_lea.vmem [#allocation21], %s2946_s22 }
 0xf81   : >> { %v3506_v43 = vld [vmem:[%s4946_s27 + $0x4] ss:$8 sps:$4 sm:$0xff]   ;;  %v3508_v44 = vld [vmem:[%s4946_s27] ss:$8 sps:$4 sm:$0xff]   ;;  %v3509_v18 = vld [vmem:[%s4946_s27 + $0x14] ss:$8 sps:$4 sm:$0xff]  }
 0xf82   : >> { %2212 = vmatprep.subr.bf16.mxu0 %v3506_v43  ;;  %v3511_v19 = vld [vmem:[%s4946_s27 + $0x10] ss:$8 sps:$4 sm:$0xff]   ;;  %v3512_v20 = vld [vmem:[%s4946_s27 + $0x24] ss:$8 sps:$4 sm:$0xff]   ;;  %v3514_v21 = vld [vmem:[%s4946_s27 + $0x20] ss:$8 sps:$4 sm:$0xff]  }
 0xf83   : >> { %2213 = vmatpush1.bf16.msra.mxu0 %v3508_v44  ;;  %v3515_v22 = vld [vmem:[%s4946_s27 + $0x34] ss:$8 sps:$4 sm:$0xff]   ;;  %v3517_v23 = vld [vmem:[%s4946_s27 + $0x30] ss:$8 sps:$4 sm:$0xff]   ;;  %v3518_v46 = vld [vmem:[%s4946_s27 + $0x44] ss:$8 sps:$4 sm:$0xff]  }
 0xf84   : >> { %2214 = vmatprep.subr.bf16.mxu0 %v3509_v18  ;;  %v3530_v24 = vld [vmem:[%s4957_s28 + $0x40] sm:$0xff]   ;;  %v3532_v28 = vld [vmem:[%s4957_s28 + $0x48] sm:$0xff]   ;;  %v3534_v30 = vld [vmem:[%s4957_s28 + $0x50] sm:$0xff]   ;;  %v2123_v36 = vshrl.u32 %v2122_v53, 7  ;;  %s2119_s24 = scalar_lea.vmem [#allocation20], %s2898_s2  ;;  %s2094_s1 = sadd.s32 1, %s4118_s1  }
 0xf85   : >> { %v3531_v25 = vld [vmem:[%s4957_s28] sm:$0xff]   ;;  %3000 = vmatprep.subr.bf16.mxu1 %v3530_v24  ;;  %v3533_v29 = vld [vmem:[%s4957_s28 + $0x8] sm:$0xff]   ;;  %v3521_v31 = vld [vmem:[%s4946_s27 + $0x54] ss:$8 sps:$4 sm:$0xff]   ;;  %p2091_p9 = scmp.ge.s32.totalorder %s2094_s1, 2  }
 0xf86   : >> { %v3520_v26 = vld [vmem:[%s4946_s27 + $0x40] ss:$8 sps:$4 sm:$0xff]   ;;  %3001 = vmatpush3.bf16.msra.mxu1 %v3531_v25  ;;  %v3523_v32 = vld [vmem:[%s4946_s27 + $0x50] ss:$8 sps:$4 sm:$0xff]   ;;  %v3524_v35 = vld [vmem:[%s4946_s27 + $0x64] ss:$8 sps:$4 sm:$0xff]  }
 0xf87   : >> { %2215 = vmatpush1.bf16.msra.mxu0 %v3511_v19  ;;  %3002 = vmatprep.subr.bf16.mxu1 %v3532_v28  ;;  %v3535_v33 = vld [vmem:[%s4957_s28 + $0x10] sm:$0xff]   ;;  %v3536_v34 = vld [vmem:[%s4957_s28 + $0x58] sm:$0xff]   ;;  %v3526_v37 = vld [vmem:[%s4946_s27 + $0x60] ss:$8 sps:$4 sm:$0xff]   ;;  %v2124_v54 = vsub.s32 0, %v2123_v36  ;;  %v2128_v58 = vsub.s32 1, %v2123_v36 }
 0xf88   : >> { %2216 = vmatprep.subr.bf16.mxu0 %v3512_v20  ;;  %v3537_v39 = vld [vmem:[%s4957_s28 + $0x18] sm:$0xff]   ;;  %v3538_v38 = vld [vmem:[%s4957_s28 + $0x60] sm:$0xff]   ;;  %v3540_v48 = vld [vmem:[%s4957_s28 + $0x68] sm:$0xff]   ;;  %s5150_s20 = sld [smem:[#allocation40_spill]] (%p2091_p9)  ;;  %s2561_s23 = sshll.u32 (%p2091_p9), %s4706_s17, 4  ;;  %s5017_s23 = int_to_ptr.vmem [resolvable:$true] %s2561_s23 }
 0xf89   : >> { %v3527_v40 = vld [vmem:[%s4946_s27 + $0x74] ss:$8 sps:$4 sm:$0xff]   ;;  %v3539_v45 = vld [vmem:[%s4957_s28 + $0x20] sm:$0xff]   ;;  %v3529_v47 = vld [vmem:[%s4946_s27 + $0x70] ss:$8 sps:$4 sm:$0xff]   ;;  %s5151_s26 = sld [smem:[#allocation46_spill]] (%p2091_p9) }
 0xf8a   : >> { %3003 = vmatpush3.bf16.msra.mxu1 %v3533_v29  ;;  %v3541_v49 = vld [vmem:[%s4957_s28 + $0x28] sm:$0xff]   ;;  %v3542_v50 = vld [vmem:[%s4957_s28 + $0x70] sm:$0xff]   ;;  %v3544_v52 = vld [vmem:[%s4957_s28 + $0x78] sm:$0xff]   ;;  %s2547_s22 = scalar_lea.sflag (%p2091_p9), [#allocation5], %s4652_s19  ;;  %s3976_s27 = scalar_lea.vmem (%p2091_p9), %s5017_s23, 512 }
 0xf8b   : >> { %2217 = vmatpush1.bf16.msra.mxu0 %v3514_v21  ;;  %3004 = vmatprep.subr.bf16.mxu1 %v3534_v30  ;;  %v3543_v51 = vld [vmem:[%s4957_s28 + $0x30] sm:$0xff]   ;;  %v3545_v27 = vld [vmem:[%s4957_s28 + $0x38] sm:$0xff]   ;;  %v2120_v57 = vld [vmem:[%s2119_s24] sm:$0x3]  ;;  %p3977_p4 = scmp.ne.s32.totalorder (%p2091_p9), %s5017_s23, %s3976_s27  ;;  %p5152_p3 = scmp.ne.s32.totalorder (%p2091_p9), %s5124_s3, 0 }
 0xf8c   : >> { %2218 = vmatprep.subr.bf16.mxu0 %v3515_v22  ;;  %v2125_v59 = vrot.slane %v2120_v57, %v2124_v54  ;;  %v2129_v60 = vrot.slane %v2120_v57, %v2128_v58  ;;  %s4148_s28 = smov (%p2091_p9), [#allocation27]  }
 0xf8d   : > { %p3978_p0 = pnand (%p2091_p9), %p3977_p4, %p5152_p3  ;;  %s3980_s2 = sshll.u32 (%p2091_p9), %s4148_s28, 4  ;;  %s3981_s2 = int_to_ptr.vmem [resolvable:$false] %s3980_s2 }
 0xf8e   : >> { %3005 = vmatpush3.bf16.msra.mxu1 %v3535_v33  ;;  %s2949_s18 = sshll.u32 (%p2091_p9), %s5150_s20, 9  ;;  %s3982_s24 = scalar_lea.vmem (%p2091_p9), %s3981_s2, 1024 }
 0xf8f   : >> { %2219 = vmatpush1.bf16.msra.mxu0 %v3517_v23  ;;  %3006 = vmatprep.subr.bf16.mxu1 %v3536_v34  ;;  %s5015_s1 = scalar_lea.hbm (%p2091_p9), %s5151_s26, %s2949_s18  ;;  %p3979_p2 = pneg (%p2091_p9), %p3978_p0 }
 0xf90   : >> { %2220 = vmatprep.subr.bf16.mxu0 %v3518_v46  ;;  %p3983_p6 = scmp.lt.s32.totalorder (%p2091_p9), %s5017_s23, %s3981_s2  ;;  %p3984_p5 = scmp.lt.s32.totalorder (%p2091_p9), %s3982_s24, %s3976_s27 }
 0xf92   : >> { %3007 = vmatpush3.bf16.msra.mxu1 %v3537_v39  ;;  %p3985_p10 = por (%p2091_p9), %p3984_p5, %p3983_p6 }
 0xf93   : >> { %2221 = vmatpush1.bf16.msra.mxu0 %v3520_v26  ;;  %3008 = vmatprep.subr.bf16.mxu1 %v3538_v38 }
 0xf94   : >> { %2222 = vmatprep.subr.bf16.mxu0 %v3521_v31  ;;  %p3986_p1 = pnand (%p2091_p9), %p3985_p10, %p3979_p2 }
 0xf96   : >> { %3009 = vmatpush3.bf16.msra.mxu1 %v3539_v45 }
 0xf97   : >> { %2223 = vmatpush1.bf16.msra.mxu0 %v3523_v32  ;;  %3010 = vmatprep.subr.bf16.mxu1 %v3540_v48 }
 0xf98   : >> { %2224 = vmatprep.subr.bf16.mxu0 %v3524_v35 }
 0xf9a   : >> { %3011 = vmatpush3.bf16.msra.mxu1 %v3541_v49 }
 0xf9b   : >> { %2225 = vmatpush1.bf16.msra.mxu0 %v3526_v37  ;;  %3012 = vmatprep.subr.bf16.mxu1 %v3542_v50 }
 0xf9c   : >> { %2226 = vmatprep.subr.bf16.mxu0 %v3527_v40 }
 0xf9e   : >> { %3013 = vmatpush3.bf16.msra.mxu1 %v3543_v51 }
 0xf9f   : >> { %2227 = vmatpush1.bf16.msra.mxu0 %v3529_v47  ;;  %3014 = vmatprep.subr.bf16.mxu1 %v3544_v52 }
 0xfa2   : >> { %2245 = vmatmul.mubr.bf16.vlgmr.msra.gmra.mrb[0].mxu0 %v2087_v14  ;;  %3015 = vmatpush3.bf16.msra.mxu1 %v3545_v27 }
 0xfa3   : >> { %2254 = vmatprep.mubr.bf16.mxu0 %v4147_v42 }
 0xfaa   : >> { %2255 = vmatmul.mubr.bf16.gmra.mrb[4].mxu0 %v2088_v56 }
0x1075   : >> { %v2246_v61 = vpop.f32.mrb[0].mxu0 }
0x1076   : >> { %v2247_v62 = vadd.f32 %v2246_v61, %v2125_v59  ;;  %v2248_v0 = vpop.f32.mrb[1].mxu0 }
0x1077   : >> { %v2249_v1 = vadd.f32 %v2248_v0, %v2129_v60  ;;  %v2250_v3 = vpop.f32.mrb[2].mxu0 }
0x1078   : >> { %v2251_v2 = vadd.f32 %v2250_v3, %v2125_v59  ;;  %v2252_v4 = vpop.f32.mrb[3].mxu0  ;;  %v2265_v6 = vmax.f32 %v2247_v62, 0.0 }
0x1079   : >> { %v2253_v5 = vadd.f32 %v2252_v4, %v2129_v60  ;;  %v2266_v8 = vmax.f32 %v2249_v1, 0.0 }
0x107a   : >> { %v2267_v7 = vmax.f32 %v2251_v2, 0.0 }
0x107b   : >> { %v2268_v9 = vmax.f32 %v2253_v5, 0.0 }
0x107c   : >> { %v2273_v63 = vpack.c.bf16 %v2267_v7, %v2265_v6 }
0x107d   : >> { %v2256_v10 = vpop.f32.mrb[4].mxu0  ;;  %v2274_v42 = vpack.c.bf16 %v2268_v9, %v2266_v8 }
0x107e   : >> { %v2257_v43 = vadd.f32 %v2256_v10, %v2125_v59  ;;  %v2258_v44 = vpop.f32.mrb[5].mxu0 }
0x107f   : >> { %v2259_v18 = vadd.f32 %v2258_v44, %v2129_v60  ;;  %v2260_v19 = vpop.f32.mrb[6].mxu0  ;;  %2439 = vmatprep.mubr.bf16.mxu1 %v2274_v42 }
0x1080   : >> { %v2261_v20 = vadd.f32 %v2260_v19, %v2125_v59  ;;  %v2262_v21 = vpop.f32.mrb[7].mxu0  ;;  %2440 = vmatmul.mubr.bf16.vlgmr.msra.gmra.mrb[0].mxu1 %v2273_v63  ;;  %v2269_v23 = vmax.f32 %v2257_v43, 0.0  ;;  %v2933_v19 = vld [vmem:[#allocation24] ss:$0 sm:$0xff] (%p2091_p9) }
0x1081   : >> { %v2263_v22 = vadd.f32 %v2262_v21, %v2129_v60  ;;  %v2270_v24 = vmax.f32 %v2259_v18, 0.0  ;;  %v2934_v21 = vld [vmem:[#allocation26] ss:$0 sm:$0xff] (%p2091_p9) }
0x1082   : >> { %v2271_v46 = vmax.f32 %v2261_v20, 0.0 }
0x1083   : >> { %v2272_v25 = vmax.f32 %v2263_v22, 0.0 }
0x1084   : >> { %v2275_v26 = vpack.c.bf16 %v2271_v46, %v2269_v23 }
0x1085   : >> { %v2276_v28 = vpack.c.bf16 %v2272_v25, %v2270_v24 }
0x1087   : >> { %2447 = vmatprep.mubr.bf16.mxu1 %v2276_v28 }
0x1088   : >> { %2448 = vmatmul.mubr.bf16.gmra.mrb[4].mxu1 %v2275_v26 }
0x1153   : >> { %v3016_v29 = vpop.f32.mrb[0].mxu1 }
0x1154   : >> { %v3017_v30 = vpop.f32.mrb[1].mxu1 }
0x1155   : >> { %v3018_v31 = vadd.f32 %v3017_v30, %v3016_v29  ;;  %v3019_v32 = vpop.f32.mrb[2].mxu1 }
0x1156   : >> { %v3020_v33 = vpop.f32.mrb[3].mxu1 }
0x1157   : >> { %v2456_v34 = vadd.f32 %v4114_v41, %v3018_v31   ;;  %v3021_v35 = vadd.f32 %v3020_v33, %v3019_v32 }
0x1159   : >> { %v2457_v37 = vadd.f32 %v4110_v17, %v3021_v35   ;;  %v5149_v41 = vmov %v2456_v34 }
0x115a   : > { %v2932_v41 = vld [vmem:[#allocation23] ss:$0 sm:$0xff] (%p2091_p9) }
0x115b   : >> { %v3022_v39 = vpop.f32.mrb[4].mxu1  ;;  %v5148_v17 = vmov %v2457_v37  ;;  %v2467_v51 = vadd.f32 (%p2091_p9), %v2932_v41, %v2456_v34  ;;  %v2468_v27 = vadd.f32 (%p2091_p9), %v2932_v41, %v2457_v37 }
0x115c   : >> { %v3023_v38 = vpop.f32.mrb[5].mxu1 }
0x115d   : >> { %v3024_v40 = vadd.f32 %v3023_v38, %v3022_v39  ;;  %v3025_v45 = vpop.f32.mrb[6].mxu1  ;;  %2093 = sbr.rel (!%p2091_p9) target bundleno = 3967 (0xf7f), region = 211  ;;  %2473 = vadd.xlane.f32.xlu0 (%p2091_p9), %v2467_v51 }
0x115e   : >> { %v3026_v47 = vpop.f32.mrb[7].mxu1 }
0x115f   : >> { %v2458_v48 = vadd.f32 %v4106_v16, %v3024_v40   ;;  %v3027_v49 = vadd.f32 %v3026_v47, %v3025_v45 }
0x1161   : >> { %v2459_v50 = vadd.f32 %v4102_v15, %v3027_v49   ;;  %v5147_v16 = vmov %v2458_v48  ;;  %v2469_v52 = vadd.f32 (%p2091_p9), %v2932_v41, %v2458_v48  ;;  %2475 = vadd.xlane.f32.xlu0 (%p2091_p9), %v2468_v27 }
0x1163   : >> { %v5146_v15 = vmov %v2459_v50  ;;  %2477 = vadd.xlane.f32.xlu1 (%p2091_p9), %v2469_v52  ;;  %v2470_v53 = vadd.f32 (%p2091_p9), %v2932_v41, %v2459_v50 }
0x1167   : > { %2479 = vadd.xlane.f32.xlu1 %v2470_v53 }
0x11ea   : > { %v2474_v36 = vpop.xlane.xlu0 %2473 }
0x11eb   : > { %v2482_v57 = vmul.f32 0.0078125, %v2474_v36 }
0x11ed   : > { %v2486_v59 = vsub.f32 %v2467_v51, %v2482_v57 }
0x11ee   : > { %v2476_v61 = vpop.xlane.xlu0 %2475 }
0x11ef   : > { %v2483_v0 = vmul.f32 0.0078125, %v2476_v61  ;;  %v2490_v1 = vmul.f32 %v2486_v59, %v2486_v59 }
0x11f0   : > { %v2478_v54 = vpop.xlane.xlu1 %2477 }
0x11f1   : > { %v2484_v58 = vmul.f32 0.0078125, %v2478_v54  ;;  %v2487_v14 = vsub.f32 %v2468_v27, %v2483_v0  ;;  %2494 = vadd.xlane.f32.xlu0 %v2490_v1 }
0x11f3   : > { %v2488_v60 = vsub.f32 %v2469_v52, %v2484_v58  ;;  %v2491_v16 = vmul.f32 %v2487_v14, %v2487_v14 }
0x11f4   : > { %v2480_v62 = vpop.xlane.xlu1 %2479 }
0x11f5   : > { %v2485_v3 = vmul.f32 0.0078125, %v2480_v62  ;;  %v2492_v15 = vmul.f32 %v2488_v60, %v2488_v60  ;;  %2496 = vadd.xlane.f32.xlu1 %v2491_v16 }
0x11f7   : > { %v2489_v56 = vsub.f32 %v2470_v53, %v2485_v3  ;;  %2498 = vadd.xlane.f32.xlu0 %v2492_v15 }
0x11f9   : > { %v2493_v17 = vmul.f32 %v2489_v56, %v2489_v56 }
0x11fb   : > { %2500 = vadd.xlane.f32.xlu1 %v2493_v17 }
0x127e   : > { %v2495_v2 = vpop.xlane.xlu0 %2494 }
0x127f   : > { %v2502_v4 = vmul.f32 0.0078125, %v2495_v2 }
0x1281   : > { %v2506_v5 = vadd.f32 1e-05, %v2502_v4 }
0x1282   : > { %v2497_v6 = vpop.xlane.xlu1 %2496 }
0x1283   : > { %3546 = vrsqrt.f32 %v2506_v5  ;;  %v2503_v8 = vmul.f32 0.0078125, %v2497_v6 }
0x1284   : > { %v2499_v7 = vpop.xlane.xlu0 %2498 }
0x1285   : > { %v2504_v9 = vmul.f32 0.0078125, %v2499_v7  ;;  %v2507_v63 = vadd.f32 1e-05, %v2503_v8 }
0x1287   : > { %v2508_v10 = vadd.f32 1e-05, %v2504_v9  ;;  %3548 = vrsqrt.f32 %v2507_v63 }
0x1288   : > { %v2501_v42 = vpop.xlane.xlu1 %2500 }
0x1289   : > { %v2505_v43 = vmul.f32 0.0078125, %v2501_v42  ;;  %3550 = vrsqrt.f32 %v2508_v10 }
0x128b   : > { %v2509_v44 = vadd.f32 1e-05, %v2505_v43 }
0x128d   : > { %3552 = vrsqrt.f32 %v2509_v44  ;;  %v3547_v18 = vpop.eup %3546 }
0x128e   : > { %v2514_v20 = vmul.f32 %v3547_v18, %v2486_v59 }
0x1290   : > { %v2524_v22 = vmul.f32 %v2933_v19, %v2514_v20 }
0x1291   : > { %v3549_v23 = vpop.eup %3548 }
0x1292   : > { %v2534_v24 = vadd.f32 %v2934_v21, %v2524_v22  ;;  %v2515_v25 = vmul.f32 %v3549_v23, %v2487_v14 }
0x1293   : > { %v3551_v46 = vpop.eup %3550 }
0x1294   : > { %v2516_v26 = vmul.f32 %v3551_v46, %v2488_v60  ;;  %v2538_v28 = vadd.f32 %v2534_v24, %v4908_v11  ;;  %v2525_v29 = vmul.f32 %v2933_v19, %v2515_v25 }
0x1296   : > { %v2526_v31 = vmul.f32 %v2933_v19, %v2516_v26  ;;  %2542 = vst [vmem:[%s4706_s17] sm:$0xff] %v2538_v28  ;;  %v2535_v32 = vadd.f32 %v2934_v21, %v2525_v29 }
0x1297   : > { %v3553_v30 = vpop.eup %3552 }
0x1298   : > { %v2517_v33 = vmul.f32 %v3553_v30, %v2489_v56  ;;  %v2536_v34 = vadd.f32 %v2934_v21, %v2526_v31  ;;  %v2539_v35 = vadd.f32 %v2535_v32, %v4910_v12 }
0x129a   : > { %v2527_v37 = vmul.f32 %v2933_v19, %v2517_v33  ;;  %v2540_v39 = vadd.f32 %v2536_v34, %v4912_v13  ;;  %2543 = vst [vmem:[%s4706_s17 + $0x8] sm:$0xff] %v2539_v35 }
0x129c   : > { %v2537_v38 = vadd.f32 %v2934_v21, %v2527_v37  ;;  %2544 = vst [vmem:[%s4706_s17 + $0x10] sm:$0xff] %v2540_v39 }
0x129e   : > { %v2541_v11 = vadd.f32 %v2537_v38, %v4914_v55 }
0x12a0   : > { %2545 = vst [vmem:[%s4706_s17 + $0x18] sm:$0xff] %v2541_v11 }
0x12a1   : > { %3989 = shalt.err (!%p3986_p1)
}
0x12a2   : > { %s3990_s17 = scalar_lea.hbm %s5015_s1, 512  ;;  %s3994_s0 = scalar_lea.hbm %s5151_s26, 1024 }
0x12a3   : > { %p3991_p11 = scmp.ne.s32.totalorder %s5015_s1, %s3990_s17  ;;  %p3995_p8 = scmp.lt.u32.totalorder %s5015_s1, %s5151_s26 }
0x12a4   : > { %p3996_p7 = scmp.lt.u32.totalorder %s3994_s0, %s3990_s17  ;;  %p3998_p4 = scmp.lt.u32.totalorder %s3990_s17, %s5015_s1 }
0x12a5   : > { %p3992_p12 = pnand %p3991_p11, %p5152_p3 }
0x12a6   : > { %p3997_p9 = por %p3996_p7, %p3995_p8 }
0x12a7   : > { %p3993_p13 = pneg %p3992_p12 }
0x12a8   : > { %p3999_p0 = por %p3998_p4, %p3997_p9 }
0x12aa   : > { %p4000_p2 = pnand %p3999_p0, %p3993_p13 }
0x12ac   : > { %4003 = shalt.err (!%p4000_p2)
}
0x12ad   : > { %s4149_s27 = smov 128   ;;  %s4150_s2 = smov 8  }
0x12ae   : > { %3238 = dma.vmem_to_hbm [thread:$0]  (%p5152_p3), %s5017_s23, 512, %s5015_s1, %s2547_s22, %s4149_s27, %s4149_s27, %s4150_s2  }
0x12af PF: > { %s5153_s24 = sld [smem:[#allocation37_spill]]  ;;  %p5154_p6 = scmp.ne.s32.totalorder %s5125_s16, 0 }
0x12b0   : > { %p5155_p5 = scmp.ge.s32.totalorder %s4094_s21, 2 }
0x12b2   : > { %p3288_p10 = pnand %p5155_p5, %p5154_p6 }
0x12b5   : > { %s2576_s20 = sand.u32 1, %s5153_s24  }
0x12b6   : > { %s2577_s17 = scalar_lea.sflag [#allocation5], %s2576_s20 }
0x12b7   : > { %4077 = dma.done.wait (!%p3288_p10), %s2577_s17, 512  }
0x12b8   : > { %4079 = vsyncadd (!%p3288_p10), %s2577_s17, 4294966784  ;;  %s5156_s18 = sld [smem:[#allocation38_spill]]  ;;  %s5157_s19 = sld [smem:[#allocation39_spill]] }
0x12b9   : > { %p35_p1 = scmp.ge.s32.totalorder %s4570_s25, 4   ;;  %s5158_s20 = smov %s4581_s29 }
0x12ba   : > { %s5159_s21 = smov %s4570_s25 }
0x12bb   :  { %37 = sbr.rel (!%p35_p1) target bundleno = 18 (0x12), region = 222 }
0x12c2   :  { %2582 = vsyncpa [#allocation4], 1 }
0x12c3   :  { %2584 = vsyncpa [#allocation4 + $0x1], 1 }
0x12c4   :  { %2585 = vsyncpa [#allocation7], 1 }
0x12c5   :  { %2586 = vsyncpa [#allocation10], 1 }
0x12c6   :  { %2587 = vsyncpa [#allocation13], 1 }
0x12c7   :  { %2588 = vsyncpa [#allocation16], 1 }
0x12c8   :  { %2589 = vsyncpa [#allocation19], 1 }
0x12c9   :  { %2590 = vsyncpa [#allocation22], 1 }
0x12ca   :  { %2591 = vsyncpa [#allocation25], 1 }
0x12cb   :  { %2592 = vsyncpa [#allocation5], 1 }
0x12cc   :  { %2594 = vsyncpa [#allocation5 + $0x1], 1 }

// kernel: tpu_custom_call.1
= control target key start
LH: loop header
LB: loop body
LE: loop exit
PB: predicated region body
PF: predicated region fallthrough
CT: control target
= control target key end

     0   :  { %s5063_s0 = inlined_call_operand.hbm [shape: f32[4,16,128], index: 0, kind: input, shape index: {}]   ;;  %s5064_s1 = inlined_call_operand.hbm [shape: bf16[128,128], index: 1, kind: input, shape index: {}]   ;;  %s5065_s2 = inlined_call_operand.hbm [shape: f32[1,128], index: 2, kind: input, shape index: {}]   ;;  %s5066_s3 = inlined_call_operand.hbm [shape: bf16[128,256], index: 3, kind: input, shape index: {}]   ;;  %s5067_s4 = inlined_call_operand.hbm [shape: f32[1,256], index: 4, kind: input, shape index: {}]   ;;  %s5068_s5 = inlined_call_operand.hbm [shape: bf16[128,128], index: 5, kind: input, shape index: {}]   ;;  %s5069_s6 = inlined_call_operand.hbm [shape: f32[1,128], index: 6, kind: input, shape index: {}]   ;;  %s5070_s7 = inlined_call_operand.hbm [shape: f32[1,128], index: 7, kind: input, shape index: {}]   ;;  %s5071_s8 = inlined_call_operand.hbm [shape: f32[1,128], index: 8, kind: input, shape index: {}]   ;;  %s5072_s9 = inlined_call_operand.hbm [shape: bf16[2,128,256], index: 9, kind: input, shape index: {}]   ;;  %s5073_s10 = inlined_call_operand.hbm [shape: f32[2,1,256], index: 10, kind: input, shape index: {}]   ;;  %s5074_s11 = inlined_call_operand.hbm [shape: bf16[2,256,128], index: 11, kind: input, shape index: {}]   ;;  %s5075_s12 = inlined_call_operand.hbm [shape: f32[1,128], index: 12, kind: input, shape index: {}]   ;;  %s5076_s13 = inlined_call_operand.hbm [shape: f32[1,128], index: 13, kind: input, shape index: {}]   ;;  %s5077_s14 = inlined_call_operand.hbm [shape: f32[1,128], index: 14, kind: input, shape index: {}]   ;;  %s5078_s15 = inlined_call_operand.hbm [shape: f32[4,16,128], index: 15, kind: output, shape index: {}]  }
   0x1   :  { %5097 = sst [smem:[#allocation42_spill]] %s5063_s0 }
   0x2   :  { %5098 = sst [smem:[#allocation43_spill]] %s5064_s1 }
   0x3   :  { %5099 = sst [smem:[#allocation44_spill]] %s5065_s2 }
   0x4   :  { %5100 = sst [smem:[#allocation45_spill]] %s5066_s3 }
   0x5   :  { %5101 = sst [smem:[#allocation46_spill]] %s5078_s15 }
   0x6   :  { %20 = vsyncpa [#allocation4], 0 }
   0x7   :  { %22 = vsyncpa [#allocation4 + $0x1], 0 }
   0x8   :  { %23 = vsyncpa [#allocation7], 0 }
   0x9   :  { %24 = vsyncpa [#allocation10], 0 }
   0xa   :  { %25 = vsyncpa [#allocation13], 0 }
   0xb   :  { %26 = vsyncpa [#allocation16], 0 }
   0xc   :  { %27 = vsyncpa [#allocation19], 0 }
   0xd   :  { %28 = vsyncpa [#allocation22], 0 }
   0xe   :  { %29 = vsyncpa [#allocation25], 0 }
   0xf   :  { %30 = vsyncpa [#allocation5], 0 }
  0x10   :  { %32 = vsyncpa [#allocation5 + $0x1], 0  ;;  %s4231_s18 = smov 0   ;;  %s4233_s19 = smov 0  }
  0x11   :  { %s4235_s20 = smov 0   ;;  %s4237_s21 = smov 0  }
  0x12 LB: > { %5102 = sst [smem:[#allocation37_spill]] %s4082_s18  ;;  %s4120_s22 = smov [#allocation6]   ;;  %s4094_s21 = sphi %s4237_s21, %s5159_s21   ;;  %s4090_s20 = sphi %s4235_s20, %s5158_s20   ;;  %s4086_s19 = sphi %s4233_s19, %s5157_s19   ;;  %s4082_s18 = sphi %s4231_s18, %s5156_s18  }
  0x13   : > { %5103 = sst [smem:[#allocation38_spill]] %s4086_s19  ;;  %s401_s23 = sshll.u32 %s4120_s22, 4  ;;  %s4257_s23 = int_to_ptr.vmem [resolvable:$true] %s401_s23 }
  0x14   : > { %5104 = sst [smem:[#allocation39_spill]] %s4090_s20  ;;  %s4252_s24 = sadd.s32 4294967295, %s4094_s21  }
  0x15   : > { %5105 = sst [smem:[#allocation40_spill]] %s4252_s24  ;;  %p2800_p0 = scmp.ge.s32.totalorder %s4094_s21, 1 }
  0x16   : > { %p5089_p1 = scmp.eq.s32.totalorder %s4252_s24, 0  ;;  %p389_p2 = scmp.lt.s32.totalorder %s4094_s21, 3 }
  0x17   : > { %s4121_s26 = smov [#allocation9]   ;;  %s4122_s29 = smov [#allocation12]  }
  0x18   : > { %p4259_p3 = pnand %p2800_p0, %p389_p2  ;;  %s425_s27 = sshll.u32 %s4121_s26, 4  ;;  %s4272_s27 = int_to_ptr.vmem [resolvable:$true] %s425_s27 }
  0x19   : > { %s4274_s30 = sshll.u32 %s4122_s29, 4  ;;  %s5109_s1 = sld [smem:[#allocation43_spill]]  ;;  %s450_s30 = int_to_ptr.vmem [resolvable:$true] %s4274_s30 }
  0x1a   : > { %s5106_s25 = scalar_select %p4259_p3, 1, 0 }
  0x1b   : > { %p3240_p5 = pneg %p4259_p3 }
  0x1c   : > { %5107 = sst [smem:[#allocation41_spill]] %s5106_s25 }
  0x1d   : > { %p4268_p6 = pnand %p3240_p5, %p5089_p1 }
  0x1f   : > { %s3554_s22 = scalar_lea.hbm %s5109_s1, 1024  ;;  %p4284_p8 = pneg %p4268_p6 }
  0x20   : > { %p3555_p7 = scmp.ne.s32.totalorder %s5109_s1, %s3554_s22  ;;  %p3561_p11 = scmp.lt.u32.totalorder %s3554_s22, %s5109_s1 }
  0x22   : > { %p3557_p9 = pnand %p4284_p8, %p3555_p7 }
  0x24   : > { %p3558_p10 = pneg %p3557_p9 }
  0x26   : > { %p3563_p12 = pnand %p3561_p11, %p3558_p10 }
  0x28   : > { %3566 = shalt.err (!%p3563_p12)
}
  0x29   : > { %s3567_s15 = scalar_lea.vmem %s4257_s23, 1024  ;;  %p3575_p5 = scmp.lt.s32.totalorder %s4257_s23, %s4257_s23 }
  0x2a   : > { %p3568_p13 = scmp.ne.s32.totalorder %s4257_s23, %s3567_s15  ;;  %p3576_p4 = scmp.lt.s32.totalorder %s3567_s15, %s3567_s15 }
  0x2c   : > { %p3570_p0 = pnand %p3568_p13, %p4284_p8  ;;  %p3577_p7 = por %p3576_p4, %p3575_p5 }
  0x2e   : > { %p3571_p2 = pneg %p3570_p0 }
  0x30   : > { %p3578_p9 = pnand %p3577_p7, %p3571_p2 }
  0x32   : > { %3581 = shalt.err (!%p3578_p9)
}
  0x33   : > { %s5087_s25 = smov 64   ;;  %s5095_s0 = smov 4  }
  0x34   : > { %3243 = dma.hbm_to_vmem [thread:$0]  (!%p4268_p6), %s5109_s1, 1024, %s4257_s23, [#allocation7], %s5087_s25, %s5087_s25, %s5095_s0  }
  0x35   : > { %s5111_s3 = sld [smem:[#allocation45_spill]] }
  0x3b   : > { %s3582_s15 = scalar_lea.hbm %s5111_s3, 2048 }
  0x3c   : > { %p3583_p4 = scmp.ne.s32.totalorder %s5111_s3, %s3582_s15  ;;  %p3589_p12 = scmp.lt.u32.totalorder %s3582_s15, %s5111_s3 }
  0x3e   : > { %p3585_p10 = pnand %p3583_p4, %p4284_p8 }
  0x40   : > { %p3586_p11 = pneg %p3585_p10 }
  0x42   : > { %p3591_p13 = pnand %p3589_p12, %p3586_p11 }
  0x44   : > { %3594 = shalt.err (!%p3591_p13)
}
  0x45   : > { %s3595_s23 = scalar_lea.vmem %s4272_s27, 2048  ;;  %p3603_p7 = scmp.lt.s32.totalorder %s4272_s27, %s4272_s27 }
  0x46   : > { %p3596_p0 = scmp.ne.s32.totalorder %s4272_s27, %s3595_s23  ;;  %p3604_p9 = scmp.lt.s32.totalorder %s3595_s23, %s3595_s23 }
  0x48   : > { %p3598_p2 = pnand %p3596_p0, %p4284_p8  ;;  %p3605_p4 = por %p3604_p9, %p3603_p7 }
  0x4a   : > { %p3599_p5 = pneg %p3598_p2 }
  0x4c   : > { %p3606_p10 = pnand %p3605_p4, %p3599_p5 }
  0x4e   : > { %3609 = shalt.err (!%p3606_p10)
}
  0x4f   : > { %s5091_s18 = smov 128   ;;  %s5093_s19 = smov 8  }
  0x50   : > { %3249 = dma.hbm_to_vmem [thread:$0]  (!%p4268_p6), %s5111_s3, 2048, %s4272_s27, [#allocation10], %s5091_s18, %s5091_s18, %s5093_s19  }
  0x51   : > { %s3610_s22 = scalar_lea.hbm %s5068_s5, 1024 }
  0x52   : > { %p3611_p11 = scmp.ne.s32.totalorder %s5068_s5, %s3610_s22  ;;  %p3617_p0 = scmp.lt.u32.totalorder %s3610_s22, %s5068_s5 }
  0x54   : > { %p3613_p12 = pnand %p3611_p11, %p4284_p8 }
  0x56   : > { %p3614_p13 = pneg %p3613_p12 }
  0x58   : > { %p3619_p2 = pnand %p3617_p0, %p3614_p13 }
  0x5a   : > { %3622 = shalt.err (!%p3619_p2)
}
  0x5b   : > { %s3623_s20 = scalar_lea.vmem %s450_s30, 1024  ;;  %p3631_p4 = scmp.lt.s32.totalorder %s450_s30, %s450_s30 }
  0x5c   : > { %p3624_p5 = scmp.ne.s32.totalorder %s450_s30, %s3623_s20  ;;  %p3632_p10 = scmp.lt.s32.totalorder %s3623_s20, %s3623_s20 }
  0x5e   : > { %p3626_p7 = pnand %p3624_p5, %p4284_p8  ;;  %p3633_p1 = por %p3632_p10, %p3631_p4 }
  0x60   : > { %p3627_p9 = pneg %p3626_p7 }
  0x62   : > { %p3634_p3 = pnand %p3633_p1, %p3627_p9 }
  0x64   : > { %3637 = shalt.err (!%p3634_p3)
}
  0x65   : > { %s5112_s27 = smov 64   ;;  %s4127_s16 = smov [#allocation15]  }
  0x66   : > { %3255 = dma.hbm_to_vmem [thread:$0]  (!%p4268_p6), %s5068_s5, 1024, %s450_s30, [#allocation13], %s5112_s27, %s5112_s27, %s5095_s0  }
  0x67   : > { %s474_s17 = sshll.u32 %s4127_s16, 4  ;;  %s4128_s22 = smov [#allocation18]   ;;  %s475_s17 = int_to_ptr.vmem [resolvable:$true] %s474_s17 }
  0x68   : > { %s495_s29 = sshll.u32 %s4128_s22, 4  ;;  %s3638_s20 = scalar_lea.hbm %s5070_s7, 16  ;;  %s496_s29 = int_to_ptr.vmem [resolvable:$true] %s495_s29 }
  0x69   : > { %p3639_p1 = scmp.ne.s32.totalorder %s5070_s7, %s3638_s20  ;;  %p3645_p12 = scmp.lt.u32.totalorder %s3638_s20, %s5070_s7 }
  0x6b   : > { %p3641_p3 = pnand %p3639_p1, %p4284_p8 }
  0x6d   : > { %p3642_p11 = pneg %p3641_p3 }
  0x6f   : > { %p3647_p13 = pnand %p3645_p12, %p3642_p11 }
  0x71   : > { %3650 = shalt.err (!%p3647_p13)
}
  0x72   : > { %s3651_s30 = scalar_lea.vmem %s475_s17, 16  ;;  %s3658_s24 = scalar_lea.vmem %s475_s17, 32 }
  0x73   : > { %p3652_p0 = scmp.ne.s32.totalorder %s475_s17, %s3651_s30  ;;  %p3659_p7 = scmp.lt.s32.totalorder %s475_s17, %s475_s17 }
  0x74   : > { %p3660_p9 = scmp.lt.s32.totalorder %s3658_s24, %s3651_s30 }
  0x75   : > { %p3654_p2 = pnand %p3652_p0, %p4284_p8 }
  0x76   : > { %p3661_p4 = por %p3660_p9, %p3659_p7 }
  0x77   : > { %p3655_p5 = pneg %p3654_p2 }
  0x79   : > { %p3662_p10 = pnand %p3661_p4, %p3655_p5 }
  0x7b   : > { %3665 = shalt.err (!%p3662_p10)
}
  0x7c   : > { %3261 = dma.hbm_to_vmem [thread:$0]  (!%p4268_p6), %s5070_s7, 16, %s475_s17, [#allocation16]  }
  0x7d   : > { %s3666_s22 = scalar_lea.hbm %s5072_s9, 4096 }
  0x7e   : > { %p3667_p1 = scmp.ne.s32.totalorder %s5072_s9, %s3666_s22  ;;  %p3673_p12 = scmp.lt.u32.totalorder %s3666_s22, %s5072_s9 }
  0x80   : > { %p3669_p3 = pnand %p3667_p1, %p4284_p8 }
  0x82   : > { %p3670_p11 = pneg %p3669_p3 }
  0x84   : > { %p3675_p13 = pnand %p3673_p12, %p3670_p11 }
  0x86   : > { %3678 = shalt.err (!%p3675_p13)
}
  0x87   : > { %s3679_s30 = scalar_lea.vmem %s496_s29, 4096  ;;  %p3687_p7 = scmp.lt.s32.totalorder %s496_s29, %s496_s29 }
  0x88   : > { %p3680_p0 = scmp.ne.s32.totalorder %s496_s29, %s3679_s30  ;;  %p3688_p9 = scmp.lt.s32.totalorder %s3679_s30, %s3679_s30 }
  0x8a   : > { %p3682_p2 = pnand %p3680_p0, %p4284_p8  ;;  %p3689_p4 = por %p3688_p9, %p3687_p7 }
  0x8c   : > { %p3683_p5 = pneg %p3682_p2 }
  0x8e   : > { %p3690_p10 = pnand %p3689_p4, %p3683_p5 }
  0x90   : > { %3693 = shalt.err (!%p3690_p10)
}
  0x91   : > { %s5113_s17 = smov 8   ;;  %s5114_s24 = smov 128  }
  0x92   : > { %3267 = dma.hbm_to_vmem [thread:$0]  (!%p4268_p6), %s5072_s9, 4096, %s496_s29, [#allocation19], %s5114_s24, %s5114_s24, %s5113_s17  }
  0x93   : > { %s4129_s1 = smov [#allocation21]   ;;  %s4130_s22 = smov [#allocation24]  }
  0x94   : > { %s521_s16 = sshll.u32 %s4129_s1, 4  ;;  %s546_s15 = sshll.u32 %s4130_s22, 4  ;;  %s522_s16 = int_to_ptr.vmem [resolvable:$true] %s521_s16  ;;  %s547_s15 = int_to_ptr.vmem [resolvable:$true] %s546_s15 }
  0x95   : > { %s3694_s25 = scalar_lea.hbm %s5074_s11, 4096 }
  0x96   : > { %p3695_p1 = scmp.ne.s32.totalorder %s5074_s11, %s3694_s25  ;;  %p3701_p12 = scmp.lt.u32.totalorder %s3694_s25, %s5074_s11 }
  0x98   : > { %p3697_p3 = pnand %p3695_p1, %p4284_p8 }
  0x9a   : > { %p3698_p11 = pneg %p3697_p3 }
  0x9c   : > { %p3703_p13 = pnand %p3701_p12, %p3698_p11 }
  0x9e   : > { %3706 = shalt.err (!%p3703_p13)
}
  0x9f   : > { %s3707_s29 = scalar_lea.vmem %s522_s16, 4096  ;;  %p3715_p7 = scmp.lt.s32.totalorder %s522_s16, %s522_s16 }
  0xa0   : > { %p3708_p0 = scmp.ne.s32.totalorder %s522_s16, %s3707_s29  ;;  %p3716_p9 = scmp.lt.s32.totalorder %s3707_s29, %s3707_s29 }
  0xa2   : > { %p3710_p2 = pnand %p3708_p0, %p4284_p8  ;;  %p3717_p4 = por %p3716_p9, %p3715_p7 }
  0xa4   : > { %p3711_p5 = pneg %p3710_p2 }
  0xa6   : > { %p3718_p10 = pnand %p3717_p4, %p3711_p5 }
  0xa8   : > { %3721 = shalt.err (!%p3718_p10)
}
  0xa9   : > { %s5115_s0 = smov 4   ;;  %s3722_s23 = scalar_lea.hbm %s5076_s13, 16 }
  0xaa   : > { %3273 = dma.hbm_to_vmem [thread:$0]  (!%p4268_p6), %s5074_s11, 4096, %s522_s16, [#allocation22], %s5112_s27, %s5112_s27, %s5115_s0  }
  0xab   : > { %p3723_p1 = scmp.ne.s32.totalorder %s5076_s13, %s3722_s23  ;;  %p3729_p12 = scmp.lt.u32.totalorder %s3722_s23, %s5076_s13 }
  0xad   : > { %p3725_p3 = pnand %p3723_p1, %p4284_p8 }
  0xaf   : > { %p3726_p11 = pneg %p3725_p3 }
  0xb1   : > { %p3731_p13 = pnand %p3729_p12, %p3726_p11 }
  0xb3   : > { %3734 = shalt.err (!%p3731_p13)
}
  0xb4   : > { %s3735_s29 = scalar_lea.vmem %s547_s15, 16  ;;  %s3742_s27 = scalar_lea.vmem %s547_s15, 32 }
  0xb5   : > { %p3736_p0 = scmp.ne.s32.totalorder %s547_s15, %s3735_s29  ;;  %p3743_p7 = scmp.lt.s32.totalorder %s547_s15, %s547_s15 }
  0xb6   : > { %p3744_p9 = scmp.lt.s32.totalorder %s3742_s27, %s3735_s29 }
  0xb7   : > { %p3738_p2 = pnand %p3736_p0, %p4284_p8 }
  0xb8   : > { %p3745_p4 = por %p3744_p9, %p3743_p7 }
  0xb9   : > { %p3739_p5 = pneg %p3738_p2 }
  0xbb   : > { %p3746_p10 = pnand %p3745_p4, %p3739_p5 }
  0xbd   : > { %3749 = shalt.err (!%p3746_p10)
}
  0xbe   : > { %3279 = dma.hbm_to_vmem [thread:$0]  (!%p4268_p6), %s5076_s13, 16, %s547_s15, [#allocation25]  }
  0xbf   : > { %s4131_s3 = smov [#allocation8]   ;;  %s4132_s1 = smov [#allocation11]  }
  0xc0   : > { %s415_s19 = sshll.u32 %s4131_s3, 4  ;;  %s439_s22 = sshll.u32 %s4132_s1, 4  ;;  %s416_s19 = int_to_ptr.vmem [resolvable:$true] %s415_s19  ;;  %s440_s22 = int_to_ptr.vmem [resolvable:$true] %s439_s22 }
  0xc1   : > { %s5116_s2 = sld [smem:[#allocation44_spill]] }
  0xc7   : > { %s3750_s25 = scalar_lea.hbm %s5116_s2, 16 }
  0xc8   : > { %p3751_p1 = scmp.ne.s32.totalorder %s5116_s2, %s3750_s25  ;;  %p3757_p12 = scmp.lt.u32.totalorder %s3750_s25, %s5116_s2 }
  0xca   : > { %p3753_p3 = pnand %p3751_p1, %p4284_p8 }
  0xcc   : > { %p3754_p11 = pneg %p3753_p3 }
  0xce   : > { %p3759_p13 = pnand %p3757_p12, %p3754_p11 }
  0xd0   : > { %3762 = shalt.err (!%p3759_p13)
}
  0xd1   : > { %s3763_s15 = scalar_lea.vmem %s416_s19, 16  ;;  %s3770_s16 = scalar_lea.vmem %s416_s19, 32 }
  0xd2   : > { %p3764_p0 = scmp.ne.s32.totalorder %s416_s19, %s3763_s15  ;;  %p3771_p7 = scmp.lt.s32.totalorder %s416_s19, %s416_s19 }
  0xd3   : > { %p3772_p9 = scmp.lt.s32.totalorder %s3770_s16, %s3763_s15 }
  0xd4   : > { %p3766_p2 = pnand %p3764_p0, %p4284_p8 }
  0xd5   : > { %p3773_p4 = por %p3772_p9, %p3771_p7 }
  0xd6   : > { %p3767_p5 = pneg %p3766_p2 }
  0xd8   : > { %p3774_p10 = pnand %p3773_p4, %p3767_p5 }
  0xda   : > { %3777 = shalt.err (!%p3774_p10)
}
  0xdb   : > { %3246 = dma.hbm_to_vmem [thread:$0]  (!%p4268_p6), %s5116_s2, 16, %s416_s19, [#allocation7]  }
  0xdc   : > { %s3778_s20 = scalar_lea.hbm %s5067_s4, 32 }
  0xdd   : > { %p3779_p1 = scmp.ne.s32.totalorder %s5067_s4, %s3778_s20  ;;  %p3785_p12 = scmp.lt.u32.totalorder %s3778_s20, %s5067_s4 }
  0xdf   : > { %p3781_p3 = pnand %p3779_p1, %p4284_p8 }
  0xe1   : > { %p3782_p11 = pneg %p3781_p3 }
  0xe3   : > { %p3787_p13 = pnand %p3785_p12, %p3782_p11 }
  0xe5   : > { %3790 = shalt.err (!%p3787_p13)
}
  0xe6   : > { %s3791_s27 = scalar_lea.vmem %s440_s22, 32  ;;  %p3799_p7 = scmp.lt.s32.totalorder %s440_s22, %s440_s22 }
  0xe7   : > { %p3792_p0 = scmp.ne.s32.totalorder %s440_s22, %s3791_s27  ;;  %p3800_p9 = scmp.lt.s32.totalorder %s3791_s27, %s3791_s27 }
  0xe9   : > { %p3794_p2 = pnand %p3792_p0, %p4284_p8  ;;  %p3801_p4 = por %p3800_p9, %p3799_p7 }
  0xeb   : > { %p3795_p5 = pneg %p3794_p2 }
  0xed   : > { %p3802_p10 = pnand %p3801_p4, %p3795_p5 }
  0xef   : > { %3805 = shalt.err (!%p3802_p10)
}
  0xf0   : > { %3252 = dma.hbm_to_vmem [thread:$0]  (!%p4268_p6), %s5067_s4, 32, %s440_s22, [#allocation10]  }
  0xf1   : > { %s4133_s16 = smov [#allocation14]   ;;  %s4134_s3 = smov [#allocation17]  }
  0xf2   : > { %s463_s0 = sshll.u32 %s4133_s16, 4  ;;  %s485_s1 = sshll.u32 %s4134_s3, 4  ;;  %s464_s0 = int_to_ptr.vmem [resolvable:$true] %s463_s0  ;;  %s486_s1 = int_to_ptr.vmem [resolvable:$true] %s485_s1 }
  0xf3   : > { %s3806_s25 = scalar_lea.hbm %s5069_s6, 16 }
  0xf4   : > { %p3807_p1 = scmp.ne.s32.totalorder %s5069_s6, %s3806_s25  ;;  %p3813_p12 = scmp.lt.u32.totalorder %s3806_s25, %s5069_s6 }
  0xf6   : > { %p3809_p3 = pnand %p3807_p1, %p4284_p8 }
  0xf8   : > { %p3810_p11 = pneg %p3809_p3 }
  0xfa   : > { %p3815_p13 = pnand %p3813_p12, %p3810_p11 }
  0xfc   : > { %3818 = shalt.err (!%p3815_p13)
}
  0xfd   : > { %s3819_s22 = scalar_lea.vmem %s464_s0, 16  ;;  %s3826_s19 = scalar_lea.vmem %s464_s0, 32 }
  0xfe   : > { %p3820_p0 = scmp.ne.s32.totalorder %s464_s0, %s3819_s22  ;;  %p3827_p7 = scmp.lt.s32.totalorder %s464_s0, %s464_s0 }
  0xff   : > { %p3828_p9 = scmp.lt.s32.totalorder %s3826_s19, %s3819_s22 }
 0x100   : > { %p3822_p2 = pnand %p3820_p0, %p4284_p8 }
 0x101   : > { %p3829_p4 = por %p3828_p9, %p3827_p7 }
 0x102   : > { %p3823_p5 = pneg %p3822_p2 }
 0x104   : > { %p3830_p10 = pnand %p3829_p4, %p3823_p5 }
 0x106   : > { %3833 = shalt.err (!%p3830_p10)
}
 0x107   : > { %3258 = dma.hbm_to_vmem [thread:$0]  (!%p4268_p6), %s5069_s6, 16, %s464_s0, [#allocation13]  }
 0x108   : > { %s3834_s20 = scalar_lea.hbm %s5071_s8, 16 }
 0x109   : > { %p3835_p1 = scmp.ne.s32.totalorder %s5071_s8, %s3834_s20  ;;  %p3841_p12 = scmp.lt.u32.totalorder %s3834_s20, %s5071_s8 }
 0x10b   : > { %p3837_p3 = pnand %p3835_p1, %p4284_p8 }
 0x10d   : > { %p3838_p11 = pneg %p3837_p3 }
 0x10f   : > { %p3843_p13 = pnand %p3841_p12, %p3838_p11 }
 0x111   : > { %3846 = shalt.err (!%p3843_p13)
}
 0x112   : > { %s3847_s27 = scalar_lea.vmem %s486_s1, 16  ;;  %s3854_s0 = scalar_lea.vmem %s486_s1, 32 }
 0x113   : > { %p3848_p0 = scmp.ne.s32.totalorder %s486_s1, %s3847_s27  ;;  %p3855_p7 = scmp.lt.s32.totalorder %s486_s1, %s486_s1 }
 0x114   : > { %p3856_p9 = scmp.lt.s32.totalorder %s3854_s0, %s3847_s27 }
 0x115   : > { %p3850_p2 = pnand %p3848_p0, %p4284_p8 }
 0x116   : > { %p3857_p4 = por %p3856_p9, %p3855_p7 }
 0x117   : > { %p3851_p5 = pneg %p3850_p2 }
 0x119   : > { %p3858_p10 = pnand %p3857_p4, %p3851_p5 }
 0x11b   : > { %3861 = shalt.err (!%p3858_p10)
}
 0x11c   : > { %3264 = dma.hbm_to_vmem [thread:$0]  (!%p4268_p6), %s5071_s8, 16, %s486_s1, [#allocation16]  }
 0x11d   : > { %s4135_s15 = smov [#allocation20]   ;;  %s3862_s20 = scalar_lea.hbm %s5073_s10, 64 }
 0x11e   : > { %s508_s16 = sshll.u32 %s4135_s15, 4  ;;  %p3863_p1 = scmp.ne.s32.totalorder %s5073_s10, %s3862_s20  ;;  %s509_s16 = int_to_ptr.vmem [resolvable:$true] %s508_s16 }
 0x11f   : > { %p3869_p12 = scmp.lt.u32.totalorder %s3862_s20, %s5073_s10 }
 0x120   : > { %p3865_p3 = pnand %p3863_p1, %p4284_p8 }
 0x122   : > { %p3866_p11 = pneg %p3865_p3 }
 0x124   : > { %p3871_p13 = pnand %p3869_p12, %p3866_p11 }
 0x126   : > { %3874 = shalt.err (!%p3871_p13)
}
 0x127   : > { %s3875_s1 = scalar_lea.vmem %s509_s16, 64  ;;  %p3883_p7 = scmp.lt.s32.totalorder %s509_s16, %s509_s16 }
 0x128   : > { %p3876_p0 = scmp.ne.s32.totalorder %s509_s16, %s3875_s1  ;;  %p3884_p9 = scmp.lt.s32.totalorder %s3875_s1, %s3875_s1 }
 0x12a   : > { %p3878_p2 = pnand %p3876_p0, %p4284_p8  ;;  %p3885_p4 = por %p3884_p9, %p3883_p7 }
 0x12c   : > { %p3879_p5 = pneg %p3878_p2 }
 0x12e   : > { %p3886_p10 = pnand %p3885_p4, %p3879_p5 }
 0x130   : > { %3889 = shalt.err (!%p3886_p10)
}
 0x131   : > { %s4136_s27 = smov 32   ;;  %s4137_s0 = smov 2  }
 0x132   : > { %3270 = dma.hbm_to_vmem [thread:$0]  (!%p4268_p6), %s5073_s10, 64, %s509_s16, [#allocation19], %s4136_s27, %s4136_s27, %s4137_s0  }
 0x133   : > { %s4138_s15 = smov [#allocation23]   ;;  %s4139_s23 = smov [#allocation26]  }
 0x134   : > { %s535_s3 = sshll.u32 %s4138_s15, 4  ;;  %s557_s20 = sshll.u32 %s4139_s23, 4  ;;  %s536_s3 = int_to_ptr.vmem [resolvable:$true] %s535_s3  ;;  %s4524_s20 = int_to_ptr.vmem [resolvable:$true] %s557_s20 }
 0x135   : > { %s3890_s18 = scalar_lea.hbm %s5075_s12, 16 }
 0x136   : > { %p3891_p1 = scmp.ne.s32.totalorder %s5075_s12, %s3890_s18  ;;  %p3897_p12 = scmp.lt.u32.totalorder %s3890_s18, %s5075_s12 }
 0x138   : > { %p3893_p3 = pnand %p3891_p1, %p4284_p8 }
 0x13a   : > { %p3894_p11 = pneg %p3893_p3 }
 0x13c   : > { %p3899_p13 = pnand %p3897_p12, %p3894_p11 }
 0x13e   : > { %3902 = shalt.err (!%p3899_p13)
}
 0x13f   : > { %s3903_s27 = scalar_lea.vmem %s536_s3, 16  ;;  %s3910_s0 = scalar_lea.vmem %s536_s3, 32 }
 0x140   : > { %p3904_p0 = scmp.ne.s32.totalorder %s536_s3, %s3903_s27  ;;  %p3911_p7 = scmp.lt.s32.totalorder %s536_s3, %s536_s3 }
 0x141   : > { %p3912_p9 = scmp.lt.s32.totalorder %s3910_s0, %s3903_s27 }
 0x142   : > { %p3906_p2 = pnand %p3904_p0, %p4284_p8 }
 0x143   : > { %p3913_p4 = por %p3912_p9, %p3911_p7 }
 0x144   : > { %p3907_p5 = pneg %p3906_p2 }
 0x146   : > { %p3914_p10 = pnand %p3913_p4, %p3907_p5 }
 0x148   : > { %3917 = shalt.err (!%p3914_p10)
}
 0x149   : > { %3276 = dma.hbm_to_vmem [thread:$0]  (!%p4268_p6), %s5075_s12, 16, %s536_s3, [#allocation22]  }
 0x14a   : > { %s3918_s30 = scalar_lea.hbm %s5077_s14, 16 }
 0x14b   : > { %p3919_p1 = scmp.ne.s32.totalorder %s5077_s14, %s3918_s30  ;;  %p3925_p12 = scmp.lt.u32.totalorder %s3918_s30, %s5077_s14 }
 0x14d   : > { %p3921_p3 = pnand %p3919_p1, %p4284_p8 }
 0x14f   : > { %p3922_p11 = pneg %p3921_p3 }
 0x151   : > { %p3927_p13 = pnand %p3925_p12, %p3922_p11 }
 0x153   : > { %3930 = shalt.err (!%p3927_p13)
}
 0x154   : > { %s3931_s3 = scalar_lea.vmem %s4524_s20, 16  ;;  %s3938_s16 = scalar_lea.vmem %s4524_s20, 32 }
 0x155   : > { %p3932_p0 = scmp.ne.s32.totalorder %s4524_s20, %s3931_s3  ;;  %p3939_p7 = scmp.lt.s32.totalorder %s4524_s20, %s4524_s20 }
 0x156   : > { %p3940_p9 = scmp.lt.s32.totalorder %s3938_s16, %s3931_s3 }
 0x157   : > { %p3934_p2 = pnand %p3932_p0, %p4284_p8 }
 0x158   : > { %p3941_p4 = por %p3940_p9, %p3939_p7 }
 0x159   : > { %p3935_p5 = pneg %p3934_p2 }
 0x15b   : > { %p3942_p10 = pnand %p3941_p4, %p3935_p5 }
 0x15d   : > { %3945 = shalt.err (!%p3942_p10)
}
 0x15e   : > { %s5117_s19 = sld [smem:[#allocation39_spill]]  ;;  %s5118_s26 = sld [smem:[#allocation38_spill]] }
 0x15f   : > { %s5119_s15 = sld [smem:[#allocation37_spill]]  ;;  %s5120_s23 = sld [smem:[#allocation40_spill]] }
 0x160   : > { %3282 = dma.hbm_to_vmem [thread:$0]  (!%p4268_p6), %s5077_s14, 16, %s4524_s20, [#allocation25]  }
 0x161   : > { %s2799_s28 = sadd.s32 4294967294, %s4094_s21   ;;  %s4570_s25 = sadd.s32 1, %s4094_s21  }
 0x162   : > { %s42_s30 = ssub.s32 %s4094_s21, %s4570_s25  ;;  %p53_p3 = scmp.eq.s32.totalorder %s4094_s21, 0 }
 0x163   : > { %p43_p8 = scmp.eq.s32.totalorder %s42_s30, 0  ;;  %p382_p2 = scmp.eq.s32.totalorder %s2799_s28, 1 }
 0x164   : > { %s45_s18 = sadd.s32 1, %s5117_s19  ;;  %p52_p1 = scmp.ne.s32.totalorder %s5117_s19, %s5118_s26 }
 0x165   : > { %p58_p11 = scmp.ne.s32.totalorder %s5118_s26, %s5119_s15  ;;  %p5122_p13 = scmp.eq.s32.totalorder %s5120_s23, 0 }
 0x166   : > { %s4581_s29 = scalar_select %p43_p8, %s5117_s19, %s45_s18  }
 0x167   : > { %p4583_p12 = por %p53_p3, %p52_p1  ;;  %p4589_p6 = por %p5122_p13, %p58_p11 }
 0x168   : > { %p376_p0 = scmp.eq.s32.totalorder %s5120_s23, 1  ;;  %p3305_p5 = scmp.lt.s32.totalorder %s4094_s21, 2 }
 0x169   : > { %s568_s22 = sand.u32 1, %s5117_s19   ;;  %p4600_p9 = por %p382_p2, %p58_p11 }
 0x16a   : > { %p4596_p7 = por %p376_p0, %p52_p1  ;;  %s2816_s27 = sshll.u32 %s568_s22, 5 }
 0x16b   : > { %s5125_s16 = scalar_select %p4600_p9, 1, 0 }
 0x16c   : > { %s5124_s3 = scalar_select %p4596_p7, 1, 0 }
 0x16d   : > { %s2942_s0 = sshll.u32 %s4094_s21, 9  ;;  %s5126_s30 = sld [smem:[#allocation42_spill]] }
 0x16e   : > { %s572_s19 = scalar_lea.vmem [#allocation3], %s2816_s27  ;;  %p4614_p4 = pnand %p3305_p5, %p4583_p12 }
 0x16f   : > { %s580_s23 = sshll.u32 %s572_s19, 4  ;;  %s4618_s2 = scalar_lea.sflag [#allocation4], %s568_s22  ;;  %s4610_s23 = int_to_ptr.vmem [resolvable:$true] %s580_s23 }
 0x170   : > { %p3948_p8 = pneg %p4614_p4 }
 0x173   : > { %s4608_s18 = scalar_lea.hbm %s5126_s30, %s2942_s0  ;;  %s3951_s1 = scalar_lea.hbm %s5126_s30, 1024 }
 0x174   : > { %s3946_s26 = scalar_lea.hbm %s4608_s18, 512  ;;  %p3952_p11 = scmp.lt.u32.totalorder %s4608_s18, %s5126_s30 }
 0x175   : > { %p3947_p10 = scmp.ne.s32.totalorder %s4608_s18, %s3946_s26  ;;  %p3953_p12 = scmp.lt.u32.totalorder %s3951_s1, %s3946_s26 }
 0x176   : > { %p3955_p0 = scmp.lt.u32.totalorder %s3946_s26, %s4608_s18 }
 0x177   : > { %p3949_p1 = pnand %p3948_p8, %p3947_p10  ;;  %p3954_p13 = por %p3953_p12, %p3952_p11 }
 0x179   : > { %p3950_p3 = pneg %p3949_p1  ;;  %p3956_p2 = por %p3955_p0, %p3954_p13 }
 0x17b   : > { %p3957_p5 = pnand %p3956_p2, %p3950_p3 }
 0x17d   : > { %3960 = shalt.err (!%p3957_p5)
}
 0x17e   : > { %s3961_s22 = scalar_lea.vmem %s4610_s23, 512  ;;  %s4140_s27 = smov [#allocation3]  }
 0x17f   : > { %p3962_p10 = scmp.ne.s32.totalorder %s4610_s23, %s3961_s22  ;;  %s3966_s0 = sshll.u32 %s4140_s27, 4  ;;  %s3967_s0 = int_to_ptr.vmem [resolvable:$false] %s3966_s0 }
 0x180   : > { %s3968_s15 = scalar_lea.vmem %s3967_s0, 1024  ;;  %p3969_p7 = scmp.lt.s32.totalorder %s4610_s23, %s3967_s0 }
 0x181   : > { %p3964_p1 = pnand %p3962_p10, %p3948_p8  ;;  %p3970_p11 = scmp.lt.s32.totalorder %s3968_s15, %s3961_s22 }
 0x183   : > { %p3965_p9 = pneg %p3964_p1  ;;  %p3971_p12 = por %p3970_p11, %p3969_p7 }
 0x185   : > { %p3972_p13 = pnand %p3971_p12, %p3965_p9 }
 0x187   : > { %3975 = shalt.err (!%p3972_p13)
}
 0x188   : > { %3286 = dma.hbm_to_vmem [thread:$0]  (!%p4614_p4), %s4608_s18, 512, %s4610_s23, %s4618_s2, %s5114_s24, %s5114_s24, %s5113_s17  }
 0x189   : > { %s5128_s26 = sld [smem:[#allocation41_spill]] }
 0x18f   : > { %p5129_p8 = scmp.ne.s32.totalorder %s5128_s26, 0 }
 0x190   : > { %s5130_s1 = sld [smem:[#allocation38_spill]] (!%p5129_p8) }
 0x191   : > { %592 = sbr.rel (%p5129_p8) target bundleno = 4783 (0x12af), region = 80 }
 0x196   : > { %s4652_s19 = sand.u32 (!%p5129_p8), 1, %s5130_s1  }
 0x197   : > { %s2821_s22 = sshll.u32 (!%p5129_p8), %s4652_s19, 5  ;;  %s595_s27 = scalar_lea.sflag (!%p5129_p8), [#allocation4], %s4652_s19 }
 0x198   : > { %s4658_s28 = scalar_lea.vmem [#allocation3], %s2821_s22 }
 0x199   : > { %4045 = dma.done.wait (%p4589_p6), %s595_s27, 512  }
 0x19a   : > { %4047 = vsyncadd (%p4589_p6), %s595_s27, 4294966784  ;;  %s5131_s2 = sld [smem:[#allocation40_spill]] }
 0x1a0   : > { %p5132_p7 = scmp.eq.s32.totalorder %s5131_s2, 0 }
 0x1a2   : > { %4049 = dma.done.wait (%p5132_p7), [#allocation7], 1040   ;;  %p5133_p9 = pmov %p5132_p7 }
 0x1a3   : > { %p5134_p4 = pmov %p5132_p7 }
 0x1a4   : > { %4051 = vsyncadd (%p5133_p9), [#allocation7], 4294966256 }
 0x1a5   : > { %4053 = dma.done.wait (%p5134_p4), [#allocation10], 2080   ;;  %p5135_p3 = pmov %p5134_p4 }
 0x1a7   : > { %4055 = vsyncadd (%p5135_p3), [#allocation10], 4294965216  ;;  %p5136_p0 = pmov %p5135_p3 }
 0x1a9   : > { %4057 = dma.done.wait (%p5136_p0), [#allocation13], 1040   ;;  %p5137_p2 = pmov %p5136_p0 }
 0x1aa   : > { %p5138_p6 = pmov %p5136_p0 }
 0x1ab   : > { %4059 = vsyncadd (%p5137_p2), [#allocation13], 4294966256 }
 0x1ac   : > { %4061 = dma.done.wait (%p5138_p6), [#allocation16], 32   ;;  %p5139_p5 = pmov %p5136_p0 }
 0x1ad   : > { %p5140_p10 = pmov %p5136_p0 }
 0x1ae   : > { %4063 = vsyncadd (%p5139_p5), [#allocation16], 4294967264 }
 0x1af   : > { %4065 = dma.done.wait (%p5140_p10), [#allocation19], 4160   ;;  %p5141_p1 = pmov %p5136_p0 }
 0x1b0   : > { %p5142_p11 = pmov %p5136_p0 }
 0x1b1   : > { %4067 = vsyncadd (%p5141_p1), [#allocation19], 4294963136 }
 0x1b2   : > { %4069 = dma.done.wait (%p5142_p11), [#allocation22], 4112   ;;  %p5143_p12 = pmov %p5136_p0 }
 0x1b3   : > { %p5144_p13 = pmov %p5136_p0 }
 0x1b4   : > { %4071 = vsyncadd (%p5143_p12), [#allocation22], 4294963184 }
 0x1b5   : > { %4073 = dma.done.wait (%p5144_p13), [#allocation25], 32   ;;  %p5145_p8 = pmov %p5136_p0 }
 0x1b6   : > { %v4141_v0 = vmov 0   ;;  %v3430_v1 = vld [vmem:[#allocation9 + $0x4] ss:$8 sps:$4 sm:$0xff]   ;;  %v3432_v2 = vld [vmem:[#allocation9] ss:$8 sps:$4 sm:$0xff]   ;;  %v707_v20 = vld [vmem:[%s4658_s28 + $0x18] sm:$0xff] }
 0x1b7   : > { %4075 = vsyncadd (%p5145_p8), [#allocation25], 4294967264  ;;  %838 = vmatprep.mubr.bf16.mxu0 %v4141_v0  ;;  %848 = vmatprep.mubr.bf16.mxu1 %v4141_v0  ;;  %v3433_v3 = vld [vmem:[#allocation9 + $0x14] ss:$8 sps:$4 sm:$0xff]   ;;  %v3435_v4 = vld [vmem:[#allocation9 + $0x10] ss:$8 sps:$4 sm:$0xff]  }
 0x1b8   : > { %806 = vmatprep.subr.bf16.mxu0 %v3430_v1  ;;  %3164 = vmatprep.subr.bf16.mxu1 %v3430_v1  ;;  %v3436_v5 = vld [vmem:[#allocation9 + $0x24] ss:$8 sps:$4 sm:$0xff]   ;;  %v3438_v6 = vld [vmem:[#allocation9 + $0x20] ss:$8 sps:$4 sm:$0xff]   ;;  %v3439_v7 = vld [vmem:[#allocation9 + $0x34] ss:$8 sps:$4 sm:$0xff]  }
 0x1b9   : > { %807 = vmatpush1.bf16.msra.mxu0 %v3432_v2  ;;  %3172 = vmatpush1.bf16.msra.mxu1 %v3432_v2  ;;  %v3441_v8 = vld [vmem:[#allocation9 + $0x30] ss:$8 sps:$4 sm:$0xff]   ;;  %v3442_v9 = vld [vmem:[#allocation9 + $0x44] ss:$8 sps:$4 sm:$0xff]   ;;  %v3444_v10 = vld [vmem:[#allocation9 + $0x40] ss:$8 sps:$4 sm:$0xff]  }
 0x1ba   : > { %808 = vmatprep.subr.bf16.mxu0 %v3433_v3  ;;  %3165 = vmatprep.subr.bf16.mxu1 %v3433_v3  ;;  %v3445_v11 = vld [vmem:[#allocation9 + $0x54] ss:$8 sps:$4 sm:$0xff]   ;;  %v3447_v12 = vld [vmem:[#allocation9 + $0x50] ss:$8 sps:$4 sm:$0xff]   ;;  %v3448_v13 = vld [vmem:[#allocation9 + $0x64] ss:$8 sps:$4 sm:$0xff]  }
 0x1bb   : > { %v3450_v14 = vld [vmem:[#allocation9 + $0x60] ss:$8 sps:$4 sm:$0xff]   ;;  %v3451_v15 = vld [vmem:[#allocation9 + $0x74] ss:$8 sps:$4 sm:$0xff]   ;;  %v3453_v16 = vld [vmem:[#allocation9 + $0x70] ss:$8 sps:$4 sm:$0xff]  }
 0x1bc   : > { %v704_v17 = vld [vmem:[%s4658_s28] sm:$0xff]  ;;  %v705_v18 = vld [vmem:[%s4658_s28 + $0x8] sm:$0xff]  ;;  %v706_v19 = vld [vmem:[%s4658_s28 + $0x10] sm:$0xff]  ;;  %s4706_s17 = scalar_lea.vmem [#allocation27], %s2821_s22  ;;  %s4708_s24 = smov 0  }
 0x1bd   : > { %809 = vmatpush1.bf16.msra.mxu0 %v3435_v4  ;;  %3173 = vmatpush1.bf16.msra.mxu1 %v3435_v4  ;;  %v708_v21 = vpack.c.bf16 %v705_v18, %v704_v17  ;;  %v709_v22 = vpack.c.bf16 %v707_v20, %v706_v19  ;;  %v2853_v24 = vld [vmem:[#allocation11] ss:$0 sm:$0xff]  ;;  %v2854_v27 = vld [vmem:[#allocation11 + $0x1] ss:$0 sm:$0xff] }
 0x1be   : > { %810 = vmatprep.subr.bf16.mxu0 %v3436_v5  ;;  %3166 = vmatprep.subr.bf16.mxu1 %v3436_v5 }
 0x1c1   : > { %811 = vmatpush1.bf16.msra.mxu0 %v3438_v6  ;;  %3174 = vmatpush1.bf16.msra.mxu1 %v3438_v6 }
 0x1c2   : > { %812 = vmatprep.subr.bf16.mxu0 %v3439_v7  ;;  %3167 = vmatprep.subr.bf16.mxu1 %v3439_v7 }
 0x1c5   : > { %813 = vmatpush1.bf16.msra.mxu0 %v3441_v8  ;;  %3175 = vmatpush1.bf16.msra.mxu1 %v3441_v8 }
 0x1c6   : > { %814 = vmatprep.subr.bf16.mxu0 %v3442_v9  ;;  %3168 = vmatprep.subr.bf16.mxu1 %v3442_v9 }
 0x1c9   : > { %815 = vmatpush1.bf16.msra.mxu0 %v3444_v10  ;;  %3176 = vmatpush1.bf16.msra.mxu1 %v3444_v10 }
 0x1ca   : > { %816 = vmatprep.subr.bf16.mxu0 %v3445_v11  ;;  %3169 = vmatprep.subr.bf16.mxu1 %v3445_v11 }
 0x1cd   : > { %817 = vmatpush1.bf16.msra.mxu0 %v3447_v12  ;;  %3177 = vmatpush1.bf16.msra.mxu1 %v3447_v12 }
 0x1ce   : > { %818 = vmatprep.subr.bf16.mxu0 %v3448_v13  ;;  %3170 = vmatprep.subr.bf16.mxu1 %v3448_v13 }
 0x1d1   : > { %819 = vmatpush1.bf16.msra.mxu0 %v3450_v14  ;;  %3178 = vmatpush1.bf16.msra.mxu1 %v3450_v14 }
 0x1d2   : > { %820 = vmatprep.subr.bf16.mxu0 %v3451_v15  ;;  %3171 = vmatprep.subr.bf16.mxu1 %v3451_v15 }
 0x1d5   : > { %821 = vmatpush1.bf16.msra.mxu0 %v3453_v16  ;;  %3179 = vmatpush1.bf16.msra.mxu1 %v3453_v16 }
 0x1d8   : > { %839 = vmatmul.mubr.bf16.vlgmr.msra.gmra.mrb[0].mxu0 %v708_v21  ;;  %849 = vmatmul.mubr.bf16.vlgmr.msra.gmra.mrb[0].mxu1 %v709_v22 }
 0x2ab   : > { %v840_v23 = vpop.f32.mrb[0].mxu0  ;;  %v850_v25 = vpop.f32.mrb[0].mxu1 }
 0x2ac   : > { %v842_v26 = vpop.f32.mrb[1].mxu0  ;;  %v852_v28 = vpop.f32.mrb[1].mxu1  ;;  %v866_v31 = vadd.f32 %v2853_v24, %v840_v23  ;;  %v868_v32 = vadd.f32 %v2853_v24, %v850_v25 }
 0x2ad   : > { %v844_v29 = vpop.f32.mrb[2].mxu0  ;;  %v854_v30 = vpop.f32.mrb[2].mxu1  ;;  %v879_v37 = vadd.f32 %v2854_v27, %v842_v26  ;;  %v881_v38 = vadd.f32 %v2854_v27, %v852_v28 }
 0x2ae   : > { %v867_v33 = vadd.f32 %v2853_v24, %v844_v29  ;;  %v869_v34 = vadd.f32 %v2853_v24, %v854_v30  ;;  %v846_v35 = vpop.f32.mrb[3].mxu0  ;;  %v856_v36 = vpop.f32.mrb[3].mxu1 }
 0x2af   : > { %v880_v39 = vadd.f32 %v2854_v27, %v846_v35  ;;  %v882_v40 = vadd.f32 %v2854_v27, %v856_v36 }
 0x2b0   : > { %v4696_v41 = vpack.c.bf16 %v867_v33, %v866_v31  ;;  %v4698_v42 = vpack.c.bf16 %v869_v34, %v868_v32 }
 0x2b1   : > { %v4700_v43 = vpack.c.bf16 %v880_v39, %v879_v37  ;;  %v4702_v44 = vpack.c.bf16 %v882_v40, %v881_v38 }
 0x2b2 LB: >> { %v3454_v45 = vld [vmem:[#allocation6] sm:$0xff]   ;;  %v4142_v46 = vmov 0.0   ;;  %v3455_v47 = vld [vmem:[#allocation6 + $0x8] sm:$0xff]   ;;  %vm4143_vm0 = vmmov 0   ;;  %vm1021_vm1 = vcmask 261120   ;;  %v3456_v49 = vld [vmem:[#allocation6 + $0x10] sm:$0xff]   ;;  %s4098_s24 = sphi %s4708_s24, %s890_s24  }
 0x2b3   : >> { %3028 = vmatprep.subr.bf16.mxu0 %v4142_v46  ;;  %3048 = vmatprep.subr.bf16.mxu1 %v4142_v46  ;;  %v1026_v48 = vsel %vm1021_vm1, %v4696_v41, 0  ;;  %v3457_v50 = vld [vmem:[#allocation6 + $0x18] sm:$0xff]   ;;  %v3458_v51 = vld [vmem:[#allocation6 + $0x20] sm:$0xff]   ;;  %v3459_v52 = vld [vmem:[#allocation6 + $0x28] sm:$0xff]   ;;  %s2855_s20 = sshll.u32 %s4098_s24, 3  ;;  %v1072_v1 = vsel %vm1021_vm1, %v4698_v42, 0 }
 0x2b4   : >> { %3029 = vmatpush3.bf16.msra.mxu0 %v3454_v45  ;;  %3044 = vmatprep.mubr.msk.bf16.mxu0 %vm4143_vm0, %v4142_v46  ;;  %v3460_v53 = vld [vmem:[#allocation6 + $0x30] sm:$0xff]   ;;  %s892_s18 = scalar_lea.vmem %s4658_s28, %s2855_s20 [#allocation3]  ;;  %v3461_v54 = vld [vmem:[#allocation6 + $0x38] sm:$0xff]   ;;  %v2856_v58 = vld [vmem:[#allocation8] ss:$0 sm:$0xff]  ;;  %vm1114_vm2 = vcmask 130048   ;;  %s4144_s23 = smov 96  }
 0x2b5   : >> { %3030 = vmatprep.subr.bf16.mxu0 %v4142_v46  ;;  %3050 = vmatprep.mubr.msk.bf16.mxu1 %vm4143_vm0, %v4142_v46  ;;  %v4732_v55 = vld [vmem:[%s892_s18] sm:$0xff]  ;;  %v4734_v56 = vld [vmem:[%s892_s18 + $0x10] sm:$0xff]  ;;  %s4145_s0 = smov 64   ;;  %s4146_s15 = smov 32   ;;  %vm1909_vm3 = vcmask 523264   ;;  %vm1914_vm4 = vcmask 785408  }
 0x2b6   : >> { %3049 = vmatpush3.bf16.xpose.msra.mxu1 %v1026_v48  ;;  %v2943_v57 = vpack.c.bf16 %v4734_v56, %v4732_v55  ;;  %s2080_s26 = scalar_lea.vmem [#allocation2], %s2855_s20  ;;  %s890_s24 = sadd.s32 1, %s4098_s24  }
 0x2b7   : >> { %3054 = vmatprep.subr.bf16.mxu1 %v4142_v46  ;;  %p887_p7 = scmp.ge.s32.totalorder %s890_s24, 2  }
 0x2b8   : >> { %3031 = vmatpush3.bf16.msra.mxu0 %v3455_v47  ;;  %s4928_s1 = smov (%p887_p7), 0  }
 0x2b9   : >> { %3032 = vmatprep.subr.bf16.mxu0 %v4142_v46 }
 0x2bc   : >> { %3033 = vmatpush3.bf16.msra.mxu0 %v3456_v49 }
 0x2bd   : >> { %3034 = vmatprep.subr.bf16.mxu0 %v4142_v46 }
 0x2c0   : >> { %3035 = vmatpush3.bf16.msra.mxu0 %v3457_v50 }
 0x2c1   : >> { %3036 = vmatprep.subr.bf16.mxu0 %v4142_v46 }
 0x2c4   : >> { %3037 = vmatpush3.bf16.msra.mxu0 %v3458_v51 }
 0x2c5   : >> { %3038 = vmatprep.subr.bf16.mxu0 %v4142_v46 }
 0x2c8   : >> { %3039 = vmatpush3.bf16.msra.mxu0 %v3459_v52 }
 0x2c9   : >> { %3040 = vmatprep.subr.bf16.mxu0 %v4142_v46 }
 0x2cc   : >> { %3041 = vmatpush3.bf16.msra.mxu0 %v3460_v53 }
 0x2cd   : >> { %3042 = vmatprep.subr.bf16.mxu0 %v4142_v46 }
 0x2d0   : >> { %3043 = vmatpush3.bf16.msra.mxu0 %v3461_v54 }
 0x2d1   : >> { %3096 = vmatprep.subr.bf16.mxu0 %v4142_v46 }
 0x2d3   : >> { %3045 = vmatmul.mubr.bf16.vlgmr.msra.gmra.mrb[0].mxu0 %v2943_v57 }
 0x2d4   : >> { %3098 = vmatprep.mubr.msk.bf16.mxu0 %vm4143_vm0, %v4142_v46 }
 0x3a6   : >> { %v1008_v59 = vpop.f32.mrb[0].mxu0 }
 0x3a7   : >> { %v1009_v60 = vadd.f32 %v2856_v58, %v1008_v59  ;;  %v3046_v61 = vpop.f32.mrb[1].mxu0 }
 0x3a8   : >> { %v1011_v62 = vpop.f32.mrb[2].mxu0 }
 0x3a9   : >> { %v4742_v63 = vpack.c.bf16 %v1009_v60, %v1009_v60  ;;  %v3047_v0 = vpop.f32.mrb[3].mxu0  ;;  %v1012_v2 = vadd.f32 %v2856_v58, %v1011_v62 }
 0x3ab   : >> { %3051 = vmatmul.mubr.msk.bf16.vlgmr.msra.gmra.mrb[0].mxu1 %vm1021_vm1, %v4742_v63  ;;  %v4751_v3 = vpack.c.bf16 %v1012_v2, %v1012_v2 }
 0x3ac   : >> { %3055 = vmatpush3.bf16.xpose.msra.mxu1 %v1072_v1  ;;  %3056 = vmatprep.mubr.msk.bf16.mxu1 %vm4143_vm0, %v4142_v46 }
 0x3ad   : >> { %3060 = vmatprep.subr.bf16.mxu1 %v4142_v46 }
 0x3b3   : >> { %3057 = vmatmul.mubr.msk.bf16.vlgmr.msra.gmra.mrb[4].mxu1 %vm1021_vm1, %v4751_v3 }
 0x3b4   : >> { %3061 = vmatpush3.bf16.msra.mxu1 %v4700_v43  ;;  %3062 = vmatprep.mubr.msk.bf16.mxu1 %vm4143_vm0, %v4142_v46 }
 0x3b5   : >> { %3066 = vmatprep.subr.bf16.mxu1 %v4142_v46 }
 0x47e   : >> { %v1062_v4 = vpop.f32.mrb[0].mxu1 }
 0x47f   : >> { %v3052_v5 = vpop.f32.mrb[1].mxu1  ;;  %v1115_v6 = vsel %vm1114_vm2, %v1062_v4, -inf }
 0x480   : >> { %1116 = vmax.xlane.f32.xlu0 %v1115_v6  ;;  %v1065_v7 = vpop.f32.mrb[2].mxu1 }
 0x481   : >> { %v3053_v8 = vpop.f32.mrb[3].mxu1 }
 0x486   : >> { %v1108_v9 = vpop.f32.mrb[4].mxu1 }
 0x487   : >> { %v3058_v10 = vpop.f32.mrb[5].mxu1  ;;  %v1118_v11 = vsel %vm1114_vm2, %v1108_v9, -inf }
 0x488   : >> { %1119 = vmax.xlane.f32.xlu0 %v1118_v11  ;;  %v1111_v12 = vpop.f32.mrb[6].mxu1 }
 0x489   : >> { %v3059_v13 = vpop.f32.mrb[7].mxu1 }
 0x49e   : >> { %1230 = vrot.lane.b32.xlu0 %v4696_v41, %s4144_s23 }
 0x50d   : >> { %v1117_v14 = vpop.xlane.xlu0 %1116 }
 0x50e   : >> { %v1121_v15 = vsub.f32 %v1062_v4, %v1117_v14 }
 0x510   : >> { %v1123_v16 = vmul.f32 1.442695, %v1121_v15 }
 0x512   : >> { %3470 = vpow2.f32 %v1123_v16 }
 0x515   : >> { %v1120_v17 = vpop.xlane.xlu0 %1119 }
 0x516   : >> { %v1122_v18 = vsub.f32 %v1108_v9, %v1120_v17 }
 0x518   : >> { %v1125_v19 = vmul.f32 1.442695, %v1122_v18 }
 0x519   : >> { %v1231_v31 = vpop.permute.xlu0 %1230 }
 0x51a   : >> { %3472 = vpow2.f32 %v1125_v19  ;;  %v1236_v33 = vsel %vm1021_vm1, %v1231_v31, 0 }
 0x51c   : >> { %v3471_v20 = vpop.eup %3470 }
 0x51d   : >> { %v1127_v21 = vsel %vm1114_vm2, %v3471_v20, 0.0 }
 0x51e   : >> { %1128 = vadd.xlane.f32.xlu1 %v1127_v21 }
 0x524   : >> { %v3473_v22 = vpop.eup %3472 }
 0x525   : >> { %v1130_v23 = vsel %vm1114_vm2, %v3473_v22, 0.0 }
 0x526   : >> { %1131 = vadd.xlane.f32.xlu1 %v1130_v23 }
 0x537   : >> { %1227 = vrot.lane.b32.xlu1 %v4742_v63, %s4144_s23 }
 0x53b   : >> { %1281 = vrot.lane.b32.xlu1 %v4698_v42, %s4144_s23 }
 0x53f   : >> { %1278 = vrot.lane.b32.xlu1 %v4751_v3, %s4144_s23 }
 0x5ab   : >> { %v1129_v24 = vpop.xlane.xlu1 %1128 }
 0x5ac   : >> { %3474 = vrcp.f32 %v1129_v24 }
 0x5b3   : >> { %v1132_v25 = vpop.xlane.xlu1 %1131 }
 0x5b4   : >> { %3476 = vrcp.f32 %v1132_v25 }
 0x5b6   : >> { %v3475_v26 = vpop.eup %3474 }
 0x5b7   : >> { %v1135_v27 = vmul.f32 %v3475_v26, %v3471_v20  ;;  %v1228_v34 = vpop.permute.xlu1 %1227 }
 0x5b9   : >> { %v1137_v28 = vpack.c.bf16 %v1135_v27, %v1135_v27 }
 0x5bb   : >> { %3063 = vmatmul.mubr.msk.bf16.vlgmr.msra.gmra.mrb[8].mxu1 %vm1114_vm2, %v1137_v28  ;;  %v1282_v35 = vpop.permute.xlu1 %1281 }
 0x5bc   : >> { %3067 = vmatpush3.bf16.msra.mxu1 %v4702_v44  ;;  %3068 = vmatprep.mubr.msk.bf16.mxu1 %vm4143_vm0, %v4142_v46  ;;  %v1287_v36 = vsel %vm1021_vm1, %v1282_v35, 0 }
 0x5bd   : >> { %3072 = vmatprep.subr.bf16.mxu1 %v4142_v46 }
 0x5be   : >> { %v3477_v29 = vpop.eup %3476 }
 0x5bf   : >> { %v1136_v30 = vmul.f32 %v3477_v29, %v3473_v22  ;;  %v1279_v37 = vpop.permute.xlu1 %1278 }
 0x5c1   : >> { %v1138_v32 = vpack.c.bf16 %v1136_v30, %v1136_v30 }
 0x5c3   : >> { %3069 = vmatmul.mubr.msk.bf16.vlgmr.msra.gmra.mrb[12].mxu1 %vm1114_vm2, %v1138_v32 }
 0x5c4   : >> { %3074 = vmatprep.mubr.msk.bf16.mxu1 %vm4143_vm0, %v4142_v46 }
 0x5c5   : >> { %3073 = vmatpush3.bf16.xpose.msra.mxu1 %v1236_v33 }
 0x5c6   : >> { %3078 = vmatprep.subr.bf16.mxu1 %v4142_v46 }
 0x5cc   : >> { %3075 = vmatmul.mubr.msk.bf16.vlgmr.msra.gmra.mrb[16].mxu1 %vm1021_vm1, %v1228_v34 }
 0x5cd   : >> { %3079 = vmatpush3.bf16.xpose.msra.mxu1 %v1287_v36  ;;  %3080 = vmatprep.mubr.msk.bf16.mxu1 %vm4143_vm0, %v4142_v46 }
 0x5ce   : >> { %3084 = vmatprep.subr.bf16.mxu1 %v4142_v46 }
 0x5d4   : >> { %3081 = vmatmul.mubr.msk.bf16.vlgmr.msra.gmra.mrb[20].mxu1 %vm1021_vm1, %v1279_v37 }
 0x5d5   : >> { %3086 = vmatprep.mubr.msk.bf16.mxu1 %vm4143_vm0, %v4142_v46 }
 0x68e   : >> { %v4789_v38 = vpop.f32.mrb[8].mxu1 }
 0x68f   : >> { %v3064_v39 = vpop.f32.mrb[9].mxu1 }
 0x690   : >> { %v1179_v40 = vpop.f32.mrb[10].mxu1 }
 0x691   : >> { %v3065_v45 = vpop.f32.mrb[11].mxu1 }
 0x696   : >> { %v4791_v47 = vpop.f32.mrb[12].mxu1 }
 0x697   : >> { %v3070_v48 = vpop.f32.mrb[13].mxu1 }
 0x698   : >> { %v1222_v49 = vpop.f32.mrb[14].mxu1 }
 0x699   : >> { %v3071_v50 = vpop.f32.mrb[15].mxu1 }
 0x69f   : >> { %v1272_v51 = vpop.f32.mrb[16].mxu1 }
 0x6a0   : >> { %v3076_v52 = vpop.f32.mrb[17].mxu1  ;;  %v1329_v53 = vsel %vm1114_vm2, %v1272_v51, -inf }
 0x6a1   : >> { %1330 = vmax.xlane.f32.xlu0 %v1329_v53  ;;  %v1275_v54 = vpop.f32.mrb[18].mxu1 }
 0x6a2   : >> { %v3077_v57 = vpop.f32.mrb[19].mxu1 }
 0x6a7   : >> { %v1323_v58 = vpop.f32.mrb[20].mxu1 }
 0x6a8   : >> { %v3082_v59 = vpop.f32.mrb[21].mxu1  ;;  %v1332_v60 = vsel %vm1114_vm2, %v1323_v58, -inf }
 0x6a9   : >> { %1333 = vmax.xlane.f32.xlu1 %v1332_v60  ;;  %v1326_v61 = vpop.f32.mrb[22].mxu1 }
 0x6aa   : >> { %v3083_v62 = vpop.f32.mrb[23].mxu1 }
 0x6ba   : >> { %1401 = vrot.lane.b32.xlu1 %v4702_v44, %s4144_s23 }
 0x6be   : >> { %1451 = vrot.lane.b32.xlu1 %v4696_v41, %s4145_s0 }
 0x6c2   : >> { %1501 = vrot.lane.b32.xlu1 %v4698_v42, %s4145_s0 }
 0x6c6   : >> { %1499 = vrot.lane.b32.xlu1 %v4751_v3, %s4145_s0 }
 0x72e   : >> { %v1331_v0 = vpop.xlane.xlu0 %1330 }
 0x72f   : >> { %v1335_v1 = vsub.f32 %v1272_v51, %v1331_v0 }
 0x731   : >> { %v1337_v2 = vmul.f32 1.442695, %v1335_v1 }
 0x733   : >> { %3478 = vpow2.f32 %v1337_v2 }
 0x736   : >> { %v1334_v4 = vpop.xlane.xlu1 %1333 }
 0x737   : >> { %v1336_v5 = vsub.f32 %v1323_v58, %v1334_v4 }
 0x739   : >> { %v1339_v6 = vmul.f32 1.442695, %v1336_v5 }
 0x73a   : >> { %v1402_v7 = vpop.permute.xlu1 %1401 }
 0x73b   : >> { %3480 = vpow2.f32 %v1339_v6 }
 0x73d   : >> { %v3479_v8 = vpop.eup %3478 }
 0x73e   : >> { %v1452_v9 = vpop.permute.xlu1 %1451  ;;  %v1341_v10 = vsel %vm1114_vm2, %v3479_v8, 0.0 }
 0x73f   : >> { %v1457_v11 = vsel %vm1021_vm1, %v1452_v9, 0  ;;  %1342 = vadd.xlane.f32.xlu0 %v1341_v10 }
 0x740   : >> { %3097 = vmatpush3.bf16.xpose.msra.mxu0 %v1457_v11 }
 0x741   : >> { %3108 = vmatprep.subr.bf16.mxu0 %v4142_v46 }
 0x742   : >> { %v1502_v23 = vpop.permute.xlu1 %1501 }
 0x743   : >> { %v1507_v25 = vsel %vm1021_vm1, %v1502_v23, 0 }
 0x745   : >> { %v3481_v12 = vpop.eup %3480 }
 0x746   : >> { %v1344_v13 = vsel %vm1114_vm2, %v3481_v12, 0.0  ;;  %v1500_v26 = vpop.permute.xlu1 %1499 }
 0x747   : >> { %1345 = vadd.xlane.f32.xlu0 %v1344_v13 }
 0x75d   : >> { %1354 = vrot.lane.b32.xlu0 %v4700_v43, %s4144_s23 }
 0x761   : >> { %1449 = vrot.lane.b32.xlu0 %v4742_v63, %s4145_s0 }
 0x7cc   : >> { %v1343_v14 = vpop.xlane.xlu0 %1342 }
 0x7cd   : >> { %3482 = vrcp.f32 %v1343_v14 }
 0x7d4   : >> { %v1346_v15 = vpop.xlane.xlu0 %1345 }
 0x7d5   : >> { %3484 = vrcp.f32 %v1346_v15 }
 0x7d7   : >> { %v3483_v16 = vpop.eup %3482 }
 0x7d8   : >> { %v1349_v17 = vmul.f32 %v3483_v16, %v3479_v8  ;;  %v1355_v18 = vpop.permute.xlu0 %1354 }
 0x7d9   : >> { %3085 = vmatpush3.bf16.msra.mxu1 %v1355_v18 }
 0x7da   : >> { %v1351_v19 = vpack.c.bf16 %v1349_v17, %v1349_v17  ;;  %3090 = vmatprep.subr.bf16.mxu1 %v4142_v46 }
 0x7dc   : >> { %3087 = vmatmul.mubr.msk.bf16.vlgmr.msra.gmra.mrb[24].mxu1 %vm1114_vm2, %v1351_v19  ;;  %v1450_v20 = vpop.permute.xlu0 %1449 }
 0x7dd   : >> { %3091 = vmatpush3.bf16.msra.mxu1 %v1402_v7  ;;  %3099 = vmatmul.mubr.msk.bf16.vlgmr.msra.gmra.mrb[4].mxu0 %vm1021_vm1, %v1450_v20 }
 0x7de   : >> { %3092 = vmatprep.mubr.msk.bf16.mxu1 %vm4143_vm0, %v4142_v46  ;;  %3102 = vmatprep.subr.bf16.mxu1 %v4142_v46 }
 0x7df   : >> { %v3485_v21 = vpop.eup %3484  ;;  %3110 = vmatprep.mubr.msk.bf16.mxu0 %vm4143_vm0, %v4142_v46 }
 0x7e0   : >> { %v1350_v22 = vmul.f32 %v3485_v21, %v3481_v12 }
 0x7e2   : >> { %v1352_v24 = vpack.c.bf16 %v1350_v22, %v1350_v22 }
 0x7e4   : >> { %3093 = vmatmul.mubr.msk.bf16.vlgmr.msra.gmra.mrb[28].mxu1 %vm1114_vm2, %v1352_v24 }
 0x7e5   : >> { %3104 = vmatprep.mubr.msk.bf16.mxu1 %vm4143_vm0, %v4142_v46 }
 0x7e6   : >> { %3103 = vmatpush3.bf16.xpose.msra.mxu1 %v1507_v25 }
 0x7e7   : >> { %3114 = vmatprep.subr.bf16.mxu1 %v4142_v46 }
 0x7ed   : >> { %3105 = vmatmul.mubr.msk.bf16.vlgmr.msra.gmra.mrb[32].mxu1 %vm1021_vm1, %v1500_v26 }
 0x7ee   : >> { %3116 = vmatprep.mubr.msk.bf16.mxu1 %vm4143_vm0, %v4142_v46 }
 0x8af   : >> { %v4827_v27 = vpop.f32.mrb[24].mxu1 }
 0x8b0   : >> { %v3088_v28 = vpop.f32.mrb[25].mxu1  ;;  %v1493_v29 = vpop.f32.mrb[4].mxu0 }
 0x8b1   : >> { %v1397_v30 = vpop.f32.mrb[26].mxu1  ;;  %v3100_v31 = vpop.f32.mrb[5].mxu0  ;;  %v1549_v32 = vsel %vm1114_vm2, %v1493_v29, -inf }
 0x8b2   : >> { %v3089_v33 = vpop.f32.mrb[27].mxu1  ;;  %1550 = vmax.xlane.f32.xlu0 %v1549_v32  ;;  %v1496_v34 = vpop.f32.mrb[6].mxu0 }
 0x8b3   : >> { %v3101_v35 = vpop.f32.mrb[7].mxu0 }
 0x8b4   : >> { %v1447_v35 = vpack.c.bf16 %v4827_v27, %v4827_v27 }
 0x8b7   : >> { %v4830_v36 = vpop.f32.mrb[28].mxu1 }
 0x8b8   : >> { %v3094_v37 = vpop.f32.mrb[29].mxu1 }
 0x8b9   : >> { %v1444_v39 = vpop.f32.mrb[30].mxu1  ;;  %v1448_v37 = vpack.c.bf16 %v4830_v36, %v4830_v36 }
 0x8ba   : >> { %v3095_v40 = vpop.f32.mrb[31].mxu1 }
 0x8c0   : >> { %v1543_v45 = vpop.f32.mrb[32].mxu1 }
 0x8c1   : >> { %v3106_v48 = vpop.f32.mrb[33].mxu1  ;;  %v1552_v49 = vsel %vm1114_vm2, %v1543_v45, -inf }
 0x8c2   : >> { %1553 = vmax.xlane.f32.xlu1 %v1552_v49  ;;  %v1546_v50 = vpop.f32.mrb[34].mxu1 }
 0x8c3   : >> { %v3107_v51 = vpop.f32.mrb[35].mxu1 }
 0x8d3   : >> { %1619 = vrot.lane.b32.xlu1 %v4702_v44, %s4145_s0 }
 0x8d7   : >> { %1669 = vrot.lane.b32.xlu1 %v4696_v41, %s4146_s15  ;;  %v4926_v41 = vmov (%p887_p7), 0.0  }
 0x8db   : >> { %1719 = vrot.lane.b32.xlu1 %v4698_v42, %s4146_s15 }
 0x8df   : >> { %1717 = vrot.lane.b32.xlu1 %v4751_v3, %s4146_s15 }
 0x93f   : >> { %v1551_v52 = vpop.xlane.xlu0 %1550 }
 0x940   : >> { %v1555_v53 = vsub.f32 %v1493_v29, %v1551_v52 }
 0x942   : >> { %v1557_v54 = vmul.f32 1.442695, %v1555_v53 }
 0x944   : >> { %3486 = vpow2.f32 %v1557_v54 }
 0x94e   : >> { %v3487_v57 = vpop.eup %3486 }
 0x94f   : >> { %v1554_v58 = vpop.xlane.xlu1 %1553  ;;  %v1561_v59 = vsel %vm1114_vm2, %v3487_v57, 0.0 }
 0x950   : >> { %v1556_v60 = vsub.f32 %v1543_v45, %v1554_v58  ;;  %1562 = vadd.xlane.f32.xlu0 %v1561_v59 }
 0x952   : >> { %v1559_v61 = vmul.f32 1.442695, %v1556_v60 }
 0x953   : >> { %v1620_v62 = vpop.permute.xlu1 %1619 }
 0x954   : >> { %3488 = vpow2.f32 %v1559_v61  ;;  %3115 = vmatpush3.bf16.msra.mxu1 %v1620_v62 }
 0x955   : >> { %3126 = vmatprep.subr.bf16.mxu1 %v4142_v46 }
 0x957   : >> { %v1670_v8 = vpop.permute.xlu1 %1669 }
 0x95b   : >> { %v1720_v11 = vpop.permute.xlu1 %1719 }
 0x95c   : >> { %v1725_v12 = vsel %vm1021_vm1, %v1720_v11, 0 }
 0x95e   : >> { %v3489_v0 = vpop.eup %3488 }
 0x95f   : >> { %v1564_v1 = vsel %vm1114_vm2, %v3489_v0, 0.0  ;;  %v1718_v15 = vpop.permute.xlu1 %1717 }
 0x960   : >> { %1565 = vadd.xlane.f32.xlu0 %v1564_v1 }
 0x976   : >> { %1573 = vrot.lane.b32.xlu0 %v4700_v43, %s4145_s0 }
 0x97a   : >> { %1667 = vrot.lane.b32.xlu0 %v4742_v63, %s4146_s15  ;;  %v1675_v63 = vsel %vm1021_vm1, %v1670_v8, 0  ;;  %v3466_v8 = vld [vmem:[#allocation12 + $0x20] sm:$0xff]  }
 0x9dd   : >> { %v1563_v3 = vpop.xlane.xlu0 %1562 }
 0x9de   : >> { %3490 = vrcp.f32 %v1563_v3 }
 0x9e8   : >> { %v3491_v2 = vpop.eup %3490 }
 0x9e9   : >> { %v1569_v5 = vmul.f32 %v3491_v2, %v3487_v57 }
 0x9eb   : >> { %v1571_v7 = vpack.c.bf16 %v1569_v5, %v1569_v5  ;;  %v3463_v5 = vld [vmem:[#allocation12 + $0x8] sm:$0xff]  }
 0x9ed   : >> { %v1566_v4 = vpop.xlane.xlu0 %1565 }
 0x9ee   : >> { %3492 = vrcp.f32 %v1566_v4  ;;  %v3462_v4 = vld [vmem:[#allocation12] sm:$0xff]  }
 0x9f1   : >> { %v1574_v6 = vpop.permute.xlu0 %1573 }
 0x9f2   : >> { %3109 = vmatpush3.bf16.msra.mxu0 %v1574_v6  ;;  %v3464_v6 = vld [vmem:[#allocation12 + $0x10] sm:$0xff]  }
 0x9f3   : >> { %3120 = vmatprep.subr.bf16.mxu0 %v4142_v46 }
 0x9f5   : >> { %3111 = vmatmul.mubr.msk.bf16.vlgmr.msra.gmra.mrb[8].mxu0 %vm1114_vm2, %v1571_v7  ;;  %v1668_v14 = vpop.permute.xlu0 %1667  ;;  %v3465_v7 = vld [vmem:[#allocation12 + $0x18] sm:$0xff]  }
 0x9f6   : >> { %3122 = vmatprep.mubr.msk.bf16.mxu0 %vm4143_vm0, %v4142_v46 }
 0x9f8   : >> { %v3493_v9 = vpop.eup %3492 }
 0x9f9   : >> { %v1570_v10 = vmul.f32 %v3493_v9, %v3489_v0  ;;  %v3467_v9 = vld [vmem:[#allocation12 + $0x28] sm:$0xff]  }
 0x9fb   : >> { %3121 = vmatpush3.bf16.xpose.msra.mxu0 %v1675_v63  ;;  %v1572_v13 = vpack.c.bf16 %v1570_v10, %v1570_v10  ;;  %v3468_v63 = vld [vmem:[#allocation12 + $0x30] sm:$0xff]   ;;  %v3469_v10 = vld [vmem:[#allocation12 + $0x38] sm:$0xff]  }
 0x9fc   : >> { %3132 = vmatprep.subr.bf16.mxu0 %v4142_v46 }
 0x9fd   : >> { %3117 = vmatmul.mubr.msk.bf16.vlgmr.msra.gmra.mrb[36].mxu1 %vm1114_vm2, %v1572_v13 }
 0x9fe   : >> { %3127 = vmatpush3.bf16.xpose.msra.mxu1 %v1725_v12  ;;  %3128 = vmatprep.mubr.msk.bf16.mxu1 %vm4143_vm0, %v4142_v46 }
 0x9ff   : >> { %3138 = vmatprep.subr.bf16.mxu1 %v4142_v46 }
 0xa02   : >> { %3123 = vmatmul.mubr.msk.bf16.vlgmr.msra.gmra.mrb[12].mxu0 %vm1021_vm1, %v1668_v14 }
 0xa03   : >> { %3134 = vmatprep.mubr.msk.bf16.mxu0 %vm4143_vm0, %v4142_v46 }
 0xa05   : >> { %3129 = vmatmul.mubr.msk.bf16.vlgmr.msra.gmra.mrb[40].mxu1 %vm1021_vm1, %v1718_v15 }
 0xa06   : >> { %3140 = vmatprep.mubr.msk.bf16.mxu1 %vm4143_vm0, %v4142_v46 }
 0xac8   : >> { %v1613_v16 = vpop.f32.mrb[8].mxu0 }
 0xac9   : >> { %v3112_v17 = vpop.f32.mrb[9].mxu0  ;;  %v1665_v57 = vpack.c.bf16 %v1613_v16, %v1613_v16 }
 0xaca   : >> { %v1616_v18 = vpop.f32.mrb[10].mxu0 }
 0xacb   : >> { %v3113_v19 = vpop.f32.mrb[11].mxu0 }
 0xad0   : >> { %v1659_v20 = vpop.f32.mrb[36].mxu1 }
 0xad1   : >> { %v3118_v21 = vpop.f32.mrb[37].mxu1  ;;  %v1666_v39 = vpack.c.bf16 %v1659_v20, %v1659_v20 }
 0xad2   : >> { %v1662_v22 = vpop.f32.mrb[38].mxu1 }
 0xad3   : >> { %v3119_v23 = vpop.f32.mrb[39].mxu1 }
 0xad5   : >> { %v1711_v24 = vpop.f32.mrb[12].mxu0 }
 0xad6   : >> { %v3124_v25 = vpop.f32.mrb[13].mxu0  ;;  %v1767_v26 = vsel %vm1114_vm2, %v1711_v24, -inf }
 0xad7   : >> { %1768 = vmax.xlane.f32.xlu0 %v1767_v26  ;;  %v1714_v28 = vpop.f32.mrb[14].mxu0  ;;  %v1226_v25 = vpack.c.bf16 %v4791_v47, %v4791_v47 }
 0xad8   : >> { %v3125_v29 = vpop.f32.mrb[15].mxu0  ;;  %v1761_v30 = vpop.f32.mrb[40].mxu1 }
 0xad9   : >> { %v3130_v31 = vpop.f32.mrb[41].mxu1  ;;  %v1770_v32 = vsel %vm1114_vm2, %v1761_v30, -inf }
 0xada   : >> { %1771 = vmax.xlane.f32.xlu1 %v1770_v32  ;;  %v1764_v33 = vpop.f32.mrb[42].mxu1 }
 0xadb   : >> { %v3131_v34 = vpop.f32.mrb[43].mxu1 }
 0xaeb   : >> { %1837 = vrot.lane.b32.xlu1 %v4702_v44, %s4146_s15 }
 0xaef   : >> { %1887 = vrot.lane.b32.xlu1 %v1447_v35, %s4146_s15 }
 0xaf3   : >> { %1889 = vrot.lane.b32.xlu1 %v1448_v37, %s4146_s15  ;;  %v2884_v37 = vld [vmem:[#allocation14] ss:$0 sm:$0xff] }
 0xaf7   : >> { %1895 = vrot.lane.b32.xlu1 %v1666_v39, %s4145_s0 }
 0xb64   : >> { %v1769_v40 = vpop.xlane.xlu0 %1768 }
 0xb65   : >> { %v1773_v45 = vsub.f32 %v1711_v24, %v1769_v40  ;;  %v1225_v24 = vpack.c.bf16 %v4789_v38, %v4789_v38 }
 0xb67   : >> { %v1775_v48 = vmul.f32 1.442695, %v1773_v45  ;;  %v1772_v49 = vpop.xlane.xlu1 %1771 }
 0xb68   : >> { %v1774_v50 = vsub.f32 %v1761_v30, %v1772_v49 }
 0xb69   : >> { %3494 = vpow2.f32 %v1775_v48 }
 0xb6a   : >> { %v1777_v51 = vmul.f32 1.442695, %v1774_v50 }
 0xb6b   : >> { %v1838_v52 = vpop.permute.xlu1 %1837 }
 0xb6c   : >> { %3496 = vpow2.f32 %v1777_v51  ;;  %3139 = vmatpush3.bf16.msra.mxu1 %v1838_v52 }
 0xb6f   : >> { %v1888_v21 = vpop.permute.xlu1 %1887 }
 0xb70   : >> { %v1905_v28 = vsel %vm1021_vm1, %v1225_v24, %v1888_v21 }
 0xb73   : >> { %v3495_v27 = vpop.eup %3494  ;;  %v1890_v22 = vpop.permute.xlu1 %1889 }
 0xb74   : >> { %v1779_v53 = vsel %vm1114_vm2, %v3495_v27, 0.0  ;;  %v1908_v29 = vsel %vm1021_vm1, %v1226_v25, %v1890_v22 }
 0xb75   : >> { %1780 = vadd.xlane.f32.xlu0 %v1779_v53 }
 0xb76   : >> { %v3497_v36 = vpop.eup %3496 }
 0xb77   : >> { %v1782_v54 = vsel %vm1114_vm2, %v3497_v36, 0.0 }
 0xb79   : >> { %1783 = vadd.xlane.f32.xlu0 %v1782_v54 }
 0xb8f   : >> { %1791 = vrot.lane.b32.xlu0 %v4700_v43, %s4146_s15 }
 0xb93   : >> { %1893 = vrot.lane.b32.xlu0 %v1665_v57, %s4145_s0 }
 0xc02   : >> { %v1781_v58 = vpop.xlane.xlu0 %1780 }
 0xc03   : >> { %3498 = vrcp.f32 %v1781_v58 }
 0xc06   : >> { %v1784_v59 = vpop.xlane.xlu0 %1783 }
 0xc07   : >> { %3500 = vrcp.f32 %v1784_v59 }
 0xc0a   : >> { %v1792_v60 = vpop.permute.xlu0 %1791 }
 0xc0b   : >> { %3133 = vmatpush3.bf16.msra.mxu0 %v1792_v60 }
 0xc0c   : >> { %3144 = vmatprep.subr.bf16.mxu0 %v4142_v46 }
 0xc0d   : >> { %v3499_v61 = vpop.eup %3498 }
 0xc0e   : >> { %v1787_v62 = vmul.f32 %v3499_v61, %v3495_v27  ;;  %v1894_v23 = vpop.permute.xlu0 %1893 }
 0xc0f   : >> { %v1911_v31 = vsel %vm1909_vm3, %v1905_v28, %v1894_v23 }
 0xc10   : >> { %v1789_v0 = vpack.c.bf16 %v1787_v62, %v1787_v62 }
 0xc11   : >> { %v3501_v1 = vpop.eup %3500 }
 0xc12   : >> { %v1788_v3 = vmul.f32 %v3501_v1, %v3497_v36  ;;  %3135 = vmatmul.mubr.msk.bf16.vlgmr.msra.gmra.mrb[16].mxu0 %vm1114_vm2, %v1789_v0  ;;  %v2894_v1 = vld [vmem:[#allocation15] ss:$0 sm:$0xff] }
 0xc13   : >> { %3160 = vmatprep.mubr.msk.bf16.mxu0 %vm4143_vm0, %v4142_v46  ;;  %3145 = vmatpush3.bf16.msra.mxu0 %v3462_v4 }
 0xc14   : >> { %v1790_v2 = vpack.c.bf16 %v1788_v3, %v1788_v3  ;;  %3146 = vmatprep.subr.bf16.mxu0 %v4142_v46 }
 0xc16   : >> { %3141 = vmatmul.mubr.msk.bf16.vlgmr.msra.gmra.mrb[44].mxu1 %vm1114_vm2, %v1790_v2  ;;  %v2895_v2 = vld [vmem:[#allocation17] ss:$0 sm:$0xff] }
 0xc17   : >> { %3147 = vmatpush3.bf16.msra.mxu0 %v3463_v5 }
 0xc18   : >> { %3148 = vmatprep.subr.bf16.mxu0 %v4142_v46 }
 0xc1b   : >> { %3149 = vmatpush3.bf16.msra.mxu0 %v3464_v6 }
 0xc1c   : >> { %3150 = vmatprep.subr.bf16.mxu0 %v4142_v46 }
 0xc1f   : >> { %3151 = vmatpush3.bf16.msra.mxu0 %v3465_v7 }
 0xc20   : >> { %3152 = vmatprep.subr.bf16.mxu0 %v4142_v46 }
 0xc23   : >> { %3153 = vmatpush3.bf16.msra.mxu0 %v3466_v8 }
 0xc24   : >> { %3154 = vmatprep.subr.bf16.mxu0 %v4142_v46 }
 0xc27   : >> { %3155 = vmatpush3.bf16.msra.mxu0 %v3467_v9 }
 0xc28   : >> { %3156 = vmatprep.subr.bf16.mxu0 %v4142_v46 }
 0xc2b   : >> { %3157 = vmatpush3.bf16.msra.mxu0 %v3468_v63 }
 0xc2c   : >> { %3158 = vmatprep.subr.bf16.mxu0 %v4142_v46  ;;  %v1896_v46 = vpop.permute.xlu1 %1895 }
 0xc2d   : >> { %v1913_v30 = vsel %vm1909_vm3, %v1908_v29, %v1896_v46 }
 0xc2f   : >> { %3159 = vmatpush3.bf16.msra.mxu0 %v3469_v10 }
 0xce5   : >> { %v1831_v11 = vpop.f32.mrb[16].mxu0 }
 0xce6   : >> { %v1883_v12 = vpack.c.bf16 %v1831_v11, %v1831_v11  ;;  %v3136_v13 = vpop.f32.mrb[17].mxu0 }
 0xce7   : >> { %v1834_v14 = vpop.f32.mrb[18].mxu0 }
 0xce8   : >> { %1899 = vrot.lane.b32.xlu0 %v1883_v12, %s4144_s23  ;;  %v3137_v15 = vpop.f32.mrb[19].mxu0 }
 0xce9   : >> { %v1877_v16 = vpop.f32.mrb[44].mxu1  ;;  %v4920_v15 = vmov (%p887_p7), 0.0  }
 0xcea   : >> { %v1884_v17 = vpack.c.bf16 %v1877_v16, %v1877_v16  ;;  %v3142_v18 = vpop.f32.mrb[45].mxu1  ;;  %v4922_v16 = vmov (%p887_p7), 0.0  }
 0xceb   : >> { %v1880_v19 = vpop.f32.mrb[46].mxu1 }
 0xcec   : >> { %1901 = vrot.lane.b32.xlu1 %v1884_v17, %s4144_s23  ;;  %v3143_v20 = vpop.f32.mrb[47].mxu1  ;;  %v4924_v17 = vmov (%p887_p7), 0.0  }
 0xd5a   : >> { %v1900_v26 = vpop.permute.xlu0 %1899 }
 0xd5b   : >> { %v1916_v33 = vsel %vm1914_vm4, %v1911_v31, %v1900_v26 }
 0xd5e   : >> { %v1902_v32 = vpop.permute.xlu1 %1901 }
 0xd5f   : >> { %v1918_v34 = vsel %vm1914_vm4, %v1913_v30, %v1902_v32 }
 0xd60   : >> { %v2885_v35 = vcombine.low %v1916_v33, %v1918_v34 }
 0xd62   : >> { %3161 = vmatmul.mubr.bf16.vlgmr.msra.gmra.mrb[20].mxu0 %v2885_v35 }
 0xe35   : >> { %v2030_v39 = vpop.f32.mrb[20].mxu0 }
 0xe36   : >> { %v2031_v38 = vadd.f32 %v2884_v37, %v2030_v39  ;;  %v3162_v40 = vpop.f32.mrb[21].mxu0 }
 0xe37   : >> { %v2033_v45 = vpop.f32.mrb[22].mxu0 }
 0xe38   : >> { %v2034_v47 = vadd.f32 %v2884_v37, %v2033_v45  ;;  %2039 = vadd.xlane.f32.xlu0 %v2031_v38  ;;  %v3163_v48 = vpop.f32.mrb[23].mxu0 }
 0xe3a   : >> { %2041 = vadd.xlane.f32.xlu1 %v2034_v47 }
 0xec5   : >> { %v2040_v49 = vpop.xlane.xlu0 %2039 }
 0xec6   : >> { %v2044_v50 = vmul.f32 0.0078125, %v2040_v49 }
 0xec7   : >> { %v2042_v51 = vpop.xlane.xlu1 %2041 }
 0xec8   : >> { %v2046_v52 = vsub.f32 %v2031_v38, %v2044_v50  ;;  %v2045_v27 = vmul.f32 0.0078125, %v2042_v51 }
 0xeca   : >> { %v2047_v53 = vsub.f32 %v2034_v47, %v2045_v27  ;;  %v2048_v36 = vmul.f32 %v2046_v52, %v2046_v52 }
 0xecc   : >> { %2050 = vadd.xlane.f32.xlu0 %v2048_v36  ;;  %v2049_v54 = vmul.f32 %v2047_v53, %v2047_v53 }
 0xed0   : >> { %2052 = vadd.xlane.f32.xlu0 %v2049_v54 }
 0xf59   : >> { %v2051_v57 = vpop.xlane.xlu0 %2050 }
 0xf5a   : >> { %v2054_v58 = vmul.f32 0.0078125, %v2051_v57 }
 0xf5c   : >> { %v2056_v59 = vadd.f32 1e-05, %v2054_v58 }
 0xf5d   : >> { %v2053_v60 = vpop.xlane.xlu0 %2052 }
 0xf5e   : >> { %3502 = vrsqrt.f32 %v2056_v59  ;;  %v2055_v61 = vmul.f32 0.0078125, %v2053_v60 }
 0xf60   : >> { %v2057_v62 = vadd.f32 1e-05, %v2055_v61 }
 0xf62   : >> { %3504 = vrsqrt.f32 %v2057_v62 }
 0xf68   : >> { %v3503_v0 = vpop.eup %3502 }
 0xf69   : >> { %v2060_v3 = vmul.f32 %v3503_v0, %v2046_v52 }
 0xf6b   : >> { %v2068_v4 = vmul.f32 %v2894_v1, %v2060_v3 }
 0xf6c   : >> { %v3505_v5 = vpop.eup %3504 }
 0xf6d   : >> { %v2076_v6 = vadd.f32 %v2895_v2, %v2068_v4  ;;  %v2061_v7 = vmul.f32 %v3505_v5, %v2047_v53 }
 0xf6f   : >> { %v2078_v8 = vadd.f32 %v2076_v6, %v4732_v55  ;;  %v2069_v9 = vmul.f32 %v2894_v1, %v2061_v7  ;;  %889 = sbr.rel (!%p887_p7) target bundleno = 690 (0x2b2), region = 200 }
 0xf71   : >> { %2081 = vst [vmem:[%s2080_s26] sm:$0xff] %v2078_v8  ;;  %v2077_v63 = vadd.f32 %v2895_v2, %v2069_v9 }
 0xf73   : >> { %v2079_v10 = vadd.f32 %v2077_v63, %v4734_v56 }
 0xf75   : >> { %2082 = vst [vmem:[%s2080_s26 + $0x10] sm:$0xff] %v2079_v10 }
 0xf7c   : > { %v4908_v11 = vld [vmem:[#allocation2] sm:$0xff]  ;;  %v4910_v12 = vld [vmem:[#allocation2 + $0x8] sm:$0xff]  ;;  %v4912_v13 = vld [vmem:[#allocation2 + $0x10] sm:$0xff] }
 0xf7d   : > { %v4914_v55 = vld [vmem:[#allocation2 + $0x18] sm:$0xff]  ;;  %v2087_v14 = vpack.c.bf16 %v4910_v12, %v4908_v11 }
 0xf7e   : > { %v2088_v56 = vpack.c.bf16 %v4914_v55, %v4912_v13 }
 0xf7f LB: >> { %v4147_v42 = vmov 0   ;;  %s2946_s22 = sshll.u32 %s4118_s1, 7  ;;  %v2122_v53 = vlaneseq  ;;  %s2898_s2 = sshll.u32 %s4118_s1, 1  ;;  %s4118_s1 = sphi %s4928_s1, %s2094_s1   ;;  %v4114_v41 = vphi %v4926_v41, %v5149_v41   ;;  %v4110_v17 = vphi %v4924_v17, %v5148_v17   ;;  %v4106_v16 = vphi %v4922_v16, %v5147_v16   ;;  %v4102_v15 = vphi %v4920_v15, %v5146_v15  }
 0xf80   : >> { %2244 = vmatprep.mubr.bf16.mxu0 %v4147_v42  ;;  %s4946_s27 = scalar_lea.vmem [#allocation18], %s2946_s22  ;;  %s4957_s28 = scalar_lea.vmem [#allocation21], %s2946_s22 }
 0xf81   : >> { %v3506_v43 = vld [vmem:[%s4946_s27 + $0x4] ss:$8 sps:$4 sm:$0xff]   ;;  %v3508_v44 = vld [vmem:[%s4946_s27] ss:$8 sps:$4 sm:$0xff]   ;;  %v3509_v18 = vld [vmem:[%s4946_s27 + $0x14] ss:$8 sps:$4 sm:$0xff]  }
 0xf82   : >> { %2212 = vmatprep.subr.bf16.mxu0 %v3506_v43  ;;  %v3511_v19 = vld [vmem:[%s4946_s27 + $0x10] ss:$8 sps:$4 sm:$0xff]   ;;  %v3512_v20 = vld [vmem:[%s4946_s27 + $0x24] ss:$8 sps:$4 sm:$0xff]   ;;  %v3514_v21 = vld [vmem:[%s4946_s27 + $0x20] ss:$8 sps:$4 sm:$0xff]  }
 0xf83   : >> { %2213 = vmatpush1.bf16.msra.mxu0 %v3508_v44  ;;  %v3515_v22 = vld [vmem:[%s4946_s27 + $0x34] ss:$8 sps:$4 sm:$0xff]   ;;  %v3517_v23 = vld [vmem:[%s4946_s27 + $0x30] ss:$8 sps:$4 sm:$0xff]   ;;  %v3518_v46 = vld [vmem:[%s4946_s27 + $0x44] ss:$8 sps:$4 sm:$0xff]  }
 0xf84   : >> { %2214 = vmatprep.subr.bf16.mxu0 %v3509_v18  ;;  %v3530_v24 = vld [vmem:[%s4957_s28 + $0x40] sm:$0xff]   ;;  %v3532_v28 = vld [vmem:[%s4957_s28 + $0x48] sm:$0xff]   ;;  %v3534_v30 = vld [vmem:[%s4957_s28 + $0x50] sm:$0xff]   ;;  %v2123_v36 = vshrl.u32 %v2122_v53, 7  ;;  %s2119_s24 = scalar_lea.vmem [#allocation20], %s2898_s2  ;;  %s2094_s1 = sadd.s32 1, %s4118_s1  }
 0xf85   : >> { %v3531_v25 = vld [vmem:[%s4957_s28] sm:$0xff]   ;;  %3000 = vmatprep.subr.bf16.mxu1 %v3530_v24  ;;  %v3533_v29 = vld [vmem:[%s4957_s28 + $0x8] sm:$0xff]   ;;  %v3521_v31 = vld [vmem:[%s4946_s27 + $0x54] ss:$8 sps:$4 sm:$0xff]   ;;  %p2091_p9 = scmp.ge.s32.totalorder %s2094_s1, 2  }
 0xf86   : >> { %v3520_v26 = vld [vmem:[%s4946_s27 + $0x40] ss:$8 sps:$4 sm:$0xff]   ;;  %3001 = vmatpush3.bf16.msra.mxu1 %v3531_v25  ;;  %v3523_v32 = vld [vmem:[%s4946_s27 + $0x50] ss:$8 sps:$4 sm:$0xff]   ;;  %v3524_v35 = vld [vmem:[%s4946_s27 + $0x64] ss:$8 sps:$4 sm:$0xff]  }
 0xf87   : >> { %2215 = vmatpush1.bf16.msra.mxu0 %v3511_v19  ;;  %3002 = vmatprep.subr.bf16.mxu1 %v3532_v28  ;;  %v3535_v33 = vld [vmem:[%s4957_s28 + $0x10] sm:$0xff]   ;;  %v3536_v34 = vld [vmem:[%s4957_s28 + $0x58] sm:$0xff]   ;;  %v3526_v37 = vld [vmem:[%s4946_s27 + $0x60] ss:$8 sps:$4 sm:$0xff]   ;;  %v2124_v54 = vsub.s32 0, %v2123_v36  ;;  %v2128_v58 = vsub.s32 1, %v2123_v36 }
 0xf88   : >> { %2216 = vmatprep.subr.bf16.mxu0 %v3512_v20  ;;  %v3537_v39 = vld [vmem:[%s4957_s28 + $0x18] sm:$0xff]   ;;  %v3538_v38 = vld [vmem:[%s4957_s28 + $0x60] sm:$0xff]   ;;  %v3540_v48 = vld [vmem:[%s4957_s28 + $0x68] sm:$0xff]   ;;  %s5150_s20 = sld [smem:[#allocation40_spill]] (%p2091_p9)  ;;  %s2561_s23 = sshll.u32 (%p2091_p9), %s4706_s17, 4  ;;  %s5017_s23 = int_to_ptr.vmem [resolvable:$true] %s2561_s23 }
 0xf89   : >> { %v3527_v40 = vld [vmem:[%s4946_s27 + $0x74] ss:$8 sps:$4 sm:$0xff]   ;;  %v3539_v45 = vld [vmem:[%s4957_s28 + $0x20] sm:$0xff]   ;;  %v3529_v47 = vld [vmem:[%s4946_s27 + $0x70] ss:$8 sps:$4 sm:$0xff]   ;;  %s5151_s26 = sld [smem:[#allocation46_spill]] (%p2091_p9) }
 0xf8a   : >> { %3003 = vmatpush3.bf16.msra.mxu1 %v3533_v29  ;;  %v3541_v49 = vld [vmem:[%s4957_s28 + $0x28] sm:$0xff]   ;;  %v3542_v50 = vld [vmem:[%s4957_s28 + $0x70] sm:$0xff]   ;;  %v3544_v52 = vld [vmem:[%s4957_s28 + $0x78] sm:$0xff]   ;;  %s2547_s22 = scalar_lea.sflag (%p2091_p9), [#allocation5], %s4652_s19  ;;  %s3976_s27 = scalar_lea.vmem (%p2091_p9), %s5017_s23, 512 }
 0xf8b   : >> { %2217 = vmatpush1.bf16.msra.mxu0 %v3514_v21  ;;  %3004 = vmatprep.subr.bf16.mxu1 %v3534_v30  ;;  %v3543_v51 = vld [vmem:[%s4957_s28 + $0x30] sm:$0xff]   ;;  %v3545_v27 = vld [vmem:[%s4957_s28 + $0x38] sm:$0xff]   ;;  %v2120_v57 = vld [vmem:[%s2119_s24] sm:$0x3]  ;;  %p3977_p4 = scmp.ne.s32.totalorder (%p2091_p9), %s5017_s23, %s3976_s27  ;;  %p5152_p3 = scmp.ne.s32.totalorder (%p2091_p9), %s5124_s3, 0 }
 0xf8c   : >> { %2218 = vmatprep.subr.bf16.mxu0 %v3515_v22  ;;  %v2125_v59 = vrot.slane %v2120_v57, %v2124_v54  ;;  %v2129_v60 = vrot.slane %v2120_v57, %v2128_v58  ;;  %s4148_s28 = smov (%p2091_p9), [#allocation27]  }
 0xf8d   : > { %p3978_p0 = pnand (%p2091_p9), %p3977_p4, %p5152_p3  ;;  %s3980_s2 = sshll.u32 (%p2091_p9), %s4148_s28, 4  ;;  %s3981_s2 = int_to_ptr.vmem [resolvable:$false] %s3980_s2 }
 0xf8e   : >> { %3005 = vmatpush3.bf16.msra.mxu1 %v3535_v33  ;;  %s2949_s18 = sshll.u32 (%p2091_p9), %s5150_s20, 9  ;;  %s3982_s24 = scalar_lea.vmem (%p2091_p9), %s3981_s2, 1024 }
 0xf8f   : >> { %2219 = vmatpush1.bf16.msra.mxu0 %v3517_v23  ;;  %3006 = vmatprep.subr.bf16.mxu1 %v3536_v34  ;;  %s5015_s1 = scalar_lea.hbm (%p2091_p9), %s5151_s26, %s2949_s18  ;;  %p3979_p2 = pneg (%p2091_p9), %p3978_p0 }
 0xf90   : >> { %2220 = vmatprep.subr.bf16.mxu0 %v3518_v46  ;;  %p3983_p6 = scmp.lt.s32.totalorder (%p2091_p9), %s5017_s23, %s3981_s2  ;;  %p3984_p5 = scmp.lt.s32.totalorder (%p2091_p9), %s3982_s24, %s3976_s27 }
 0xf92   : >> { %3007 = vmatpush3.bf16.msra.mxu1 %v3537_v39  ;;  %p3985_p10 = por (%p2091_p9), %p3984_p5, %p3983_p6 }
 0xf93   : >> { %2221 = vmatpush1.bf16.msra.mxu0 %v3520_v26  ;;  %3008 = vmatprep.subr.bf16.mxu1 %v3538_v38 }
 0xf94   : >> { %2222 = vmatprep.subr.bf16.mxu0 %v3521_v31  ;;  %p3986_p1 = pnand (%p2091_p9), %p3985_p10, %p3979_p2 }
 0xf96   : >> { %3009 = vmatpush3.bf16.msra.mxu1 %v3539_v45 }
 0xf97   : >> { %2223 = vmatpush1.bf16.msra.mxu0 %v3523_v32  ;;  %3010 = vmatprep.subr.bf16.mxu1 %v3540_v48 }
 0xf98   : >> { %2224 = vmatprep.subr.bf16.mxu0 %v3524_v35 }
 0xf9a   : >> { %3011 = vmatpush3.bf16.msra.mxu1 %v3541_v49 }
 0xf9b   : >> { %2225 = vmatpush1.bf16.msra.mxu0 %v3526_v37  ;;  %3012 = vmatprep.subr.bf16.mxu1 %v3542_v50 }
 0xf9c   : >> { %2226 = vmatprep.subr.bf16.mxu0 %v3527_v40 }
 0xf9e   : >> { %3013 = vmatpush3.bf16.msra.mxu1 %v3543_v51 }
 0xf9f   : >> { %2227 = vmatpush1.bf16.msra.mxu0 %v3529_v47  ;;  %3014 = vmatprep.subr.bf16.mxu1 %v3544_v52 }
 0xfa2   : >> { %2245 = vmatmul.mubr.bf16.vlgmr.msra.gmra.mrb[0].mxu0 %v2087_v14  ;;  %3015 = vmatpush3.bf16.msra.mxu1 %v3545_v27 }
 0xfa3   : >> { %2254 = vmatprep.mubr.bf16.mxu0 %v4147_v42 }
 0xfaa   : >> { %2255 = vmatmul.mubr.bf16.gmra.mrb[4].mxu0 %v2088_v56 }
0x1075   : >> { %v2246_v61 = vpop.f32.mrb[0].mxu0 }
0x1076   : >> { %v2247_v62 = vadd.f32 %v2246_v61, %v2125_v59  ;;  %v2248_v0 = vpop.f32.mrb[1].mxu0 }
0x1077   : >> { %v2249_v1 = vadd.f32 %v2248_v0, %v2129_v60  ;;  %v2250_v3 = vpop.f32.mrb[2].mxu0 }
0x1078   : >> { %v2251_v2 = vadd.f32 %v2250_v3, %v2125_v59  ;;  %v2252_v4 = vpop.f32.mrb[3].mxu0  ;;  %v2265_v6 = vmax.f32 %v2247_v62, 0.0 }
0x1079   : >> { %v2253_v5 = vadd.f32 %v2252_v4, %v2129_v60  ;;  %v2266_v8 = vmax.f32 %v2249_v1, 0.0 }
0x107a   : >> { %v2267_v7 = vmax.f32 %v2251_v2, 0.0 }
0x107b   : >> { %v2268_v9 = vmax.f32 %v2253_v5, 0.0 }
0x107c   : >> { %v2273_v63 = vpack.c.bf16 %v2267_v7, %v2265_v6 }
0x107d   : >> { %v2256_v10 = vpop.f32.mrb[4].mxu0  ;;  %v2274_v42 = vpack.c.bf16 %v2268_v9, %v2266_v8 }
0x107e   : >> { %v2257_v43 = vadd.f32 %v2256_v10, %v2125_v59  ;;  %v2258_v44 = vpop.f32.mrb[5].mxu0 }
0x107f   : >> { %v2259_v18 = vadd.f32 %v2258_v44, %v2129_v60  ;;  %v2260_v19 = vpop.f32.mrb[6].mxu0  ;;  %2439 = vmatprep.mubr.bf16.mxu1 %v2274_v42 }
0x1080   : >> { %v2261_v20 = vadd.f32 %v2260_v19, %v2125_v59  ;;  %v2262_v21 = vpop.f32.mrb[7].mxu0  ;;  %2440 = vmatmul.mubr.bf16.vlgmr.msra.gmra.mrb[0].mxu1 %v2273_v63  ;;  %v2269_v23 = vmax.f32 %v2257_v43, 0.0  ;;  %v2933_v19 = vld [vmem:[#allocation24] ss:$0 sm:$0xff] (%p2091_p9) }
0x1081   : >> { %v2263_v22 = vadd.f32 %v2262_v21, %v2129_v60  ;;  %v2270_v24 = vmax.f32 %v2259_v18, 0.0  ;;  %v2934_v21 = vld [vmem:[#allocation26] ss:$0 sm:$0xff] (%p2091_p9) }
0x1082   : >> { %v2271_v46 = vmax.f32 %v2261_v20, 0.0 }
0x1083   : >> { %v2272_v25 = vmax.f32 %v2263_v22, 0.0 }
0x1084   : >> { %v2275_v26 = vpack.c.bf16 %v2271_v46, %v2269_v23 }
0x1085   : >> { %v2276_v28 = vpack.c.bf16 %v2272_v25, %v2270_v24 }
0x1087   : >> { %2447 = vmatprep.mubr.bf16.mxu1 %v2276_v28 }
0x1088   : >> { %2448 = vmatmul.mubr.bf16.gmra.mrb[4].mxu1 %v2275_v26 }
0x1153   : >> { %v3016_v29 = vpop.f32.mrb[0].mxu1 }
0x1154   : >> { %v3017_v30 = vpop.f32.mrb[1].mxu1 }
0x1155   : >> { %v3018_v31 = vadd.f32 %v3017_v30, %v3016_v29  ;;  %v3019_v32 = vpop.f32.mrb[2].mxu1 }
0x1156   : >> { %v3020_v33 = vpop.f32.mrb[3].mxu1 }
0x1157   : >> { %v2456_v34 = vadd.f32 %v4114_v41, %v3018_v31   ;;  %v3021_v35 = vadd.f32 %v3020_v33, %v3019_v32 }
0x1159   : >> { %v2457_v37 = vadd.f32 %v4110_v17, %v3021_v35   ;;  %v5149_v41 = vmov %v2456_v34 }
0x115a   : > { %v2932_v41 = vld [vmem:[#allocation23] ss:$0 sm:$0xff] (%p2091_p9) }
0x115b   : >> { %v3022_v39 = vpop.f32.mrb[4].mxu1  ;;  %v5148_v17 = vmov %v2457_v37  ;;  %v2467_v51 = vadd.f32 (%p2091_p9), %v2932_v41, %v2456_v34  ;;  %v2468_v27 = vadd.f32 (%p2091_p9), %v2932_v41, %v2457_v37 }
0x115c   : >> { %v3023_v38 = vpop.f32.mrb[5].mxu1 }
0x115d   : >> { %v3024_v40 = vadd.f32 %v3023_v38, %v3022_v39  ;;  %v3025_v45 = vpop.f32.mrb[6].mxu1  ;;  %2093 = sbr.rel (!%p2091_p9) target bundleno = 3967 (0xf7f), region = 211  ;;  %2473 = vadd.xlane.f32.xlu0 (%p2091_p9), %v2467_v51 }
0x115e   : >> { %v3026_v47 = vpop.f32.mrb[7].mxu1 }
0x115f   : >> { %v2458_v48 = vadd.f32 %v4106_v16, %v3024_v40   ;;  %v3027_v49 = vadd.f32 %v3026_v47, %v3025_v45 }
0x1161   : >> { %v2459_v50 = vadd.f32 %v4102_v15, %v3027_v49   ;;  %v5147_v16 = vmov %v2458_v48  ;;  %v2469_v52 = vadd.f32 (%p2091_p9), %v2932_v41, %v2458_v48  ;;  %2475 = vadd.xlane.f32.xlu0 (%p2091_p9), %v2468_v27 }
0x1163   : >> { %v5146_v15 = vmov %v2459_v50  ;;  %2477 = vadd.xlane.f32.xlu1 (%p2091_p9), %v2469_v52  ;;  %v2470_v53 = vadd.f32 (%p2091_p9), %v2932_v41, %v2459_v50 }
0x1167   : > { %2479 = vadd.xlane.f32.xlu1 %v2470_v53 }
0x11ea   : > { %v2474_v36 = vpop.xlane.xlu0 %2473 }
0x11eb   : > { %v2482_v57 = vmul.f32 0.0078125, %v2474_v36 }
0x11ed   : > { %v2486_v59 = vsub.f32 %v2467_v51, %v2482_v57 }
0x11ee   : > { %v2476_v61 = vpop.xlane.xlu0 %2475 }
0x11ef   : > { %v2483_v0 = vmul.f32 0.0078125, %v2476_v61  ;;  %v2490_v1 = vmul.f32 %v2486_v59, %v2486_v59 }
0x11f0   : > { %v2478_v54 = vpop.xlane.xlu1 %2477 }
0x11f1   : > { %v2484_v58 = vmul.f32 0.0078125, %v2478_v54  ;;  %v2487_v14 = vsub.f32 %v2468_v27, %v2483_v0  ;;  %2494 = vadd.xlane.f32.xlu0 %v2490_v1 }
0x11f3   : > { %v2488_v60 = vsub.f32 %v2469_v52, %v2484_v58  ;;  %v2491_v16 = vmul.f32 %v2487_v14, %v2487_v14 }
0x11f4   : > { %v2480_v62 = vpop.xlane.xlu1 %2479 }
0x11f5   : > { %v2485_v3 = vmul.f32 0.0078125, %v2480_v62  ;;  %v2492_v15 = vmul.f32 %v2488_v60, %v2488_v60  ;;  %2496 = vadd.xlane.f32.xlu1 %v2491_v16 }
0x11f7   : > { %v2489_v56 = vsub.f32 %v2470_v53, %v2485_v3  ;;  %2498 = vadd.xlane.f32.xlu0 %v2492_v15 }
0x11f9   : > { %v2493_v17 = vmul.f32 %v2489_v56, %v2489_v56 }
0x11fb   : > { %2500 = vadd.xlane.f32.xlu1 %v2493_v17 }
0x127e   : > { %v2495_v2 = vpop.xlane.xlu0 %2494 }
0x127f   : > { %v2502_v4 = vmul.f32 0.0078125, %v2495_v2 }
0x1281   : > { %v2506_v5 = vadd.f32 1e-05, %v2502_v4 }
0x1282   : > { %v2497_v6 = vpop.xlane.xlu1 %2496 }
0x1283   : > { %3546 = vrsqrt.f32 %v2506_v5  ;;  %v2503_v8 = vmul.f32 0.0078125, %v2497_v6 }
0x1284   : > { %v2499_v7 = vpop.xlane.xlu0 %2498 }
0x1285   : > { %v2504_v9 = vmul.f32 0.0078125, %v2499_v7  ;;  %v2507_v63 = vadd.f32 1e-05, %v2503_v8 }
0x1287   : > { %v2508_v10 = vadd.f32 1e-05, %v2504_v9  ;;  %3548 = vrsqrt.f32 %v2507_v63 }
0x1288   : > { %v2501_v42 = vpop.xlane.xlu1 %2500 }
0x1289   : > { %v2505_v43 = vmul.f32 0.0078125, %v2501_v42  ;;  %3550 = vrsqrt.f32 %v2508_v10 }
0x128b   : > { %v2509_v44 = vadd.f32 1e-05, %v2505_v43 }
0x128d   : > { %3552 = vrsqrt.f32 %v2509_v44  ;;  %v3547_v18 = vpop.eup %3546 }
0x128e   : > { %v2514_v20 = vmul.f32 %v3547_v18, %v2486_v59 }
0x1290   : > { %v2524_v22 = vmul.f32 %v2933_v19, %v2514_v20 }
0x1291   : > { %v3549_v23 = vpop.eup %3548 }
0x1292   : > { %v2534_v24 = vadd.f32 %v2934_v21, %v2524_v22  ;;  %v2515_v25 = vmul.f32 %v3549_v23, %v2487_v14 }
0x1293   : > { %v3551_v46 = vpop.eup %3550 }
0x1294   : > { %v2516_v26 = vmul.f32 %v3551_v46, %v2488_v60  ;;  %v2538_v28 = vadd.f32 %v2534_v24, %v4908_v11  ;;  %v2525_v29 = vmul.f32 %v2933_v19, %v2515_v25 }
0x1296   : > { %v2526_v31 = vmul.f32 %v2933_v19, %v2516_v26  ;;  %2542 = vst [vmem:[%s4706_s17] sm:$0xff] %v2538_v28  ;;  %v2535_v32 = vadd.f32 %v2934_v21, %v2525_v29 }
0x1297   : > { %v3553_v30 = vpop.eup %3552 }
0x1298   : > { %v2517_v33 = vmul.f32 %v3553_v30, %v2489_v56  ;;  %v2536_v34 = vadd.f32 %v2934_v21, %v2526_v31  ;;  %v2539_v35 = vadd.f32 %v2535_v32, %v4910_v12 }
0x129a   : > { %v2527_v37 = vmul.f32 %v2933_v19, %v2517_v33  ;;  %v2540_v39 = vadd.f32 %v2536_v34, %v4912_v13  ;;  %2543 = vst [vmem:[%s4706_s17 + $0x8] sm:$0xff] %v2539_v35 }
0x129c   : > { %v2537_v38 = vadd.f32 %v2934_v21, %v2527_v37  ;;  %2544 = vst [vmem:[%s4706_s17 + $0x10] sm:$0xff] %v2540_v39 }
0x129e   : > { %v2541_v11 = vadd.f32 %v2537_v38, %v4914_v55 }
0x12a0   : > { %2545 = vst [vmem:[%s4706_s17 + $0x18] sm:$0xff] %v2541_v11 }
0x12a1   : > { %3989 = shalt.err (!%p3986_p1)
}
0x12a2   : > { %s3990_s17 = scalar_lea.hbm %s5015_s1, 512  ;;  %s3994_s0 = scalar_lea.hbm %s5151_s26, 1024 }
0x12a3   : > { %p3991_p11 = scmp.ne.s32.totalorder %s5015_s1, %s3990_s17  ;;  %p3995_p8 = scmp.lt.u32.totalorder %s5015_s1, %s5151_s26 }
0x12a4   : > { %p3996_p7 = scmp.lt.u32.totalorder %s3994_s0, %s3990_s17  ;;  %p3998_p4 = scmp.lt.u32.totalorder %s3990_s17, %s5015_s1 }
0x12a5   : > { %p3992_p12 = pnand %p3991_p11, %p5152_p3 }
0x12a6   : > { %p3997_p9 = por %p3996_p7, %p3995_p8 }
0x12a7   : > { %p3993_p13 = pneg %p3992_p12 }
0x12a8   : > { %p3999_p0 = por %p3998_p4, %p3997_p9 }
0x12aa   : > { %p4000_p2 = pnand %p3999_p0, %p3993_p13 }
0x12ac   : > { %4003 = shalt.err (!%p4000_p2)
}
0x12ad   : > { %s4149_s27 = smov 128   ;;  %s4150_s2 = smov 8  }
0x12ae   : > { %3238 = dma.vmem_to_hbm [thread:$0]  (%p5152_p3), %s5017_s23, 512, %s5015_s1, %s2547_s22, %s4149_s27, %s4149_s27, %s4150_s2  }
0x12af PF: > { %s5153_s24 = sld [smem:[#allocation37_spill]]  ;;  %p5154_p6 = scmp.ne.s32.totalorder %s5125_s16, 0 }
0x12b0   : > { %p5155_p5 = scmp.ge.s32.totalorder %s4094_s21, 2 }
0x12b2   : > { %p3288_p10 = pnand %p5155_p5, %p5154_p6 }
0x12b5   : > { %s2576_s20 = sand.u32 1, %s5153_s24  }
0x12b6   : > { %s2577_s17 = scalar_lea.sflag [#allocation5], %s2576_s20 }
0x12b7   : > { %4077 = dma.done.wait (!%p3288_p10), %s2577_s17, 512  }
0x12b8   : > { %4079 = vsyncadd (!%p3288_p10), %s2577_s17, 4294966784  ;;  %s5156_s18 = sld [smem:[#allocation38_spill]]  ;;  %s5157_s19 = sld [smem:[#allocation39_spill]] }
0x12b9   : > { %p35_p1 = scmp.ge.s32.totalorder %s4570_s25, 4   ;;  %s5158_s20 = smov %s4581_s29 }
0x12ba   : > { %s5159_s21 = smov %s4570_s25 }
0x12bb   :  { %37 = sbr.rel (!%p35_p1) target bundleno = 18 (0x12), region = 222 }
0x12c2   :  { %2582 = vsyncpa [#allocation4], 1 }
0x12c3   :  { %2584 = vsyncpa [#allocation4 + $0x1], 1 }
0x12c4   :  { %2585 = vsyncpa [#allocation7], 1 }
0x12c5   :  { %2586 = vsyncpa [#allocation10], 1 }
0x12c6   :  { %2587 = vsyncpa [#allocation13], 1 }
0x12c7   :  { %2588 = vsyncpa [#allocation16], 1 }
0x12c8   :  { %2589 = vsyncpa [#allocation19], 1 }
0x12c9   :  { %2590 = vsyncpa [#allocation22], 1 }
0x12ca   :  { %2591 = vsyncpa [#allocation25], 1 }
0x12cb   :  { %2592 = vsyncpa [#allocation5], 1 }
0x12cc   :  { %2594 = vsyncpa [#allocation5 + $0x1], 1 }

</bundles_post_ra>
